<compile_context>
chip_gen: v7x
topology: tpu7x:2x2x1
jax: 0.10.0
libtpu: 0.0.40
codegen_flags: <defaults>
</compile_context>

<pallas_src>
import jax
import jax.numpy as jnp
from jax.experimental import pallas as pl
from jax.experimental.pallas import tpu as pltpu

SELU_ALPHA = 1.6732632423543772
SELU_SCALE = 1.0507009873554805
BN_EPS = 1e-5
BLK = 128  # per-batch lane block (128-lane aligned)


def _selu(x):
    # exp(min(x,0)) avoids overflow in the discarded branch; matches F.selu for x<=0.
    return SELU_SCALE * jnp.where(x > 0, x, SELU_ALPHA * (jnp.exp(jnp.minimum(x, 0.0)) - 1.0))


def _sigmoid_eup(x):
    # sigmoid via tanh: single EUP transcendental, no VPU divide.
    return 0.5 * (jnp.tanh(0.5 * x) + 1.0)


def _bn_train(x, count, gamma, beta):
    # Single-pass train-mode BatchNorm over the lane axis.  Columns outside the
    # valid window are exactly zero, so whole-slab sums equal valid-column sums;
    # `count` is the true number of valid columns (B*L).
    inv = 1.0 / count
    s = jnp.sum(x, axis=1, keepdims=True)
    s2 = jnp.sum(x * x, axis=1, keepdims=True)
    mean = s * inv
    var = jnp.maximum(s2 * inv - mean * mean, 0.0)
    return gamma * (x - mean) * jax.lax.rsqrt(var + BN_EPS) + beta


def cnn_lstm_forward(x, params):
    """Forward pass of newCNNLSTM using a single Pallas TPU kernel."""
    B, C_in, L = x.shape
    L1 = L - 1          # after conv1 (k=2, no pad)     -> 53
    L2 = L1 + 2         # after conv2 (k=1, pad=1)      -> 55
    L3 = L1 + 4         # after conv3 (k=1, pad=1)      -> 57
    C1, C2 = 64, 32     # conv channel counts (fixed by the module)
    SEQ = C2            # LSTM sequence length = conv channels = 32
    W = B * BLK         # slab width (each batch 128-lane aligned)

    w_ih = params["lstm_w_ih"]            # (4H, 57)
    w_hh = params["lstm_w_hh"]            # (4H, H)
    H = w_hh.shape[1]
    O = params["fc_w"].shape[0]
    assert w_ih.shape[1] == L3 == 57, "LSTM input_size must be 57 (=> L = 54)"
    assert L3 <= BLK and params["fc_w"].shape[1] == SEQ * H

    # ----- glue: layout prep in plain JAX ------------------------------------
    # conv1's two taps stacked along channels, each batch placed at lane offset
    # +2 inside its 128-lane block (so conv2/conv3 outputs land at +1 / +0).
    xs = jnp.concatenate([x[:, :, :L - 1], x[:, :, 1:]], axis=1)       # (B, 2C_in, L1)
    xs = jnp.transpose(xs, (1, 0, 2))                                  # (2C_in, B, L1)
    xs = jnp.pad(xs, ((0, 0), (0, 0), (2, BLK - 2 - L1)))              # (2C_in, B, 128)
    xs = xs.reshape(2 * C_in, W).astype(jnp.float32)

    w1s = jnp.concatenate([params["conv1_w"][:, :, 0],
                           params["conv1_w"][:, :, 1]], axis=1)        # (64, 2C_in)

    b1 = params["conv1_b"][:, None]                  # (64, 1)  — masks built in-kernel
    w2 = params["conv2_w"][:, :, 0]                  # (32, 64)
    b2 = params["conv2_b"][:, None]                  # (32, 1)
    w3 = params["conv3_w"][:, :, 0]                  # (32, 32)
    b3 = params["conv3_b"][:, None]                  # (32, 1)
    g1 = params["bn1_w"][:, None]
    be1 = params["bn1_b"][:, None]
    g2 = params["bn2_w"][:, None]
    be2 = params["bn2_b"][:, None]

    # LSTM weights as bf16 MXU operands (f32 accumulation in-kernel).  The
    # zero-padded w_ih rows 57..127 stay exactly zero in bf16, so the a3
    # garbage tail lanes are still cancelled.
    wihp = jnp.pad(w_ih.T, ((0, BLK - L3), (0, 0))).astype(jnp.bfloat16)   # (128, 4H)
    whh_t = w_hh.T.astype(jnp.bfloat16)                                    # (H, 4H)
    bl = (params["lstm_b_ih"] + params["lstm_b_hh"])[None, :].astype(jnp.float32)
    wfc = params["fc_w"]                                                   # (O, SEQ*H)
    bfc = params["fc_b"][None, :]                                          # (1, O)

    count2 = float(B * L2)
    count3 = float(B * L3)

    # ----- the kernel ---------------------------------------------------------
    def kernel(xs_ref, w1s_ref, b1_ref,
               w2_ref, b2_ref, g1_ref, be1_ref,
               w3_ref, b3_ref, g2_ref, be2_ref,
               wih_ref, whh_ref, bl_ref, wfc_ref, bfc_ref,
               out_ref,
               hseq_ref):
        # Lane-position masks from one iota (hoisted, computed once) — replaces
        # the old (C, W) bias/mask slab DMAs.
        lane = jax.lax.broadcasted_iota(jnp.int32, (1, W), 1) & (BLK - 1)
        m1 = jnp.where((lane >= 2) & (lane < 2 + L1), 1.0, 0.0)   # conv1 output cols
        m2 = jnp.where((lane >= 1) & (lane < 1 + L2), 1.0, 0.0)   # y2 cols
        m3 = jnp.where(lane < L3, 1.0, 0.0)                       # y3 cols

        # conv1 (both k=2 taps fused into one matmul) + SELU; invalid lanes -> 0.
        a1 = _selu(jnp.dot(w1s_ref[...], xs_ref[...],
                           preferred_element_type=jnp.float32) + b1_ref[...]) * m1   # (64, W)

        # conv2 (k=1, pad=1): pad lanes see bias only (a1 is zero there); tail is
        # zeroed so whole-slab BN sums equal valid-column sums.
        y2 = (jnp.dot(w2_ref[...], a1, preferred_element_type=jnp.float32)
              + b2_ref[...]) * m2                                                     # (32, W)
        a2 = _selu(_bn_train(y2, count2, g1_ref[...], be1_ref[...])) * m2

        # conv3 (k=1, pad=1) + BN2 (train) + SELU.
        y3 = (jnp.dot(w3_ref[...], a2, preferred_element_type=jnp.float32)
              + b3_ref[...]) * m3                                                     # (32, W)
        a3 = _selu(_bn_train(y3, count3, g2_ref[...], be2_ref[...]))                  # (32, W)

        # ----- LSTM (batch_first): seq = channel rows of a3 -------------------
        wih = wih_ref[...]          # (128, 4H) bf16
        whh = whh_ref[...]          # (H, 4H)  bf16

        # Input projections for all timesteps hoisted out of the recurrence:
        # one bf16 matmul per batch, stacked ONCE into (SEQ, B, 4H); junk tail
        # features hit zero-padded weight rows so they contribute exactly 0.
        gx_list = [jnp.dot(a3[:, b * BLK:(b + 1) * BLK].astype(jnp.bfloat16), wih,
                           preferred_element_type=jnp.float32)
                   for b in range(B)]                                   # each (SEQ, 4H)
        gx_seq = jnp.stack(gx_list, axis=1) + bl_ref[...]               # (SEQ, B, 4H)

        # Gate-fusion constants (hoisted): tanh lanes (g) scale 1.0, sigmoid
        # lanes (i/f/o) scale 0.5 so a single tanh covers all four gates.
        glane = jax.lax.broadcasted_iota(jnp.int32, (1, 4 * H), 1)
        is_g = (glane >= 2 * H) & (glane < 3 * H)
        gscale = jnp.where(is_g, 1.0, 0.5)

        h = jnp.zeros((B, H), jnp.float32)
        c = jnp.zeros((B, H), jnp.float32)
        pack = []
        # SEQ=32 fully unrolled: live state is ~20 vregs at B=2 (no spill risk);
        # a fori_loop + VMEM gx scratch would bound live ranges if B grows.
        for t in range(SEQ):
            gates = gx_seq[t] + jnp.dot(h.astype(jnp.bfloat16), whh,
                                        preferred_element_type=jnp.float32)   # (B, 4H)
            th = jnp.tanh(gates * gscale)                 # single EUP launch for all gates
            act = jnp.where(is_g, th, 0.5 * (th + 1.0))   # sigmoid on i/f/o lanes
            i_g = act[:, 0:H]
            f_g = act[:, H:2 * H]
            g_g = act[:, 2 * H:3 * H]
            o_g = act[:, 3 * H:4 * H]
            c = f_g * c + i_g * g_g
            h = o_g * jnp.tanh(c)
            pack.append(h)
            if len(pack) == 4:
                # lane-dense store: 4 timesteps = 4*H = 128 lanes, unmasked vst.
                blk = t // 4
                hseq_ref[:, blk * 4 * H:(blk + 1) * 4 * H] = jnp.concatenate(pack, axis=1)
                pack = []
        if pack:  # only hit if SEQ % 4 != 0 (not the case here)
            start = (SEQ - len(pack)) * H
            hseq_ref[:, start:SEQ * H] = jnp.concatenate(pack, axis=1)

        # fc1 hoisted out of the recurrence: single lane-dense (B,SEQ*H)@(O,SEQ*H)^T.
        logits = jax.lax.dot_general(
            hseq_ref[...], wfc_ref[...],
            dimension_numbers=(((1,), (1,)), ((), ())),
            preferred_element_type=jnp.float32) + bfc_ref[...]
        out_ref[...] = _sigmoid_eup(logits)

    n_inputs = 16
    out = pl.pallas_call(
        kernel,
        out_shape=jax.ShapeDtypeStruct((B, O), jnp.float32),
        in_specs=[pl.BlockSpec(memory_space=pltpu.MemorySpace.VMEM)] * n_inputs,
        out_specs=pl.BlockSpec(memory_space=pltpu.MemorySpace.VMEM),
        scratch_shapes=[
            pltpu.VMEM((B, SEQ * H), jnp.float32),   # per-step hidden states for fc1
        ],
    )(xs, w1s, b1, w2, b2, g1, be1, w3, b3, g2, be2,
      wihp, whh_t, bl, wfc, bfc)
    return out


# --------------------------- pure-JAX reference -------------------------------
def reference_forward(x, params):
    B = x.shape[0]
    w1, b1 = params["conv1_w"], params["conv1_b"]
    y = (jnp.einsum("oc,bct->bot", w1[:, :, 0], x[:, :, :-1])
         + jnp.einsum("oc,bct->bot", w1[:, :, 1], x[:, :, 1:])
         + b1[None, :, None])
    y = _selu(y)

    def bn(z, g, be):
        m = jnp.mean(z, axis=(0, 2), keepdims=True)
        v = jnp.mean((z - m) ** 2, axis=(0, 2), keepdims=True)
        return g[None, :, None] * (z - m) * jax.lax.rsqrt(v + BN_EPS) + be[None, :, None]

    y = jnp.pad(y, ((0, 0), (0, 0), (1, 1)))
    y = jnp.einsum("oc,bct->bot", params["conv2_w"][:, :, 0], y) + params["conv2_b"][None, :, None]
    y = _selu(bn(y, params["bn1_w"], params["bn1_b"]))
    y = jnp.pad(y, ((0, 0), (0, 0), (1, 1)))
    y = jnp.einsum("oc,bct->bot", params["conv3_w"][:, :, 0], y) + params["conv3_b"][None, :, None]
    y = _selu(bn(y, params["bn2_w"], params["bn2_b"]))          # (B, 32, 57)

    H = params["lstm_w_hh"].shape[1]
    h = jnp.zeros((B, H)); c = jnp.zeros((B, H)); outs = []
    for t in range(y.shape[1]):
        g = (y[:, t, :] @ params["lstm_w_ih"].T + h @ params["lstm_w_hh"].T
             + params["lstm_b_ih"] + params["lstm_b_hh"])
        i_g = jax.nn.sigmoid(g[:, 0:H]); f_g = jax.nn.sigmoid(g[:, H:2 * H])
        g_g = jnp.tanh(g[:, 2 * H:3 * H]); o_g = jax.nn.sigmoid(g[:, 3 * H:4 * H])
        c = f_g * c + i_g * g_g
        h = o_g * jnp.tanh(c)
        outs.append(h)
    seq = jnp.stack(outs, axis=1).reshape(B, -1)
    return jax.nn.sigmoid(seq @ params["fc_w"].T + params["fc_b"])


# ------------------------------------ main ------------------------------------
if __name__ == "__main__":
    B, C_in, L = 2, 4, 54          # L=54 so LSTM input_size = 57 as the module requires
    hidden_size, output_size = 32, 8
    C1, C2, SEQ = 64, 32, 32

    key = jax.random.PRNGKey(0)
    ks = jax.random.split(key, 17)
    n = lambda k, shape, s=0.1: s * jax.random.normal(k, shape, jnp.float32)
    params = {
        "conv1_w": n(ks[0], (C1, C_in, 2)),
        "conv1_b": n(ks[1], (C1,)),
        "conv2_w": n(ks[2], (C2, C1, 1)),
        "conv2_b": n(ks[3], (C2,)),
        "bn1_w": 1.0 + n(ks[4], (C2,)),
        "bn1_b": n(ks[5], (C2,)),
        "conv3_w": n(ks[6], (C2, C2, 1)),
        "conv3_b": n(ks[7], (C2,)),
        "bn2_w": 1.0 + n(ks[8], (C2,)),
        "bn2_b": n(ks[9], (C2,)),
        "lstm_w_ih": n(ks[10], (4 * hidden_size, 57)),
        "lstm_w_hh": n(ks[11], (4 * hidden_size, hidden_size)),
        "lstm_b_ih": n(ks[12], (4 * hidden_size,)),
        "lstm_b_hh": n(ks[13], (4 * hidden_size,)),
        "fc_w": n(ks[14], (output_size, SEQ * hidden_size)),
        "fc_b": n(ks[15], (output_size,)),
    }
    x = jax.random.normal(ks[16], (B, C_in, L), jnp.float32)

    out = cnn_lstm_forward(x, params)
    out = jax.block_until_ready(out)

    ref = jax.block_until_ready(reference_forward(x, params))
    assert out.shape == (B, output_size)
    assert bool(jnp.all(jnp.isfinite(out)))
    # Tolerance loosened vs. the all-f32 version: the h@w_hh / a3@w_ih matmuls
    # now use bf16 MXU operands (f32 accumulation); typical error is ~1e-3.
    assert bool(jnp.allclose(out, ref, atol=1e-2, rtol=1e-2)), (out, ref)

    print("KERNEL_OK")
</pallas_src>

<mosaic_0001>
module attributes {stable_mosaic.version = 11 : i64} {
  func.func @kernel(%arg0: memref<8x256xf32, #tpu.memory_space<vmem>>, %arg1: memref<64x8xf32, #tpu.memory_space<vmem>>, %arg2: memref<64x1xf32, #tpu.memory_space<vmem>>, %arg3: memref<32x64xf32, #tpu.memory_space<vmem>>, %arg4: memref<32x1xf32, #tpu.memory_space<vmem>>, %arg5: memref<32x1xf32, #tpu.memory_space<vmem>>, %arg6: memref<32x1xf32, #tpu.memory_space<vmem>>, %arg7: memref<32x32xf32, #tpu.memory_space<vmem>>, %arg8: memref<32x1xf32, #tpu.memory_space<vmem>>, %arg9: memref<32x1xf32, #tpu.memory_space<vmem>>, %arg10: memref<32x1xf32, #tpu.memory_space<vmem>>, %arg11: memref<128x128xbf16, #tpu.memory_space<vmem>>, %arg12: memref<32x128xbf16, #tpu.memory_space<vmem>>, %arg13: memref<1x128xf32, #tpu.memory_space<vmem>>, %arg14: memref<8x1024xf32, #tpu.memory_space<vmem>>, %arg15: memref<1x8xf32, #tpu.memory_space<vmem>>, %arg16: memref<2x8xf32, #tpu.memory_space<vmem>>, %arg17: memref<2x1024xf32, #tpu.memory_space<vmem>>) attributes {dimension_semantics = [], scalar_prefetch = 0 : i64, scratch_operands = 1 : i64, tpu.core_type = #tpu.core_type<tc>} {
    %0 = tpu.iota {dimensions = array<i32: 1>} : vector<1x256xi32>
    %c127_i32 = arith.constant 127 : i32
    %1 = vector.broadcast %c127_i32 : i32 to vector<1x256xi32>
    %2 = arith.andi %0, %1 : vector<1x256xi32>
    %c2_i32 = arith.constant 2 : i32
    %3 = vector.broadcast %c2_i32 : i32 to vector<1x256xi32>
    %4 = arith.cmpi sge, %2, %3 : vector<1x256xi32>
    %c55_i32 = arith.constant 55 : i32
    %5 = vector.broadcast %c55_i32 : i32 to vector<1x256xi32>
    %6 = arith.cmpi slt, %2, %5 : vector<1x256xi32>
    %7 = arith.andi %4, %6 : vector<1x256xi1>
    %cst = arith.constant 1.000000e+00 : f32
    %cst_0 = arith.constant 0.000000e+00 : f32
    %8 = vector.broadcast %cst : f32 to vector<1x256xf32>
    %9 = vector.broadcast %cst_0 : f32 to vector<1x256xf32>
    %10 = arith.select %7, %8, %9 : vector<1x256xi1>, vector<1x256xf32>
    %c1_i32 = arith.constant 1 : i32
    %11 = vector.broadcast %c1_i32 : i32 to vector<1x256xi32>
    %12 = arith.cmpi sge, %2, %11 : vector<1x256xi32>
    %c56_i32 = arith.constant 56 : i32
    %13 = vector.broadcast %c56_i32 : i32 to vector<1x256xi32>
    %14 = arith.cmpi slt, %2, %13 : vector<1x256xi32>
    %15 = arith.andi %12, %14 : vector<1x256xi1>
    %cst_1 = arith.constant 1.000000e+00 : f32
    %cst_2 = arith.constant 0.000000e+00 : f32
    %16 = vector.broadcast %cst_1 : f32 to vector<1x256xf32>
    %17 = vector.broadcast %cst_2 : f32 to vector<1x256xf32>
    %18 = arith.select %15, %16, %17 : vector<1x256xi1>, vector<1x256xf32>
    %c57_i32 = arith.constant 57 : i32
    %19 = vector.broadcast %c57_i32 : i32 to vector<1x256xi32>
    %20 = arith.cmpi slt, %2, %19 : vector<1x256xi32>
    %cst_3 = arith.constant 1.000000e+00 : f32
    %cst_4 = arith.constant 0.000000e+00 : f32
    %21 = vector.broadcast %cst_3 : f32 to vector<1x256xf32>
    %22 = vector.broadcast %cst_4 : f32 to vector<1x256xf32>
    %23 = arith.select %20, %21, %22 : vector<1x256xi1>, vector<1x256xf32>
    %c0 = arith.constant 0 : index
    %c0_5 = arith.constant 0 : index
    %24 = vector.load %arg1[%c0, %c0_5] : memref<64x8xf32, #tpu.memory_space<vmem>>, vector<64x8xf32>
    %c0_6 = arith.constant 0 : index
    %c0_7 = arith.constant 0 : index
    %25 = vector.load %arg0[%c0_6, %c0_7] : memref<8x256xf32, #tpu.memory_space<vmem>>, vector<8x256xf32>
    %cst_8 = arith.constant dense<0.000000e+00> : vector<64x256xf32>
    %26 = tpu.matmul %24, %25, %cst_8 {dimension_numbers = #tpu.dot_dimension_numbers<[1], [0], [0], [1], [0, 0, 1, 1], [], []>} : vector<64x8xf32>, vector<8x256xf32>, vector<64x256xf32> -> vector<64x256xf32>
    %c0_9 = arith.constant 0 : index
    %c0_10 = arith.constant 0 : index
    %27 = vector.load %arg2[%c0_9, %c0_10] : memref<64x1xf32, #tpu.memory_space<vmem>>, vector<64x1xf32>
    %28 = vector.broadcast %27 : vector<64x1xf32> to vector<64x256xf32>
    %29 = arith.addf %26, %28 : vector<64x256xf32>
    %cst_11 = arith.constant 0.000000e+00 : f32
    %30 = vector.broadcast %cst_11 : f32 to vector<64x256xf32>
    %31 = arith.cmpf ogt, %29, %30 : vector<64x256xf32>
    %cst_12 = arith.constant 0.000000e+00 : f32
    %32 = vector.broadcast %cst_12 : f32 to vector<64x256xf32>
    %33 = arith.minimumf %29, %32 : vector<64x256xf32>
    %34 = math.exp %33 : vector<64x256xf32>
    %cst_13 = arith.constant 1.000000e+00 : f32
    %35 = vector.broadcast %cst_13 : f32 to vector<64x256xf32>
    %36 = arith.subf %34, %35 : vector<64x256xf32>
    %cst_14 = arith.constant 1.67326319 : f32
    %37 = vector.broadcast %cst_14 : f32 to vector<64x256xf32>
    %38 = arith.mulf %37, %36 : vector<64x256xf32>
    %39 = arith.select %31, %29, %38 : vector<64x256xi1>, vector<64x256xf32>
    %cst_15 = arith.constant 1.05070102 : f32
    %40 = vector.broadcast %cst_15 : f32 to vector<64x256xf32>
    %41 = arith.mulf %40, %39 : vector<64x256xf32>
    %42 = vector.broadcast %10 : vector<1x256xf32> to vector<64x256xf32>
    %43 = arith.mulf %41, %42 : vector<64x256xf32>
    %c0_16 = arith.constant 0 : index
    %c0_17 = arith.constant 0 : index
    %44 = vector.load %arg3[%c0_16, %c0_17] : memref<32x64xf32, #tpu.memory_space<vmem>>, vector<32x64xf32>
    %cst_18 = arith.constant dense<0.000000e+00> : vector<32x256xf32>
    %45 = tpu.matmul %44, %43, %cst_18 {dimension_numbers = #tpu.dot_dimension_numbers<[1], [0], [0], [1], [0, 0, 1, 1], [], []>} : vector<32x64xf32>, vector<64x256xf32>, vector<32x256xf32> -> vector<32x256xf32>
    %c0_19 = arith.constant 0 : index
    %c0_20 = arith.constant 0 : index
    %46 = vector.load %arg4[%c0_19, %c0_20] : memref<32x1xf32, #tpu.memory_space<vmem>>, vector<32x1xf32>
    %47 = vector.broadcast %46 : vector<32x1xf32> to vector<32x256xf32>
    %48 = arith.addf %45, %47 : vector<32x256xf32>
    %49 = vector.broadcast %18 : vector<1x256xf32> to vector<32x256xf32>
    %50 = arith.mulf %48, %49 : vector<32x256xf32>
    %c0_21 = arith.constant 0 : index
    %c0_22 = arith.constant 0 : index
    %51 = vector.load %arg5[%c0_21, %c0_22] : memref<32x1xf32, #tpu.memory_space<vmem>>, vector<32x1xf32>
    %c0_23 = arith.constant 0 : index
    %c0_24 = arith.constant 0 : index
    %52 = vector.load %arg6[%c0_23, %c0_24] : memref<32x1xf32, #tpu.memory_space<vmem>>, vector<32x1xf32>
    %cst_25 = arith.constant dense<0.000000e+00> : vector<32xf32>
    %53 = vector.multi_reduction <add>, %50, %cst_25 [1] : vector<32x256xf32> to vector<32xf32>
    %54 = vector.shape_cast %53 : vector<32xf32> to vector<32x1xf32>
    %55 = arith.mulf %50, %50 : vector<32x256xf32>
    %cst_26 = arith.constant dense<0.000000e+00> : vector<32xf32>
    %56 = vector.multi_reduction <add>, %55, %cst_26 [1] : vector<32x256xf32> to vector<32xf32>
    %57 = vector.shape_cast %56 : vector<32xf32> to vector<32x1xf32>
    %cst_27 = arith.constant 0.0090909088 : f32
    %58 = vector.broadcast %cst_27 : f32 to vector<32x1xf32>
    %59 = arith.mulf %54, %58 : vector<32x1xf32>
    %cst_28 = arith.constant 0.0090909088 : f32
    %60 = vector.broadcast %cst_28 : f32 to vector<32x1xf32>
    %61 = arith.mulf %57, %60 : vector<32x1xf32>
    %62 = arith.mulf %59, %59 : vector<32x1xf32>
    %63 = arith.subf %61, %62 : vector<32x1xf32>
    %cst_29 = arith.constant 0.000000e+00 : f32
    %64 = vector.broadcast %cst_29 : f32 to vector<32x1xf32>
    %65 = arith.maximumf %63, %64 : vector<32x1xf32>
    %66 = vector.broadcast %59 : vector<32x1xf32> to vector<32x256xf32>
    %67 = arith.subf %50, %66 : vector<32x256xf32>
    %68 = vector.broadcast %51 : vector<32x1xf32> to vector<32x256xf32>
    %69 = arith.mulf %68, %67 : vector<32x256xf32>
    %cst_30 = arith.constant 9.99999974E-6 : f32
    %70 = vector.broadcast %cst_30 : f32 to vector<32x1xf32>
    %71 = arith.addf %65, %70 : vector<32x1xf32>
    %72 = math.rsqrt %71 : vector<32x1xf32>
    %73 = vector.broadcast %72 : vector<32x1xf32> to vector<32x256xf32>
    %74 = arith.mulf %69, %73 : vector<32x256xf32>
    %75 = vector.broadcast %52 : vector<32x1xf32> to vector<32x256xf32>
    %76 = arith.addf %74, %75 : vector<32x256xf32>
    %cst_31 = arith.constant 0.000000e+00 : f32
    %77 = vector.broadcast %cst_31 : f32 to vector<32x256xf32>
    %78 = arith.cmpf ogt, %76, %77 : vector<32x256xf32>
    %cst_32 = arith.constant 0.000000e+00 : f32
    %79 = vector.broadcast %cst_32 : f32 to vector<32x256xf32>
    %80 = arith.minimumf %76, %79 : vector<32x256xf32>
    %81 = math.exp %80 : vector<32x256xf32>
    %cst_33 = arith.constant 1.000000e+00 : f32
    %82 = vector.broadcast %cst_33 : f32 to vector<32x256xf32>
    %83 = arith.subf %81, %82 : vector<32x256xf32>
    %cst_34 = arith.constant 1.67326319 : f32
    %84 = vector.broadcast %cst_34 : f32 to vector<32x256xf32>
    %85 = arith.mulf %84, %83 : vector<32x256xf32>
    %86 = arith.select %78, %76, %85 : vector<32x256xi1>, vector<32x256xf32>
    %cst_35 = arith.constant 1.05070102 : f32
    %87 = vector.broadcast %cst_35 : f32 to vector<32x256xf32>
    %88 = arith.mulf %87, %86 : vector<32x256xf32>
    %89 = vector.broadcast %18 : vector<1x256xf32> to vector<32x256xf32>
    %90 = arith.mulf %88, %89 : vector<32x256xf32>
    %c0_36 = arith.constant 0 : index
    %c0_37 = arith.constant 0 : index
    %91 = vector.load %arg7[%c0_36, %c0_37] : memref<32x32xf32, #tpu.memory_space<vmem>>, vector<32x32xf32>
    %cst_38 = arith.constant dense<0.000000e+00> : vector<32x256xf32>
    %92 = tpu.matmul %91, %90, %cst_38 {dimension_numbers = #tpu.dot_dimension_numbers<[1], [0], [0], [1], [0, 0, 1, 1], [], []>} : vector<32x32xf32>, vector<32x256xf32>, vector<32x256xf32> -> vector<32x256xf32>
    %c0_39 = arith.constant 0 : index
    %c0_40 = arith.constant 0 : index
    %93 = vector.load %arg8[%c0_39, %c0_40] : memref<32x1xf32, #tpu.memory_space<vmem>>, vector<32x1xf32>
    %94 = vector.broadcast %93 : vector<32x1xf32> to vector<32x256xf32>
    %95 = arith.addf %92, %94 : vector<32x256xf32>
    %96 = vector.broadcast %23 : vector<1x256xf32> to vector<32x256xf32>
    %97 = arith.mulf %95, %96 : vector<32x256xf32>
    %c0_41 = arith.constant 0 : index
    %c0_42 = arith.constant 0 : index
    %98 = vector.load %arg9[%c0_41, %c0_42] : memref<32x1xf32, #tpu.memory_space<vmem>>, vector<32x1xf32>
    %c0_43 = arith.constant 0 : index
    %c0_44 = arith.constant 0 : index
    %99 = vector.load %arg10[%c0_43, %c0_44] : memref<32x1xf32, #tpu.memory_space<vmem>>, vector<32x1xf32>
    %cst_45 = arith.constant dense<0.000000e+00> : vector<32xf32>
    %100 = vector.multi_reduction <add>, %97, %cst_45 [1] : vector<32x256xf32> to vector<32xf32>
    %101 = vector.shape_cast %100 : vector<32xf32> to vector<32x1xf32>
    %102 = arith.mulf %97, %97 : vector<32x256xf32>
    %cst_46 = arith.constant dense<0.000000e+00> : vector<32xf32>
    %103 = vector.multi_reduction <add>, %102, %cst_46 [1] : vector<32x256xf32> to vector<32xf32>
    %104 = vector.shape_cast %103 : vector<32xf32> to vector<32x1xf32>
    %cst_47 = arith.constant 0.00877192988 : f32
    %105 = vector.broadcast %cst_47 : f32 to vector<32x1xf32>
    %106 = arith.mulf %101, %105 : vector<32x1xf32>
    %cst_48 = arith.constant 0.00877192988 : f32
    %107 = vector.broadcast %cst_48 : f32 to vector<32x1xf32>
    %108 = arith.mulf %104, %107 : vector<32x1xf32>
    %109 = arith.mulf %106, %106 : vector<32x1xf32>
    %110 = arith.subf %108, %109 : vector<32x1xf32>
    %cst_49 = arith.constant 0.000000e+00 : f32
    %111 = vector.broadcast %cst_49 : f32 to vector<32x1xf32>
    %112 = arith.maximumf %110, %111 : vector<32x1xf32>
    %113 = vector.broadcast %106 : vector<32x1xf32> to vector<32x256xf32>
    %114 = arith.subf %97, %113 : vector<32x256xf32>
    %115 = vector.broadcast %98 : vector<32x1xf32> to vector<32x256xf32>
    %116 = arith.mulf %115, %114 : vector<32x256xf32>
    %cst_50 = arith.constant 9.99999974E-6 : f32
    %117 = vector.broadcast %cst_50 : f32 to vector<32x1xf32>
    %118 = arith.addf %112, %117 : vector<32x1xf32>
    %119 = math.rsqrt %118 : vector<32x1xf32>
    %120 = vector.broadcast %119 : vector<32x1xf32> to vector<32x256xf32>
    %121 = arith.mulf %116, %120 : vector<32x256xf32>
    %122 = vector.broadcast %99 : vector<32x1xf32> to vector<32x256xf32>
    %123 = arith.addf %121, %122 : vector<32x256xf32>
    %cst_51 = arith.constant 0.000000e+00 : f32
    %124 = vector.broadcast %cst_51 : f32 to vector<32x256xf32>
    %125 = arith.cmpf ogt, %123, %124 : vector<32x256xf32>
    %cst_52 = arith.constant 0.000000e+00 : f32
    %126 = vector.broadcast %cst_52 : f32 to vector<32x256xf32>
    %127 = arith.minimumf %123, %126 : vector<32x256xf32>
    %128 = math.exp %127 : vector<32x256xf32>
    %cst_53 = arith.constant 1.000000e+00 : f32
    %129 = vector.broadcast %cst_53 : f32 to vector<32x256xf32>
    %130 = arith.subf %128, %129 : vector<32x256xf32>
    %cst_54 = arith.constant 1.67326319 : f32
    %131 = vector.broadcast %cst_54 : f32 to vector<32x256xf32>
    %132 = arith.mulf %131, %130 : vector<32x256xf32>
    %133 = arith.select %125, %123, %132 : vector<32x256xi1>, vector<32x256xf32>
    %cst_55 = arith.constant 1.05070102 : f32
    %134 = vector.broadcast %cst_55 : f32 to vector<32x256xf32>
    %135 = arith.mulf %134, %133 : vector<32x256xf32>
    %c0_56 = arith.constant 0 : index
    %c0_57 = arith.constant 0 : index
    %136 = vector.load %arg11[%c0_56, %c0_57] : memref<128x128xbf16, #tpu.memory_space<vmem>>, vector<128x128xbf16>
    %c0_58 = arith.constant 0 : index
    %c0_59 = arith.constant 0 : index
    %137 = vector.load %arg12[%c0_58, %c0_59] : memref<32x128xbf16, #tpu.memory_space<vmem>>, vector<32x128xbf16>
    %138 = vector.extract_strided_slice %135 {offsets = [0, 0], sizes = [32, 128], strides = [1, 1]} : vector<32x256xf32> to vector<32x128xf32>
    %139 = arith.truncf %138 : vector<32x128xf32> to vector<32x128xbf16>
    %cst_60 = arith.constant dense<0.000000e+00> : vector<32x128xf32>
    %140 = tpu.matmul %139, %136, %cst_60 {dimension_numbers = #tpu.dot_dimension_numbers<[1], [0], [0], [1], [0, 0, 1, 1], [], []>} : vector<32x128xbf16>, vector<128x128xbf16>, vector<32x128xf32> -> vector<32x128xf32>
    %141 = vector.extract_strided_slice %135 {offsets = [0, 128], sizes = [32, 128], strides = [1, 1]} : vector<32x256xf32> to vector<32x128xf32>
    %142 = arith.truncf %141 : vector<32x128xf32> to vector<32x128xbf16>
    %cst_61 = arith.constant dense<0.000000e+00> : vector<32x128xf32>
    %143 = tpu.matmul %142, %136, %cst_61 {dimension_numbers = #tpu.dot_dimension_numbers<[1], [0], [0], [1], [0, 0, 1, 1], [], []>} : vector<32x128xbf16>, vector<128x128xbf16>, vector<32x128xf32> -> vector<32x128xf32>
    %144 = vector.shape_cast %140 : vector<32x128xf32> to vector<32x1x128xf32>
    %145 = vector.shape_cast %143 : vector<32x128xf32> to vector<32x1x128xf32>
    %146 = tpu.concatenate %144, %145 in 1 : vector<32x1x128xf32>, vector<32x1x128xf32> -> vector<32x2x128xf32>
    %c0_62 = arith.constant 0 : index
    %c0_63 = arith.constant 0 : index
    %147 = vector.load %arg13[%c0_62, %c0_63] : memref<1x128xf32, #tpu.memory_space<vmem>>, vector<1x128xf32>
    %148 = vector.shape_cast %147 : vector<1x128xf32> to vector<1x1x128xf32>
    %149 = vector.broadcast %148 : vector<1x1x128xf32> to vector<32x2x128xf32>
    %150 = arith.addf %146, %149 : vector<32x2x128xf32>
    %151 = tpu.iota {dimensions = array<i32: 1>} : vector<1x128xi32>
    %c64_i32 = arith.constant 64 : i32
    %152 = vector.broadcast %c64_i32 : i32 to vector<1x128xi32>
    %153 = arith.cmpi sge, %151, %152 : vector<1x128xi32>
    %c96_i32 = arith.constant 96 : i32
    %154 = vector.broadcast %c96_i32 : i32 to vector<1x128xi32>
    %155 = arith.cmpi slt, %151, %154 : vector<1x128xi32>
    %156 = arith.andi %153, %155 : vector<1x128xi1>
    %cst_64 = arith.constant 1.000000e+00 : f32
    %cst_65 = arith.constant 5.000000e-01 : f32
    %157 = vector.broadcast %cst_64 : f32 to vector<1x128xf32>
    %158 = vector.broadcast %cst_65 : f32 to vector<1x128xf32>
    %159 = arith.select %156, %157, %158 : vector<1x128xi1>, vector<1x128xf32>
    %cst_66 = arith.constant 0.000000e+00 : f32
    %160 = vector.broadcast %cst_66 : f32 to vector<2x32xf32>
    %cst_67 = arith.constant 0.000000e+00 : f32
    %161 = vector.broadcast %cst_67 : f32 to vector<2x32xf32>
    %162 = vector.extract_strided_slice %150 {offsets = [0, 0, 0], sizes = [1, 2, 128], strides = [1, 1, 1]} : vector<32x2x128xf32> to vector<1x2x128xf32>
    %163 = vector.shape_cast %162 : vector<1x2x128xf32> to vector<2x128xf32>
    %164 = arith.truncf %160 : vector<2x32xf32> to vector<2x32xbf16>
    %cst_68 = arith.constant dense<0.000000e+00> : vector<2x128xf32>
    %165 = tpu.matmul %164, %137, %cst_68 {dimension_numbers = #tpu.dot_dimension_numbers<[1], [0], [0], [1], [0, 0, 1, 1], [], []>} : vector<2x32xbf16>, vector<32x128xbf16>, vector<2x128xf32> -> vector<2x128xf32>
    %166 = arith.addf %163, %165 : vector<2x128xf32>
    %167 = vector.broadcast %159 : vector<1x128xf32> to vector<2x128xf32>
    %168 = arith.mulf %166, %167 : vector<2x128xf32>
    %169 = math.tanh %168 : vector<2x128xf32>
    %cst_69 = arith.constant 1.000000e+00 : f32
    %170 = vector.broadcast %cst_69 : f32 to vector<2x128xf32>
    %171 = arith.addf %169, %170 : vector<2x128xf32>
    %cst_70 = arith.constant 5.000000e-01 : f32
    %172 = vector.broadcast %cst_70 : f32 to vector<2x128xf32>
    %173 = arith.mulf %172, %171 : vector<2x128xf32>
    %174 = vector.shape_cast %156 : vector<1x128xi1> to vector<1x128xi1>
    %175 = vector.broadcast %174 : vector<1x128xi1> to vector<2x128xi1>
    %176 = arith.select %175, %169, %173 : vector<2x128xi1>, vector<2x128xf32>
    %177 = vector.extract_strided_slice %176 {offsets = [0, 0], sizes = [2, 32], strides = [1, 1]} : vector<2x128xf32> to vector<2x32xf32>
    %178 = vector.extract_strided_slice %176 {offsets = [0, 32], sizes = [2, 32], strides = [1, 1]} : vector<2x128xf32> to vector<2x32xf32>
    %179 = vector.extract_strided_slice %176 {offsets = [0, 64], sizes = [2, 32], strides = [1, 1]} : vector<2x128xf32> to vector<2x32xf32>
    %180 = vector.extract_strided_slice %176 {offsets = [0, 96], sizes = [2, 32], strides = [1, 1]} : vector<2x128xf32> to vector<2x32xf32>
    %181 = arith.mulf %178, %161 : vector<2x32xf32>
    %182 = arith.mulf %177, %179 : vector<2x32xf32>
    %183 = arith.addf %181, %182 : vector<2x32xf32>
    %184 = math.tanh %183 : vector<2x32xf32>
    %185 = arith.mulf %180, %184 : vector<2x32xf32>
    %186 = vector.extract_strided_slice %150 {offsets = [1, 0, 0], sizes = [1, 2, 128], strides = [1, 1, 1]} : vector<32x2x128xf32> to vector<1x2x128xf32>
    %187 = vector.shape_cast %186 : vector<1x2x128xf32> to vector<2x128xf32>
    %188 = arith.truncf %185 : vector<2x32xf32> to vector<2x32xbf16>
    %cst_71 = arith.constant dense<0.000000e+00> : vector<2x128xf32>
    %189 = tpu.matmul %188, %137, %cst_71 {dimension_numbers = #tpu.dot_dimension_numbers<[1], [0], [0], [1], [0, 0, 1, 1], [], []>} : vector<2x32xbf16>, vector<32x128xbf16>, vector<2x128xf32> -> vector<2x128xf32>
    %190 = arith.addf %187, %189 : vector<2x128xf32>
    %191 = vector.broadcast %159 : vector<1x128xf32> to vector<2x128xf32>
    %192 = arith.mulf %190, %191 : vector<2x128xf32>
    %193 = math.tanh %192 : vector<2x128xf32>
    %cst_72 = arith.constant 1.000000e+00 : f32
    %194 = vector.broadcast %cst_72 : f32 to vector<2x128xf32>
    %195 = arith.addf %193, %194 : vector<2x128xf32>
    %cst_73 = arith.constant 5.000000e-01 : f32
    %196 = vector.broadcast %cst_73 : f32 to vector<2x128xf32>
    %197 = arith.mulf %196, %195 : vector<2x128xf32>
    %198 = vector.shape_cast %156 : vector<1x128xi1> to vector<1x128xi1>
    %199 = vector.broadcast %198 : vector<1x128xi1> to vector<2x128xi1>
    %200 = arith.select %199, %193, %197 : vector<2x128xi1>, vector<2x128xf32>
    %201 = vector.extract_strided_slice %200 {offsets = [0, 0], sizes = [2, 32], strides = [1, 1]} : vector<2x128xf32> to vector<2x32xf32>
    %202 = vector.extract_strided_slice %200 {offsets = [0, 32], sizes = [2, 32], strides = [1, 1]} : vector<2x128xf32> to vector<2x32xf32>
    %203 = vector.extract_strided_slice %200 {offsets = [0, 64], sizes = [2, 32], strides = [1, 1]} : vector<2x128xf32> to vector<2x32xf32>
    %204 = vector.extract_strided_slice %200 {offsets = [0, 96], sizes = [2, 32], strides = [1, 1]} : vector<2x128xf32> to vector<2x32xf32>
    %205 = arith.mulf %202, %183 : vector<2x32xf32>
    %206 = arith.mulf %201, %203 : vector<2x32xf32>
    %207 = arith.addf %205, %206 : vector<2x32xf32>
    %208 = math.tanh %207 : vector<2x32xf32>
    %209 = arith.mulf %204, %208 : vector<2x32xf32>
    %210 = vector.extract_strided_slice %150 {offsets = [2, 0, 0], sizes = [1, 2, 128], strides = [1, 1, 1]} : vector<32x2x128xf32> to vector<1x2x128xf32>
    %211 = vector.shape_cast %210 : vector<1x2x128xf32> to vector<2x128xf32>
    %212 = arith.truncf %209 : vector<2x32xf32> to vector<2x32xbf16>
    %cst_74 = arith.constant dense<0.000000e+00> : vector<2x128xf32>
    %213 = tpu.matmul %212, %137, %cst_74 {dimension_numbers = #tpu.dot_dimension_numbers<[1], [0], [0], [1], [0, 0, 1, 1], [], []>} : vector<2x32xbf16>, vector<32x128xbf16>, vector<2x128xf32> -> vector<2x128xf32>
    %214 = arith.addf %211, %213 : vector<2x128xf32>
    %215 = vector.broadcast %159 : vector<1x128xf32> to vector<2x128xf32>
    %216 = arith.mulf %214, %215 : vector<2x128xf32>
    %217 = math.tanh %216 : vector<2x128xf32>
    %cst_75 = arith.constant 1.000000e+00 : f32
    %218 = vector.broadcast %cst_75 : f32 to vector<2x128xf32>
    %219 = arith.addf %217, %218 : vector<2x128xf32>
    %cst_76 = arith.constant 5.000000e-01 : f32
    %220 = vector.broadcast %cst_76 : f32 to vector<2x128xf32>
    %221 = arith.mulf %220, %219 : vector<2x128xf32>
    %222 = vector.shape_cast %156 : vector<1x128xi1> to vector<1x128xi1>
    %223 = vector.broadcast %222 : vector<1x128xi1> to vector<2x128xi1>
    %224 = arith.select %223, %217, %221 : vector<2x128xi1>, vector<2x128xf32>
    %225 = vector.extract_strided_slice %224 {offsets = [0, 0], sizes = [2, 32], strides = [1, 1]} : vector<2x128xf32> to vector<2x32xf32>
    %226 = vector.extract_strided_slice %224 {offsets = [0, 32], sizes = [2, 32], strides = [1, 1]} : vector<2x128xf32> to vector<2x32xf32>
    %227 = vector.extract_strided_slice %224 {offsets = [0, 64], sizes = [2, 32], strides = [1, 1]} : vector<2x128xf32> to vector<2x32xf32>
    %228 = vector.extract_strided_slice %224 {offsets = [0, 96], sizes = [2, 32], strides = [1, 1]} : vector<2x128xf32> to vector<2x32xf32>
    %229 = arith.mulf %226, %207 : vector<2x32xf32>
    %230 = arith.mulf %225, %227 : vector<2x32xf32>
    %231 = arith.addf %229, %230 : vector<2x32xf32>
    %232 = math.tanh %231 : vector<2x32xf32>
    %233 = arith.mulf %228, %232 : vector<2x32xf32>
    %234 = vector.extract_strided_slice %150 {offsets = [3, 0, 0], sizes = [1, 2, 128], strides = [1, 1, 1]} : vector<32x2x128xf32> to vector<1x2x128xf32>
    %235 = vector.shape_cast %234 : vector<1x2x128xf32> to vector<2x128xf32>
    %236 = arith.truncf %233 : vector<2x32xf32> to vector<2x32xbf16>
    %cst_77 = arith.constant dense<0.000000e+00> : vector<2x128xf32>
    %237 = tpu.matmul %236, %137, %cst_77 {dimension_numbers = #tpu.dot_dimension_numbers<[1], [0], [0], [1], [0, 0, 1, 1], [], []>} : vector<2x32xbf16>, vector<32x128xbf16>, vector<2x128xf32> -> vector<2x128xf32>
    %238 = arith.addf %235, %237 : vector<2x128xf32>
    %239 = vector.broadcast %159 : vector<1x128xf32> to vector<2x128xf32>
    %240 = arith.mulf %238, %239 : vector<2x128xf32>
    %241 = math.tanh %240 : vector<2x128xf32>
    %cst_78 = arith.constant 1.000000e+00 : f32
    %242 = vector.broadcast %cst_78 : f32 to vector<2x128xf32>
    %243 = arith.addf %241, %242 : vector<2x128xf32>
    %cst_79 = arith.constant 5.000000e-01 : f32
    %244 = vector.broadcast %cst_79 : f32 to vector<2x128xf32>
    %245 = arith.mulf %244, %243 : vector<2x128xf32>
    %246 = vector.shape_cast %156 : vector<1x128xi1> to vector<1x128xi1>
    %247 = vector.broadcast %246 : vector<1x128xi1> to vector<2x128xi1>
    %248 = arith.select %247, %241, %245 : vector<2x128xi1>, vector<2x128xf32>
    %249 = vector.extract_strided_slice %248 {offsets = [0, 0], sizes = [2, 32], strides = [1, 1]} : vector<2x128xf32> to vector<2x32xf32>
    %250 = vector.extract_strided_slice %248 {offsets = [0, 32], sizes = [2, 32], strides = [1, 1]} : vector<2x128xf32> to vector<2x32xf32>
    %251 = vector.extract_strided_slice %248 {offsets = [0, 64], sizes = [2, 32], strides = [1, 1]} : vector<2x128xf32> to vector<2x32xf32>
    %252 = vector.extract_strided_slice %248 {offsets = [0, 96], sizes = [2, 32], strides = [1, 1]} : vector<2x128xf32> to vector<2x32xf32>
    %253 = arith.mulf %250, %231 : vector<2x32xf32>
    %254 = arith.mulf %249, %251 : vector<2x32xf32>
    %255 = arith.addf %253, %254 : vector<2x32xf32>
    %256 = math.tanh %255 : vector<2x32xf32>
    %257 = arith.mulf %252, %256 : vector<2x32xf32>
    %258 = tpu.concatenate %185, %209, %233, %257 in 1 : vector<2x32xf32>, vector<2x32xf32>, vector<2x32xf32>, vector<2x32xf32> -> vector<2x128xf32>
    %c0_80 = arith.constant 0 : index
    %c0_81 = arith.constant 0 : index
    %259 = vector.load %arg17[%c0_80, %c0_81] : memref<2x1024xf32, #tpu.memory_space<vmem>>, vector<2x128xf32>
    tpu.vector_store %arg17[%c0_80, %c0_81], %258 {strides = array<i32>} : memref<2x1024xf32, #tpu.memory_space<vmem>>, vector<2x128xf32>,
    %260 = vector.extract_strided_slice %150 {offsets = [4, 0, 0], sizes = [1, 2, 128], strides = [1, 1, 1]} : vector<32x2x128xf32> to vector<1x2x128xf32>
    %261 = vector.shape_cast %260 : vector<1x2x128xf32> to vector<2x128xf32>
    %262 = arith.truncf %257 : vector<2x32xf32> to vector<2x32xbf16>
    %cst_82 = arith.constant dense<0.000000e+00> : vector<2x128xf32>
    %263 = tpu.matmul %262, %137, %cst_82 {dimension_numbers = #tpu.dot_dimension_numbers<[1], [0], [0], [1], [0, 0, 1, 1], [], []>} : vector<2x32xbf16>, vector<32x128xbf16>, vector<2x128xf32> -> vector<2x128xf32>
    %264 = arith.addf %261, %263 : vector<2x128xf32>
    %265 = vector.broadcast %159 : vector<1x128xf32> to vector<2x128xf32>
    %266 = arith.mulf %264, %265 : vector<2x128xf32>
    %267 = math.tanh %266 : vector<2x128xf32>
    %cst_83 = arith.constant 1.000000e+00 : f32
    %268 = vector.broadcast %cst_83 : f32 to vector<2x128xf32>
    %269 = arith.addf %267, %268 : vector<2x128xf32>
    %cst_84 = arith.constant 5.000000e-01 : f32
    %270 = vector.broadcast %cst_84 : f32 to vector<2x128xf32>
    %271 = arith.mulf %270, %269 : vector<2x128xf32>
    %272 = vector.shape_cast %156 : vector<1x128xi1> to vector<1x128xi1>
    %273 = vector.broadcast %272 : vector<1x128xi1> to vector<2x128xi1>
    %274 = arith.select %273, %267, %271 : vector<2x128xi1>, vector<2x128xf32>
    %275 = vector.extract_strided_slice %274 {offsets = [0, 0], sizes = [2, 32], strides = [1, 1]} : vector<2x128xf32> to vector<2x32xf32>
    %276 = vector.extract_strided_slice %274 {offsets = [0, 32], sizes = [2, 32], strides = [1, 1]} : vector<2x128xf32> to vector<2x32xf32>
    %277 = vector.extract_strided_slice %274 {offsets = [0, 64], sizes = [2, 32], strides = [1, 1]} : vector<2x128xf32> to vector<2x32xf32>
    %278 = vector.extract_strided_slice %274 {offsets = [0, 96], sizes = [2, 32], strides = [1, 1]} : vector<2x128xf32> to vector<2x32xf32>
    %279 = arith.mulf %276, %255 : vector<2x32xf32>
    %280 = arith.mulf %275, %277 : vector<2x32xf32>
    %281 = arith.addf %279, %280 : vector<2x32xf32>
    %282 = math.tanh %281 : vector<2x32xf32>
    %283 = arith.mulf %278, %282 : vector<2x32xf32>
    %284 = vector.extract_strided_slice %150 {offsets = [5, 0, 0], sizes = [1, 2, 128], strides = [1, 1, 1]} : vector<32x2x128xf32> to vector<1x2x128xf32>
    %285 = vector.shape_cast %284 : vector<1x2x128xf32> to vector<2x128xf32>
    %286 = arith.truncf %283 : vector<2x32xf32> to vector<2x32xbf16>
    %cst_85 = arith.constant dense<0.000000e+00> : vector<2x128xf32>
    %287 = tpu.matmul %286, %137, %cst_85 {dimension_numbers = #tpu.dot_dimension_numbers<[1], [0], [0], [1], [0, 0, 1, 1], [], []>} : vector<2x32xbf16>, vector<32x128xbf16>, vector<2x128xf32> -> vector<2x128xf32>
    %288 = arith.addf %285, %287 : vector<2x128xf32>
    %289 = vector.broadcast %159 : vector<1x128xf32> to vector<2x128xf32>
    %290 = arith.mulf %288, %289 : vector<2x128xf32>
    %291 = math.tanh %290 : vector<2x128xf32>
    %cst_86 = arith.constant 1.000000e+00 : f32
    %292 = vector.broadcast %cst_86 : f32 to vector<2x128xf32>
    %293 = arith.addf %291, %292 : vector<2x128xf32>
    %cst_87 = arith.constant 5.000000e-01 : f32
    %294 = vector.broadcast %cst_87 : f32 to vector<2x128xf32>
    %295 = arith.mulf %294, %293 : vector<2x128xf32>
    %296 = vector.shape_cast %156 : vector<1x128xi1> to vector<1x128xi1>
    %297 = vector.broadcast %296 : vector<1x128xi1> to vector<2x128xi1>
    %298 = arith.select %297, %291, %295 : vector<2x128xi1>, vector<2x128xf32>
    %299 = vector.extract_strided_slice %298 {offsets = [0, 0], sizes = [2, 32], strides = [1, 1]} : vector<2x128xf32> to vector<2x32xf32>
    %300 = vector.extract_strided_slice %298 {offsets = [0, 32], sizes = [2, 32], strides = [1, 1]} : vector<2x128xf32> to vector<2x32xf32>
    %301 = vector.extract_strided_slice %298 {offsets = [0, 64], sizes = [2, 32], strides = [1, 1]} : vector<2x128xf32> to vector<2x32xf32>
    %302 = vector.extract_strided_slice %298 {offsets = [0, 96], sizes = [2, 32], strides = [1, 1]} : vector<2x128xf32> to vector<2x32xf32>
    %303 = arith.mulf %300, %281 : vector<2x32xf32>
    %304 = arith.mulf %299, %301 : vector<2x32xf32>
    %305 = arith.addf %303, %304 : vector<2x32xf32>
    %306 = math.tanh %305 : vector<2x32xf32>
    %307 = arith.mulf %302, %306 : vector<2x32xf32>
    %308 = vector.extract_strided_slice %150 {offsets = [6, 0, 0], sizes = [1, 2, 128], strides = [1, 1, 1]} : vector<32x2x128xf32> to vector<1x2x128xf32>
    %309 = vector.shape_cast %308 : vector<1x2x128xf32> to vector<2x128xf32>
    %310 = arith.truncf %307 : vector<2x32xf32> to vector<2x32xbf16>
    %cst_88 = arith.constant dense<0.000000e+00> : vector<2x128xf32>
    %311 = tpu.matmul %310, %137, %cst_88 {dimension_numbers = #tpu.dot_dimension_numbers<[1], [0], [0], [1], [0, 0, 1, 1], [], []>} : vector<2x32xbf16>, vector<32x128xbf16>, vector<2x128xf32> -> vector<2x128xf32>
    %312 = arith.addf %309, %311 : vector<2x128xf32>
    %313 = vector.broadcast %159 : vector<1x128xf32> to vector<2x128xf32>
    %314 = arith.mulf %312, %313 : vector<2x128xf32>
    %315 = math.tanh %314 : vector<2x128xf32>
    %cst_89 = arith.constant 1.000000e+00 : f32
    %316 = vector.broadcast %cst_89 : f32 to vector<2x128xf32>
    %317 = arith.addf %315, %316 : vector<2x128xf32>
    %cst_90 = arith.constant 5.000000e-01 : f32
    %318 = vector.broadcast %cst_90 : f32 to vector<2x128xf32>
    %319 = arith.mulf %318, %317 : vector<2x128xf32>
    %320 = vector.shape_cast %156 : vector<1x128xi1> to vector<1x128xi1>
    %321 = vector.broadcast %320 : vector<1x128xi1> to vector<2x128xi1>
    %322 = arith.select %321, %315, %319 : vector<2x128xi1>, vector<2x128xf32>
    %323 = vector.extract_strided_slice %322 {offsets = [0, 0], sizes = [2, 32], strides = [1, 1]} : vector<2x128xf32> to vector<2x32xf32>
    %324 = vector.extract_strided_slice %322 {offsets = [0, 32], sizes = [2, 32], strides = [1, 1]} : vector<2x128xf32> to vector<2x32xf32>
    %325 = vector.extract_strided_slice %322 {offsets = [0, 64], sizes = [2, 32], strides = [1, 1]} : vector<2x128xf32> to vector<2x32xf32>
    %326 = vector.extract_strided_slice %322 {offsets = [0, 96], sizes = [2, 32], strides = [1, 1]} : vector<2x128xf32> to vector<2x32xf32>
    %327 = arith.mulf %324, %305 : vector<2x32xf32>
    %328 = arith.mulf %323, %325 : vector<2x32xf32>
    %329 = arith.addf %327, %328 : vector<2x32xf32>
    %330 = math.tanh %329 : vector<2x32xf32>
    %331 = arith.mulf %326, %330 : vector<2x32xf32>
    %332 = vector.extract_strided_slice %150 {offsets = [7, 0, 0], sizes = [1, 2, 128], strides = [1, 1, 1]} : vector<32x2x128xf32> to vector<1x2x128xf32>
    %333 = vector.shape_cast %332 : vector<1x2x128xf32> to vector<2x128xf32>
    %334 = arith.truncf %331 : vector<2x32xf32> to vector<2x32xbf16>
    %cst_91 = arith.constant dense<0.000000e+00> : vector<2x128xf32>
    %335 = tpu.matmul %334, %137, %cst_91 {dimension_numbers = #tpu.dot_dimension_numbers<[1], [0], [0], [1], [0, 0, 1, 1], [], []>} : vector<2x32xbf16>, vector<32x128xbf16>, vector<2x128xf32> -> vector<2x128xf32>
    %336 = arith.addf %333, %335 : vector<2x128xf32>
    %337 = vector.broadcast %159 : vector<1x128xf32> to vector<2x128xf32>
    %338 = arith.mulf %336, %337 : vector<2x128xf32>
    %339 = math.tanh %338 : vector<2x128xf32>
    %cst_92 = arith.constant 1.000000e+00 : f32
    %340 = vector.broadcast %cst_92 : f32 to vector<2x128xf32>
    %341 = arith.addf %339, %340 : vector<2x128xf32>
    %cst_93 = arith.constant 5.000000e-01 : f32
    %342 = vector.broadcast %cst_93 : f32 to vector<2x128xf32>
    %343 = arith.mulf %342, %341 : vector<2x128xf32>
    %344 = vector.shape_cast %156 : vector<1x128xi1> to vector<1x128xi1>
    %345 = vector.broadcast %344 : vector<1x128xi1> to vector<2x128xi1>
    %346 = arith.select %345, %339, %343 : vector<2x128xi1>, vector<2x128xf32>
    %347 = vector.extract_strided_slice %346 {offsets = [0, 0], sizes = [2, 32], strides = [1, 1]} : vector<2x128xf32> to vector<2x32xf32>
    %348 = vector.extract_strided_slice %346 {offsets = [0, 32], sizes = [2, 32], strides = [1, 1]} : vector<2x128xf32> to vector<2x32xf32>
    %349 = vector.extract_strided_slice %346 {offsets = [0, 64], sizes = [2, 32], strides = [1, 1]} : vector<2x128xf32> to vector<2x32xf32>
    %350 = vector.extract_strided_slice %346 {offsets = [0, 96], sizes = [2, 32], strides = [1, 1]} : vector<2x128xf32> to vector<2x32xf32>
    %351 = arith.mulf %348, %329 : vector<2x32xf32>
    %352 = arith.mulf %347, %349 : vector<2x32xf32>
    %353 = arith.addf %351, %352 : vector<2x32xf32>
    %354 = math.tanh %353 : vector<2x32xf32>
    %355 = arith.mulf %350, %354 : vector<2x32xf32>
    %356 = tpu.concatenate %283, %307, %331, %355 in 1 : vector<2x32xf32>, vector<2x32xf32>, vector<2x32xf32>, vector<2x32xf32> -> vector<2x128xf32>
    %c0_94 = arith.constant 0 : index
    %c128 = arith.constant 128 : index
    %357 = vector.load %arg17[%c0_94, %c128] : memref<2x1024xf32, #tpu.memory_space<vmem>>, vector<2x128xf32>
    tpu.vector_store %arg17[%c0_94, %c128], %356 {strides = array<i32>} : memref<2x1024xf32, #tpu.memory_space<vmem>>, vector<2x128xf32>,
    %358 = vector.extract_strided_slice %150 {offsets = [8, 0, 0], sizes = [1, 2, 128], strides = [1, 1, 1]} : vector<32x2x128xf32> to vector<1x2x128xf32>
    %359 = vector.shape_cast %358 : vector<1x2x128xf32> to vector<2x128xf32>
    %360 = arith.truncf %355 : vector<2x32xf32> to vector<2x32xbf16>
    %cst_95 = arith.constant dense<0.000000e+00> : vector<2x128xf32>
    %361 = tpu.matmul %360, %137, %cst_95 {dimension_numbers = #tpu.dot_dimension_numbers<[1], [0], [0], [1], [0, 0, 1, 1], [], []>} : vector<2x32xbf16>, vector<32x128xbf16>, vector<2x128xf32> -> vector<2x128xf32>
    %362 = arith.addf %359, %361 : vector<2x128xf32>
    %363 = vector.broadcast %159 : vector<1x128xf32> to vector<2x128xf32>
    %364 = arith.mulf %362, %363 : vector<2x128xf32>
    %365 = math.tanh %364 : vector<2x128xf32>
    %cst_96 = arith.constant 1.000000e+00 : f32
    %366 = vector.broadcast %cst_96 : f32 to vector<2x128xf32>
    %367 = arith.addf %365, %366 : vector<2x128xf32>
    %cst_97 = arith.constant 5.000000e-01 : f32
    %368 = vector.broadcast %cst_97 : f32 to vector<2x128xf32>
    %369 = arith.mulf %368, %367 : vector<2x128xf32>
    %370 = vector.shape_cast %156 : vector<1x128xi1> to vector<1x128xi1>
    %371 = vector.broadcast %370 : vector<1x128xi1> to vector<2x128xi1>
    %372 = arith.select %371, %365, %369 : vector<2x128xi1>, vector<2x128xf32>
    %373 = vector.extract_strided_slice %372 {offsets = [0, 0], sizes = [2, 32], strides = [1, 1]} : vector<2x128xf32> to vector<2x32xf32>
    %374 = vector.extract_strided_slice %372 {offsets = [0, 32], sizes = [2, 32], strides = [1, 1]} : vector<2x128xf32> to vector<2x32xf32>
    %375 = vector.extract_strided_slice %372 {offsets = [0, 64], sizes = [2, 32], strides = [1, 1]} : vector<2x128xf32> to vector<2x32xf32>
    %376 = vector.extract_strided_slice %372 {offsets = [0, 96], sizes = [2, 32], strides = [1, 1]} : vector<2x128xf32> to vector<2x32xf32>
    %377 = arith.mulf %374, %353 : vector<2x32xf32>
    %378 = arith.mulf %373, %375 : vector<2x32xf32>
    %379 = arith.addf %377, %378 : vector<2x32xf32>
    %380 = math.tanh %379 : vector<2x32xf32>
    %381 = arith.mulf %376, %380 : vector<2x32xf32>
    %382 = vector.extract_strided_slice %150 {offsets = [9, 0, 0], sizes = [1, 2, 128], strides = [1, 1, 1]} : vector<32x2x128xf32> to vector<1x2x128xf32>
    %383 = vector.shape_cast %382 : vector<1x2x128xf32> to vector<2x128xf32>
    %384 = arith.truncf %381 : vector<2x32xf32> to vector<2x32xbf16>
    %cst_98 = arith.constant dense<0.000000e+00> : vector<2x128xf32>
    %385 = tpu.matmul %384, %137, %cst_98 {dimension_numbers = #tpu.dot_dimension_numbers<[1], [0], [0], [1], [0, 0, 1, 1], [], []>} : vector<2x32xbf16>, vector<32x128xbf16>, vector<2x128xf32> -> vector<2x128xf32>
    %386 = arith.addf %383, %385 : vector<2x128xf32>
    %387 = vector.broadcast %159 : vector<1x128xf32> to vector<2x128xf32>
    %388 = arith.mulf %386, %387 : vector<2x128xf32>
    %389 = math.tanh %388 : vector<2x128xf32>
    %cst_99 = arith.constant 1.000000e+00 : f32
    %390 = vector.broadcast %cst_99 : f32 to vector<2x128xf32>
    %391 = arith.addf %389, %390 : vector<2x128xf32>
    %cst_100 = arith.constant 5.000000e-01 : f32
    %392 = vector.broadcast %cst_100 : f32 to vector<2x128xf32>
    %393 = arith.mulf %392, %391 : vector<2x128xf32>
    %394 = vector.shape_cast %156 : vector<1x128xi1> to vector<1x128xi1>
    %395 = vector.broadcast %394 : vector<1x128xi1> to vector<2x128xi1>
    %396 = arith.select %395, %389, %393 : vector<2x128xi1>, vector<2x128xf32>
    %397 = vector.extract_strided_slice %396 {offsets = [0, 0], sizes = [2, 32], strides = [1, 1]} : vector<2x128xf32> to vector<2x32xf32>
    %398 = vector.extract_strided_slice %396 {offsets = [0, 32], sizes = [2, 32], strides = [1, 1]} : vector<2x128xf32> to vector<2x32xf32>
    %399 = vector.extract_strided_slice %396 {offsets = [0, 64], sizes = [2, 32], strides = [1, 1]} : vector<2x128xf32> to vector<2x32xf32>
    %400 = vector.extract_strided_slice %396 {offsets = [0, 96], sizes = [2, 32], strides = [1, 1]} : vector<2x128xf32> to vector<2x32xf32>
    %401 = arith.mulf %398, %379 : vector<2x32xf32>
    %402 = arith.mulf %397, %399 : vector<2x32xf32>
    %403 = arith.addf %401, %402 : vector<2x32xf32>
    %404 = math.tanh %403 : vector<2x32xf32>
    %405 = arith.mulf %400, %404 : vector<2x32xf32>
    %406 = vector.extract_strided_slice %150 {offsets = [10, 0, 0], sizes = [1, 2, 128], strides = [1, 1, 1]} : vector<32x2x128xf32> to vector<1x2x128xf32>
    %407 = vector.shape_cast %406 : vector<1x2x128xf32> to vector<2x128xf32>
    %408 = arith.truncf %405 : vector<2x32xf32> to vector<2x32xbf16>
    %cst_101 = arith.constant dense<0.000000e+00> : vector<2x128xf32>
    %409 = tpu.matmul %408, %137, %cst_101 {dimension_numbers = #tpu.dot_dimension_numbers<[1], [0], [0], [1], [0, 0, 1, 1], [], []>} : vector<2x32xbf16>, vector<32x128xbf16>, vector<2x128xf32> -> vector<2x128xf32>
    %410 = arith.addf %407, %409 : vector<2x128xf32>
    %411 = vector.broadcast %159 : vector<1x128xf32> to vector<2x128xf32>
    %412 = arith.mulf %410, %411 : vector<2x128xf32>
    %413 = math.tanh %412 : vector<2x128xf32>
    %cst_102 = arith.constant 1.000000e+00 : f32
    %414 = vector.broadcast %cst_102 : f32 to vector<2x128xf32>
    %415 = arith.addf %413, %414 : vector<2x128xf32>
    %cst_103 = arith.constant 5.000000e-01 : f32
    %416 = vector.broadcast %cst_103 : f32 to vector<2x128xf32>
    %417 = arith.mulf %416, %415 : vector<2x128xf32>
    %418 = vector.shape_cast %156 : vector<1x128xi1> to vector<1x128xi1>
    %419 = vector.broadcast %418 : vector<1x128xi1> to vector<2x128xi1>
    %420 = arith.select %419, %413, %417 : vector<2x128xi1>, vector<2x128xf32>
    %421 = vector.extract_strided_slice %420 {offsets = [0, 0], sizes = [2, 32], strides = [1, 1]} : vector<2x128xf32> to vector<2x32xf32>
    %422 = vector.extract_strided_slice %420 {offsets = [0, 32], sizes = [2, 32], strides = [1, 1]} : vector<2x128xf32> to vector<2x32xf32>
    %423 = vector.extract_strided_slice %420 {offsets = [0, 64], sizes = [2, 32], strides = [1, 1]} : vector<2x128xf32> to vector<2x32xf32>
    %424 = vector.extract_strided_slice %420 {offsets = [0, 96], sizes = [2, 32], strides = [1, 1]} : vector<2x128xf32> to vector<2x32xf32>
    %425 = arith.mulf %422, %403 : vector<2x32xf32>
    %426 = arith.mulf %421, %423 : vector<2x32xf32>
    %427 = arith.addf %425, %426 : vector<2x32xf32>
    %428 = math.tanh %427 : vector<2x32xf32>
    %429 = arith.mulf %424, %428 : vector<2x32xf32>
    %430 = vector.extract_strided_slice %150 {offsets = [11, 0, 0], sizes = [1, 2, 128], strides = [1, 1, 1]} : vector<32x2x128xf32> to vector<1x2x128xf32>
    %431 = vector.shape_cast %430 : vector<1x2x128xf32> to vector<2x128xf32>
    %432 = arith.truncf %429 : vector<2x32xf32> to vector<2x32xbf16>
    %cst_104 = arith.constant dense<0.000000e+00> : vector<2x128xf32>
    %433 = tpu.matmul %432, %137, %cst_104 {dimension_numbers = #tpu.dot_dimension_numbers<[1], [0], [0], [1], [0, 0, 1, 1], [], []>} : vector<2x32xbf16>, vector<32x128xbf16>, vector<2x128xf32> -> vector<2x128xf32>
    %434 = arith.addf %431, %433 : vector<2x128xf32>
    %435 = vector.broadcast %159 : vector<1x128xf32> to vector<2x128xf32>
    %436 = arith.mulf %434, %435 : vector<2x128xf32>
    %437 = math.tanh %436 : vector<2x128xf32>
    %cst_105 = arith.constant 1.000000e+00 : f32
    %438 = vector.broadcast %cst_105 : f32 to vector<2x128xf32>
    %439 = arith.addf %437, %438 : vector<2x128xf32>
    %cst_106 = arith.constant 5.000000e-01 : f32
    %440 = vector.broadcast %cst_106 : f32 to vector<2x128xf32>
    %441 = arith.mulf %440, %439 : vector<2x128xf32>
    %442 = vector.shape_cast %156 : vector<1x128xi1> to vector<1x128xi1>
    %443 = vector.broadcast %442 : vector<1x128xi1> to vector<2x128xi1>
    %444 = arith.select %443, %437, %441 : vector<2x128xi1>, vector<2x128xf32>
    %445 = vector.extract_strided_slice %444 {offsets = [0, 0], sizes = [2, 32], strides = [1, 1]} : vector<2x128xf32> to vector<2x32xf32>
    %446 = vector.extract_strided_slice %444 {offsets = [0, 32], sizes = [2, 32], strides = [1, 1]} : vector<2x128xf32> to vector<2x32xf32>
    %447 = vector.extract_strided_slice %444 {offsets = [0, 64], sizes = [2, 32], strides = [1, 1]} : vector<2x128xf32> to vector<2x32xf32>
    %448 = vector.extract_strided_slice %444 {offsets = [0, 96], sizes = [2, 32], strides = [1, 1]} : vector<2x128xf32> to vector<2x32xf32>
    %449 = arith.mulf %446, %427 : vector<2x32xf32>
    %450 = arith.mulf %445, %447 : vector<2x32xf32>
    %451 = arith.addf %449, %450 : vector<2x32xf32>
    %452 = math.tanh %451 : vector<2x32xf32>
    %453 = arith.mulf %448, %452 : vector<2x32xf32>
    %454 = tpu.concatenate %381, %405, %429, %453 in 1 : vector<2x32xf32>, vector<2x32xf32>, vector<2x32xf32>, vector<2x32xf32> -> vector<2x128xf32>
    %c0_107 = arith.constant 0 : index
    %c256 = arith.constant 256 : index
    %455 = vector.load %arg17[%c0_107, %c256] : memref<2x1024xf32, #tpu.memory_space<vmem>>, vector<2x128xf32>
    tpu.vector_store %arg17[%c0_107, %c256], %454 {strides = array<i32>} : memref<2x1024xf32, #tpu.memory_space<vmem>>, vector<2x128xf32>,
    %456 = vector.extract_strided_slice %150 {offsets = [12, 0, 0], sizes = [1, 2, 128], strides = [1, 1, 1]} : vector<32x2x128xf32> to vector<1x2x128xf32>
    %457 = vector.shape_cast %456 : vector<1x2x128xf32> to vector<2x128xf32>
    %458 = arith.truncf %453 : vector<2x32xf32> to vector<2x32xbf16>
    %cst_108 = arith.constant dense<0.000000e+00> : vector<2x128xf32>
    %459 = tpu.matmul %458, %137, %cst_108 {dimension_numbers = #tpu.dot_dimension_numbers<[1], [0], [0], [1], [0, 0, 1, 1], [], []>} : vector<2x32xbf16>, vector<32x128xbf16>, vector<2x128xf32> -> vector<2x128xf32>
    %460 = arith.addf %457, %459 : vector<2x128xf32>
    %461 = vector.broadcast %159 : vector<1x128xf32> to vector<2x128xf32>
    %462 = arith.mulf %460, %461 : vector<2x128xf32>
    %463 = math.tanh %462 : vector<2x128xf32>
    %cst_109 = arith.constant 1.000000e+00 : f32
    %464 = vector.broadcast %cst_109 : f32 to vector<2x128xf32>
    %465 = arith.addf %463, %464 : vector<2x128xf32>
    %cst_110 = arith.constant 5.000000e-01 : f32
    %466 = vector.broadcast %cst_110 : f32 to vector<2x128xf32>
    %467 = arith.mulf %466, %465 : vector<2x128xf32>
    %468 = vector.shape_cast %156 : vector<1x128xi1> to vector<1x128xi1>
    %469 = vector.broadcast %468 : vector<1x128xi1> to vector<2x128xi1>
    %470 = arith.select %469, %463, %467 : vector<2x128xi1>, vector<2x128xf32>
    %471 = vector.extract_strided_slice %470 {offsets = [0, 0], sizes = [2, 32], strides = [1, 1]} : vector<2x128xf32> to vector<2x32xf32>
    %472 = vector.extract_strided_slice %470 {offsets = [0, 32], sizes = [2, 32], strides = [1, 1]} : vector<2x128xf32> to vector<2x32xf32>
    %473 = vector.extract_strided_slice %470 {offsets = [0, 64], sizes = [2, 32], strides = [1, 1]} : vector<2x128xf32> to vector<2x32xf32>
    %474 = vector.extract_strided_slice %470 {offsets = [0, 96], sizes = [2, 32], strides = [1, 1]} : vector<2x128xf32> to vector<2x32xf32>
    %475 = arith.mulf %472, %451 : vector<2x32xf32>
    %476 = arith.mulf %471, %473 : vector<2x32xf32>
    %477 = arith.addf %475, %476 : vector<2x32xf32>
    %478 = math.tanh %477 : vector<2x32xf32>
    %479 = arith.mulf %474, %478 : vector<2x32xf32>
    %480 = vector.extract_strided_slice %150 {offsets = [13, 0, 0], sizes = [1, 2, 128], strides = [1, 1, 1]} : vector<32x2x128xf32> to vector<1x2x128xf32>
    %481 = vector.shape_cast %480 : vector<1x2x128xf32> to vector<2x128xf32>
    %482 = arith.truncf %479 : vector<2x32xf32> to vector<2x32xbf16>
    %cst_111 = arith.constant dense<0.000000e+00> : vector<2x128xf32>
    %483 = tpu.matmul %482, %137, %cst_111 {dimension_numbers = #tpu.dot_dimension_numbers<[1], [0], [0], [1], [0, 0, 1, 1], [], []>} : vector<2x32xbf16>, vector<32x128xbf16>, vector<2x128xf32> -> vector<2x128xf32>
    %484 = arith.addf %481, %483 : vector<2x128xf32>
    %485 = vector.broadcast %159 : vector<1x128xf32> to vector<2x128xf32>
    %486 = arith.mulf %484, %485 : vector<2x128xf32>
    %487 = math.tanh %486 : vector<2x128xf32>
    %cst_112 = arith.constant 1.000000e+00 : f32
    %488 = vector.broadcast %cst_112 : f32 to vector<2x128xf32>
    %489 = arith.addf %487, %488 : vector<2x128xf32>
    %cst_113 = arith.constant 5.000000e-01 : f32
    %490 = vector.broadcast %cst_113 : f32 to vector<2x128xf32>
    %491 = arith.mulf %490, %489 : vector<2x128xf32>
    %492 = vector.shape_cast %156 : vector<1x128xi1> to vector<1x128xi1>
    %493 = vector.broadcast %492 : vector<1x128xi1> to vector<2x128xi1>
    %494 = arith.select %493, %487, %491 : vector<2x128xi1>, vector<2x128xf32>
    %495 = vector.extract_strided_slice %494 {offsets = [0, 0], sizes = [2, 32], strides = [1, 1]} : vector<2x128xf32> to vector<2x32xf32>
    %496 = vector.extract_strided_slice %494 {offsets = [0, 32], sizes = [2, 32], strides = [1, 1]} : vector<2x128xf32> to vector<2x32xf32>
    %497 = vector.extract_strided_slice %494 {offsets = [0, 64], sizes = [2, 32], strides = [1, 1]} : vector<2x128xf32> to vector<2x32xf32>
    %498 = vector.extract_strided_slice %494 {offsets = [0, 96], sizes = [2, 32], strides = [1, 1]} : vector<2x128xf32> to vector<2x32xf32>
    %499 = arith.mulf %496, %477 : vector<2x32xf32>
    %500 = arith.mulf %495, %497 : vector<2x32xf32>
    %501 = arith.addf %499, %500 : vector<2x32xf32>
    %502 = math.tanh %501 : vector<2x32xf32>
    %503 = arith.mulf %498, %502 : vector<2x32xf32>
    %504 = vector.extract_strided_slice %150 {offsets = [14, 0, 0], sizes = [1, 2, 128], strides = [1, 1, 1]} : vector<32x2x128xf32> to vector<1x2x128xf32>
    %505 = vector.shape_cast %504 : vector<1x2x128xf32> to vector<2x128xf32>
    %506 = arith.truncf %503 : vector<2x32xf32> to vector<2x32xbf16>
    %cst_114 = arith.constant dense<0.000000e+00> : vector<2x128xf32>
    %507 = tpu.matmul %506, %137, %cst_114 {dimension_numbers = #tpu.dot_dimension_numbers<[1], [0], [0], [1], [0, 0, 1, 1], [], []>} : vector<2x32xbf16>, vector<32x128xbf16>, vector<2x128xf32> -> vector<2x128xf32>
    %508 = arith.addf %505, %507 : vector<2x128xf32>
    %509 = vector.broadcast %159 : vector<1x128xf32> to vector<2x128xf32>
    %510 = arith.mulf %508, %509 : vector<2x128xf32>
    %511 = math.tanh %510 : vector<2x128xf32>
    %cst_115 = arith.constant 1.000000e+00 : f32
    %512 = vector.broadcast %cst_115 : f32 to vector<2x128xf32>
    %513 = arith.addf %511, %512 : vector<2x128xf32>
    %cst_116 = arith.constant 5.000000e-01 : f32
    %514 = vector.broadcast %cst_116 : f32 to vector<2x128xf32>
    %515 = arith.mulf %514, %513 : vector<2x128xf32>
    %516 = vector.shape_cast %156 : vector<1x128xi1> to vector<1x128xi1>
    %517 = vector.broadcast %516 : vector<1x128xi1> to vector<2x128xi1>
    %518 = arith.select %517, %511, %515 : vector<2x128xi1>, vector<2x128xf32>
    %519 = vector.extract_strided_slice %518 {offsets = [0, 0], sizes = [2, 32], strides = [1, 1]} : vector<2x128xf32> to vector<2x32xf32>
    %520 = vector.extract_strided_slice %518 {offsets = [0, 32], sizes = [2, 32], strides = [1, 1]} : vector<2x128xf32> to vector<2x32xf32>
    %521 = vector.extract_strided_slice %518 {offsets = [0, 64], sizes = [2, 32], strides = [1, 1]} : vector<2x128xf32> to vector<2x32xf32>
    %522 = vector.extract_strided_slice %518 {offsets = [0, 96], sizes = [2, 32], strides = [1, 1]} : vector<2x128xf32> to vector<2x32xf32>
    %523 = arith.mulf %520, %501 : vector<2x32xf32>
    %524 = arith.mulf %519, %521 : vector<2x32xf32>
    %525 = arith.addf %523, %524 : vector<2x32xf32>
    %526 = math.tanh %525 : vector<2x32xf32>
    %527 = arith.mulf %522, %526 : vector<2x32xf32>
    %528 = vector.extract_strided_slice %150 {offsets = [15, 0, 0], sizes = [1, 2, 128], strides = [1, 1, 1]} : vector<32x2x128xf32> to vector<1x2x128xf32>
    %529 = vector.shape_cast %528 : vector<1x2x128xf32> to vector<2x128xf32>
    %530 = arith.truncf %527 : vector<2x32xf32> to vector<2x32xbf16>
    %cst_117 = arith.constant dense<0.000000e+00> : vector<2x128xf32>
    %531 = tpu.matmul %530, %137, %cst_117 {dimension_numbers = #tpu.dot_dimension_numbers<[1], [0], [0], [1], [0, 0, 1, 1], [], []>} : vector<2x32xbf16>, vector<32x128xbf16>, vector<2x128xf32> -> vector<2x128xf32>
    %532 = arith.addf %529, %531 : vector<2x128xf32>
    %533 = vector.broadcast %159 : vector<1x128xf32> to vector<2x128xf32>
    %534 = arith.mulf %532, %533 : vector<2x128xf32>
    %535 = math.tanh %534 : vector<2x128xf32>
    %cst_118 = arith.constant 1.000000e+00 : f32
    %536 = vector.broadcast %cst_118 : f32 to vector<2x128xf32>
    %537 = arith.addf %535, %536 : vector<2x128xf32>
    %cst_119 = arith.constant 5.000000e-01 : f32
    %538 = vector.broadcast %cst_119 : f32 to vector<2x128xf32>
    %539 = arith.mulf %538, %537 : vector<2x128xf32>
    %540 = vector.shape_cast %156 : vector<1x128xi1> to vector<1x128xi1>
    %541 = vector.broadcast %540 : vector<1x128xi1> to vector<2x128xi1>
    %542 = arith.select %541, %535, %539 : vector<2x128xi1>, vector<2x128xf32>
    %543 = vector.extract_strided_slice %542 {offsets = [0, 0], sizes = [2, 32], strides = [1, 1]} : vector<2x128xf32> to vector<2x32xf32>
    %544 = vector.extract_strided_slice %542 {offsets = [0, 32], sizes = [2, 32], strides = [1, 1]} : vector<2x128xf32> to vector<2x32xf32>
    %545 = vector.extract_strided_slice %542 {offsets = [0, 64], sizes = [2, 32], strides = [1, 1]} : vector<2x128xf32> to vector<2x32xf32>
    %546 = vector.extract_strided_slice %542 {offsets = [0, 96], sizes = [2, 32], strides = [1, 1]} : vector<2x128xf32> to vector<2x32xf32>
    %547 = arith.mulf %544, %525 : vector<2x32xf32>
    %548 = arith.mulf %543, %545 : vector<2x32xf32>
    %549 = arith.addf %547, %548 : vector<2x32xf32>
    %550 = math.tanh %549 : vector<2x32xf32>
    %551 = arith.mulf %546, %550 : vector<2x32xf32>
    %552 = tpu.concatenate %479, %503, %527, %551 in 1 : vector<2x32xf32>, vector<2x32xf32>, vector<2x32xf32>, vector<2x32xf32> -> vector<2x128xf32>
    %c0_120 = arith.constant 0 : index
    %c384 = arith.constant 384 : index
    %553 = vector.load %arg17[%c0_120, %c384] : memref<2x1024xf32, #tpu.memory_space<vmem>>, vector<2x128xf32>
    tpu.vector_store %arg17[%c0_120, %c384], %552 {strides = array<i32>} : memref<2x1024xf32, #tpu.memory_space<vmem>>, vector<2x128xf32>,
    %554 = vector.extract_strided_slice %150 {offsets = [16, 0, 0], sizes = [1, 2, 128], strides = [1, 1, 1]} : vector<32x2x128xf32> to vector<1x2x128xf32>
    %555 = vector.shape_cast %554 : vector<1x2x128xf32> to vector<2x128xf32>
    %556 = arith.truncf %551 : vector<2x32xf32> to vector<2x32xbf16>
    %cst_121 = arith.constant dense<0.000000e+00> : vector<2x128xf32>
    %557 = tpu.matmul %556, %137, %cst_121 {dimension_numbers = #tpu.dot_dimension_numbers<[1], [0], [0], [1], [0, 0, 1, 1], [], []>} : vector<2x32xbf16>, vector<32x128xbf16>, vector<2x128xf32> -> vector<2x128xf32>
    %558 = arith.addf %555, %557 : vector<2x128xf32>
    %559 = vector.broadcast %159 : vector<1x128xf32> to vector<2x128xf32>
    %560 = arith.mulf %558, %559 : vector<2x128xf32>
    %561 = math.tanh %560 : vector<2x128xf32>
    %cst_122 = arith.constant 1.000000e+00 : f32
    %562 = vector.broadcast %cst_122 : f32 to vector<2x128xf32>
    %563 = arith.addf %561, %562 : vector<2x128xf32>
    %cst_123 = arith.constant 5.000000e-01 : f32
    %564 = vector.broadcast %cst_123 : f32 to vector<2x128xf32>
    %565 = arith.mulf %564, %563 : vector<2x128xf32>
    %566 = vector.shape_cast %156 : vector<1x128xi1> to vector<1x128xi1>
    %567 = vector.broadcast %566 : vector<1x128xi1> to vector<2x128xi1>
    %568 = arith.select %567, %561, %565 : vector<2x128xi1>, vector<2x128xf32>
    %569 = vector.extract_strided_slice %568 {offsets = [0, 0], sizes = [2, 32], strides = [1, 1]} : vector<2x128xf32> to vector<2x32xf32>
    %570 = vector.extract_strided_slice %568 {offsets = [0, 32], sizes = [2, 32], strides = [1, 1]} : vector<2x128xf32> to vector<2x32xf32>
    %571 = vector.extract_strided_slice %568 {offsets = [0, 64], sizes = [2, 32], strides = [1, 1]} : vector<2x128xf32> to vector<2x32xf32>
    %572 = vector.extract_strided_slice %568 {offsets = [0, 96], sizes = [2, 32], strides = [1, 1]} : vector<2x128xf32> to vector<2x32xf32>
    %573 = arith.mulf %570, %549 : vector<2x32xf32>
    %574 = arith.mulf %569, %571 : vector<2x32xf32>
    %575 = arith.addf %573, %574 : vector<2x32xf32>
    %576 = math.tanh %575 : vector<2x32xf32>
    %577 = arith.mulf %572, %576 : vector<2x32xf32>
    %578 = vector.extract_strided_slice %150 {offsets = [17, 0, 0], sizes = [1, 2, 128], strides = [1, 1, 1]} : vector<32x2x128xf32> to vector<1x2x128xf32>
    %579 = vector.shape_cast %578 : vector<1x2x128xf32> to vector<2x128xf32>
    %580 = arith.truncf %577 : vector<2x32xf32> to vector<2x32xbf16>
    %cst_124 = arith.constant dense<0.000000e+00> : vector<2x128xf32>
    %581 = tpu.matmul %580, %137, %cst_124 {dimension_numbers = #tpu.dot_dimension_numbers<[1], [0], [0], [1], [0, 0, 1, 1], [], []>} : vector<2x32xbf16>, vector<32x128xbf16>, vector<2x128xf32> -> vector<2x128xf32>
    %582 = arith.addf %579, %581 : vector<2x128xf32>
    %583 = vector.broadcast %159 : vector<1x128xf32> to vector<2x128xf32>
    %584 = arith.mulf %582, %583 : vector<2x128xf32>
    %585 = math.tanh %584 : vector<2x128xf32>
    %cst_125 = arith.constant 1.000000e+00 : f32
    %586 = vector.broadcast %cst_125 : f32 to vector<2x128xf32>
    %587 = arith.addf %585, %586 : vector<2x128xf32>
    %cst_126 = arith.constant 5.000000e-01 : f32
    %588 = vector.broadcast %cst_126 : f32 to vector<2x128xf32>
    %589 = arith.mulf %588, %587 : vector<2x128xf32>
    %590 = vector.shape_cast %156 : vector<1x128xi1> to vector<1x128xi1>
    %591 = vector.broadcast %590 : vector<1x128xi1> to vector<2x128xi1>
    %592 = arith.select %591, %585, %589 : vector<2x128xi1>, vector<2x128xf32>
    %593 = vector.extract_strided_slice %592 {offsets = [0, 0], sizes = [2, 32], strides = [1, 1]} : vector<2x128xf32> to vector<2x32xf32>
    %594 = vector.extract_strided_slice %592 {offsets = [0, 32], sizes = [2, 32], strides = [1, 1]} : vector<2x128xf32> to vector<2x32xf32>
    %595 = vector.extract_strided_slice %592 {offsets = [0, 64], sizes = [2, 32], strides = [1, 1]} : vector<2x128xf32> to vector<2x32xf32>
    %596 = vector.extract_strided_slice %592 {offsets = [0, 96], sizes = [2, 32], strides = [1, 1]} : vector<2x128xf32> to vector<2x32xf32>
    %597 = arith.mulf %594, %575 : vector<2x32xf32>
    %598 = arith.mulf %593, %595 : vector<2x32xf32>
    %599 = arith.addf %597, %598 : vector<2x32xf32>
    %600 = math.tanh %599 : vector<2x32xf32>
    %601 = arith.mulf %596, %600 : vector<2x32xf32>
    %602 = vector.extract_strided_slice %150 {offsets = [18, 0, 0], sizes = [1, 2, 128], strides = [1, 1, 1]} : vector<32x2x128xf32> to vector<1x2x128xf32>
    %603 = vector.shape_cast %602 : vector<1x2x128xf32> to vector<2x128xf32>
    %604 = arith.truncf %601 : vector<2x32xf32> to vector<2x32xbf16>
    %cst_127 = arith.constant dense<0.000000e+00> : vector<2x128xf32>
    %605 = tpu.matmul %604, %137, %cst_127 {dimension_numbers = #tpu.dot_dimension_numbers<[1], [0], [0], [1], [0, 0, 1, 1], [], []>} : vector<2x32xbf16>, vector<32x128xbf16>, vector<2x128xf32> -> vector<2x128xf32>
    %606 = arith.addf %603, %605 : vector<2x128xf32>
    %607 = vector.broadcast %159 : vector<1x128xf32> to vector<2x128xf32>
    %608 = arith.mulf %606, %607 : vector<2x128xf32>
    %609 = math.tanh %608 : vector<2x128xf32>
    %cst_128 = arith.constant 1.000000e+00 : f32
    %610 = vector.broadcast %cst_128 : f32 to vector<2x128xf32>
    %611 = arith.addf %609, %610 : vector<2x128xf32>
    %cst_129 = arith.constant 5.000000e-01 : f32
    %612 = vector.broadcast %cst_129 : f32 to vector<2x128xf32>
    %613 = arith.mulf %612, %611 : vector<2x128xf32>
    %614 = vector.shape_cast %156 : vector<1x128xi1> to vector<1x128xi1>
    %615 = vector.broadcast %614 : vector<1x128xi1> to vector<2x128xi1>
    %616 = arith.select %615, %609, %613 : vector<2x128xi1>, vector<2x128xf32>
    %617 = vector.extract_strided_slice %616 {offsets = [0, 0], sizes = [2, 32], strides = [1, 1]} : vector<2x128xf32> to vector<2x32xf32>
    %618 = vector.extract_strided_slice %616 {offsets = [0, 32], sizes = [2, 32], strides = [1, 1]} : vector<2x128xf32> to vector<2x32xf32>
    %619 = vector.extract_strided_slice %616 {offsets = [0, 64], sizes = [2, 32], strides = [1, 1]} : vector<2x128xf32> to vector<2x32xf32>
    %620 = vector.extract_strided_slice %616 {offsets = [0, 96], sizes = [2, 32], strides = [1, 1]} : vector<2x128xf32> to vector<2x32xf32>
    %621 = arith.mulf %618, %599 : vector<2x32xf32>
    %622 = arith.mulf %617, %619 : vector<2x32xf32>
    %623 = arith.addf %621, %622 : vector<2x32xf32>
    %624 = math.tanh %623 : vector<2x32xf32>
    %625 = arith.mulf %620, %624 : vector<2x32xf32>
    %626 = vector.extract_strided_slice %150 {offsets = [19, 0, 0], sizes = [1, 2, 128], strides = [1, 1, 1]} : vector<32x2x128xf32> to vector<1x2x128xf32>
    %627 = vector.shape_cast %626 : vector<1x2x128xf32> to vector<2x128xf32>
    %628 = arith.truncf %625 : vector<2x32xf32> to vector<2x32xbf16>
    %cst_130 = arith.constant dense<0.000000e+00> : vector<2x128xf32>
    %629 = tpu.matmul %628, %137, %cst_130 {dimension_numbers = #tpu.dot_dimension_numbers<[1], [0], [0], [1], [0, 0, 1, 1], [], []>} : vector<2x32xbf16>, vector<32x128xbf16>, vector<2x128xf32> -> vector<2x128xf32>
    %630 = arith.addf %627, %629 : vector<2x128xf32>
    %631 = vector.broadcast %159 : vector<1x128xf32> to vector<2x128xf32>
    %632 = arith.mulf %630, %631 : vector<2x128xf32>
    %633 = math.tanh %632 : vector<2x128xf32>
    %cst_131 = arith.constant 1.000000e+00 : f32
    %634 = vector.broadcast %cst_131 : f32 to vector<2x128xf32>
    %635 = arith.addf %633, %634 : vector<2x128xf32>
    %cst_132 = arith.constant 5.000000e-01 : f32
    %636 = vector.broadcast %cst_132 : f32 to vector<2x128xf32>
    %637 = arith.mulf %636, %635 : vector<2x128xf32>
    %638 = vector.shape_cast %156 : vector<1x128xi1> to vector<1x128xi1>
    %639 = vector.broadcast %638 : vector<1x128xi1> to vector<2x128xi1>
    %640 = arith.select %639, %633, %637 : vector<2x128xi1>, vector<2x128xf32>
    %641 = vector.extract_strided_slice %640 {offsets = [0, 0], sizes = [2, 32], strides = [1, 1]} : vector<2x128xf32> to vector<2x32xf32>
    %642 = vector.extract_strided_slice %640 {offsets = [0, 32], sizes = [2, 32], strides = [1, 1]} : vector<2x128xf32> to vector<2x32xf32>
    %643 = vector.extract_strided_slice %640 {offsets = [0, 64], sizes = [2, 32], strides = [1, 1]} : vector<2x128xf32> to vector<2x32xf32>
    %644 = vector.extract_strided_slice %640 {offsets = [0, 96], sizes = [2, 32], strides = [1, 1]} : vector<2x128xf32> to vector<2x32xf32>
    %645 = arith.mulf %642, %623 : vector<2x32xf32>
    %646 = arith.mulf %641, %643 : vector<2x32xf32>
    %647 = arith.addf %645, %646 : vector<2x32xf32>
    %648 = math.tanh %647 : vector<2x32xf32>
    %649 = arith.mulf %644, %648 : vector<2x32xf32>
    %650 = tpu.concatenate %577, %601, %625, %649 in 1 : vector<2x32xf32>, vector<2x32xf32>, vector<2x32xf32>, vector<2x32xf32> -> vector<2x128xf32>
    %c0_133 = arith.constant 0 : index
    %c512 = arith.constant 512 : index
    %651 = vector.load %arg17[%c0_133, %c512] : memref<2x1024xf32, #tpu.memory_space<vmem>>, vector<2x128xf32>
    tpu.vector_store %arg17[%c0_133, %c512], %650 {strides = array<i32>} : memref<2x1024xf32, #tpu.memory_space<vmem>>, vector<2x128xf32>,
    %652 = vector.extract_strided_slice %150 {offsets = [20, 0, 0], sizes = [1, 2, 128], strides = [1, 1, 1]} : vector<32x2x128xf32> to vector<1x2x128xf32>
    %653 = vector.shape_cast %652 : vector<1x2x128xf32> to vector<2x128xf32>
    %654 = arith.truncf %649 : vector<2x32xf32> to vector<2x32xbf16>
    %cst_134 = arith.constant dense<0.000000e+00> : vector<2x128xf32>
    %655 = tpu.matmul %654, %137, %cst_134 {dimension_numbers = #tpu.dot_dimension_numbers<[1], [0], [0], [1], [0, 0, 1, 1], [], []>} : vector<2x32xbf16>, vector<32x128xbf16>, vector<2x128xf32> -> vector<2x128xf32>
    %656 = arith.addf %653, %655 : vector<2x128xf32>
    %657 = vector.broadcast %159 : vector<1x128xf32> to vector<2x128xf32>
    %658 = arith.mulf %656, %657 : vector<2x128xf32>
    %659 = math.tanh %658 : vector<2x128xf32>
    %cst_135 = arith.constant 1.000000e+00 : f32
    %660 = vector.broadcast %cst_135 : f32 to vector<2x128xf32>
    %661 = arith.addf %659, %660 : vector<2x128xf32>
    %cst_136 = arith.constant 5.000000e-01 : f32
    %662 = vector.broadcast %cst_136 : f32 to vector<2x128xf32>
    %663 = arith.mulf %662, %661 : vector<2x128xf32>
    %664 = vector.shape_cast %156 : vector<1x128xi1> to vector<1x128xi1>
    %665 = vector.broadcast %664 : vector<1x128xi1> to vector<2x128xi1>
    %666 = arith.select %665, %659, %663 : vector<2x128xi1>, vector<2x128xf32>
    %667 = vector.extract_strided_slice %666 {offsets = [0, 0], sizes = [2, 32], strides = [1, 1]} : vector<2x128xf32> to vector<2x32xf32>
    %668 = vector.extract_strided_slice %666 {offsets = [0, 32], sizes = [2, 32], strides = [1, 1]} : vector<2x128xf32> to vector<2x32xf32>
    %669 = vector.extract_strided_slice %666 {offsets = [0, 64], sizes = [2, 32], strides = [1, 1]} : vector<2x128xf32> to vector<2x32xf32>
    %670 = vector.extract_strided_slice %666 {offsets = [0, 96], sizes = [2, 32], strides = [1, 1]} : vector<2x128xf32> to vector<2x32xf32>
    %671 = arith.mulf %668, %647 : vector<2x32xf32>
    %672 = arith.mulf %667, %669 : vector<2x32xf32>
    %673 = arith.addf %671, %672 : vector<2x32xf32>
    %674 = math.tanh %673 : vector<2x32xf32>
    %675 = arith.mulf %670, %674 : vector<2x32xf32>
    %676 = vector.extract_strided_slice %150 {offsets = [21, 0, 0], sizes = [1, 2, 128], strides = [1, 1, 1]} : vector<32x2x128xf32> to vector<1x2x128xf32>
    %677 = vector.shape_cast %676 : vector<1x2x128xf32> to vector<2x128xf32>
    %678 = arith.truncf %675 : vector<2x32xf32> to vector<2x32xbf16>
    %cst_137 = arith.constant dense<0.000000e+00> : vector<2x128xf32>
    %679 = tpu.matmul %678, %137, %cst_137 {dimension_numbers = #tpu.dot_dimension_numbers<[1], [0], [0], [1], [0, 0, 1, 1], [], []>} : vector<2x32xbf16>, vector<32x128xbf16>, vector<2x128xf32> -> vector<2x128xf32>
    %680 = arith.addf %677, %679 : vector<2x128xf32>
    %681 = vector.broadcast %159 : vector<1x128xf32> to vector<2x128xf32>
    %682 = arith.mulf %680, %681 : vector<2x128xf32>
    %683 = math.tanh %682 : vector<2x128xf32>
    %cst_138 = arith.constant 1.000000e+00 : f32
    %684 = vector.broadcast %cst_138 : f32 to vector<2x128xf32>
    %685 = arith.addf %683, %684 : vector<2x128xf32>
    %cst_139 = arith.constant 5.000000e-01 : f32
    %686 = vector.broadcast %cst_139 : f32 to vector<2x128xf32>
    %687 = arith.mulf %686, %685 : vector<2x128xf32>
    %688 = vector.shape_cast %156 : vector<1x128xi1> to vector<1x128xi1>
    %689 = vector.broadcast %688 : vector<1x128xi1> to vector<2x128xi1>
    %690 = arith.select %689, %683, %687 : vector<2x128xi1>, vector<2x128xf32>
    %691 = vector.extract_strided_slice %690 {offsets = [0, 0], sizes = [2, 32], strides = [1, 1]} : vector<2x128xf32> to vector<2x32xf32>
    %692 = vector.extract_strided_slice %690 {offsets = [0, 32], sizes = [2, 32], strides = [1, 1]} : vector<2x128xf32> to vector<2x32xf32>
    %693 = vector.extract_strided_slice %690 {offsets = [0, 64], sizes = [2, 32], strides = [1, 1]} : vector<2x128xf32> to vector<2x32xf32>
    %694 = vector.extract_strided_slice %690 {offsets = [0, 96], sizes = [2, 32], strides = [1, 1]} : vector<2x128xf32> to vector<2x32xf32>
    %695 = arith.mulf %692, %673 : vector<2x32xf32>
    %696 = arith.mulf %691, %693 : vector<2x32xf32>
    %697 = arith.addf %695, %696 : vector<2x32xf32>
    %698 = math.tanh %697 : vector<2x32xf32>
    %699 = arith.mulf %694, %698 : vector<2x32xf32>
    %700 = vector.extract_strided_slice %150 {offsets = [22, 0, 0], sizes = [1, 2, 128], strides = [1, 1, 1]} : vector<32x2x128xf32> to vector<1x2x128xf32>
    %701 = vector.shape_cast %700 : vector<1x2x128xf32> to vector<2x128xf32>
    %702 = arith.truncf %699 : vector<2x32xf32> to vector<2x32xbf16>
    %cst_140 = arith.constant dense<0.000000e+00> : vector<2x128xf32>
    %703 = tpu.matmul %702, %137, %cst_140 {dimension_numbers = #tpu.dot_dimension_numbers<[1], [0], [0], [1], [0, 0, 1, 1], [], []>} : vector<2x32xbf16>, vector<32x128xbf16>, vector<2x128xf32> -> vector<2x128xf32>
    %704 = arith.addf %701, %703 : vector<2x128xf32>
    %705 = vector.broadcast %159 : vector<1x128xf32> to vector<2x128xf32>
    %706 = arith.mulf %704, %705 : vector<2x128xf32>
    %707 = math.tanh %706 : vector<2x128xf32>
    %cst_141 = arith.constant 1.000000e+00 : f32
    %708 = vector.broadcast %cst_141 : f32 to vector<2x128xf32>
    %709 = arith.addf %707, %708 : vector<2x128xf32>
    %cst_142 = arith.constant 5.000000e-01 : f32
    %710 = vector.broadcast %cst_142 : f32 to vector<2x128xf32>
    %711 = arith.mulf %710, %709 : vector<2x128xf32>
    %712 = vector.shape_cast %156 : vector<1x128xi1> to vector<1x128xi1>
    %713 = vector.broadcast %712 : vector<1x128xi1> to vector<2x128xi1>
    %714 = arith.select %713, %707, %711 : vector<2x128xi1>, vector<2x128xf32>
    %715 = vector.extract_strided_slice %714 {offsets = [0, 0], sizes = [2, 32], strides = [1, 1]} : vector<2x128xf32> to vector<2x32xf32>
    %716 = vector.extract_strided_slice %714 {offsets = [0, 32], sizes = [2, 32], strides = [1, 1]} : vector<2x128xf32> to vector<2x32xf32>
    %717 = vector.extract_strided_slice %714 {offsets = [0, 64], sizes = [2, 32], strides = [1, 1]} : vector<2x128xf32> to vector<2x32xf32>
    %718 = vector.extract_strided_slice %714 {offsets = [0, 96], sizes = [2, 32], strides = [1, 1]} : vector<2x128xf32> to vector<2x32xf32>
    %719 = arith.mulf %716, %697 : vector<2x32xf32>
    %720 = arith.mulf %715, %717 : vector<2x32xf32>
    %721 = arith.addf %719, %720 : vector<2x32xf32>
    %722 = math.tanh %721 : vector<2x32xf32>
    %723 = arith.mulf %718, %722 : vector<2x32xf32>
    %724 = vector.extract_strided_slice %150 {offsets = [23, 0, 0], sizes = [1, 2, 128], strides = [1, 1, 1]} : vector<32x2x128xf32> to vector<1x2x128xf32>
    %725 = vector.shape_cast %724 : vector<1x2x128xf32> to vector<2x128xf32>
    %726 = arith.truncf %723 : vector<2x32xf32> to vector<2x32xbf16>
    %cst_143 = arith.constant dense<0.000000e+00> : vector<2x128xf32>
    %727 = tpu.matmul %726, %137, %cst_143 {dimension_numbers = #tpu.dot_dimension_numbers<[1], [0], [0], [1], [0, 0, 1, 1], [], []>} : vector<2x32xbf16>, vector<32x128xbf16>, vector<2x128xf32> -> vector<2x128xf32>
    %728 = arith.addf %725, %727 : vector<2x128xf32>
    %729 = vector.broadcast %159 : vector<1x128xf32> to vector<2x128xf32>
    %730 = arith.mulf %728, %729 : vector<2x128xf32>
    %731 = math.tanh %730 : vector<2x128xf32>
    %cst_144 = arith.constant 1.000000e+00 : f32
    %732 = vector.broadcast %cst_144 : f32 to vector<2x128xf32>
    %733 = arith.addf %731, %732 : vector<2x128xf32>
    %cst_145 = arith.constant 5.000000e-01 : f32
    %734 = vector.broadcast %cst_145 : f32 to vector<2x128xf32>
    %735 = arith.mulf %734, %733 : vector<2x128xf32>
    %736 = vector.shape_cast %156 : vector<1x128xi1> to vector<1x128xi1>
    %737 = vector.broadcast %736 : vector<1x128xi1> to vector<2x128xi1>
    %738 = arith.select %737, %731, %735 : vector<2x128xi1>, vector<2x128xf32>
    %739 = vector.extract_strided_slice %738 {offsets = [0, 0], sizes = [2, 32], strides = [1, 1]} : vector<2x128xf32> to vector<2x32xf32>
    %740 = vector.extract_strided_slice %738 {offsets = [0, 32], sizes = [2, 32], strides = [1, 1]} : vector<2x128xf32> to vector<2x32xf32>
    %741 = vector.extract_strided_slice %738 {offsets = [0, 64], sizes = [2, 32], strides = [1, 1]} : vector<2x128xf32> to vector<2x32xf32>
    %742 = vector.extract_strided_slice %738 {offsets = [0, 96], sizes = [2, 32], strides = [1, 1]} : vector<2x128xf32> to vector<2x32xf32>
    %743 = arith.mulf %740, %721 : vector<2x32xf32>
    %744 = arith.mulf %739, %741 : vector<2x32xf32>
    %745 = arith.addf %743, %744 : vector<2x32xf32>
    %746 = math.tanh %745 : vector<2x32xf32>
    %747 = arith.mulf %742, %746 : vector<2x32xf32>
    %748 = tpu.concatenate %675, %699, %723, %747 in 1 : vector<2x32xf32>, vector<2x32xf32>, vector<2x32xf32>, vector<2x32xf32> -> vector<2x128xf32>
    %c0_146 = arith.constant 0 : index
    %c640 = arith.constant 640 : index
    %749 = vector.load %arg17[%c0_146, %c640] : memref<2x1024xf32, #tpu.memory_space<vmem>>, vector<2x128xf32>
    tpu.vector_store %arg17[%c0_146, %c640], %748 {strides = array<i32>} : memref<2x1024xf32, #tpu.memory_space<vmem>>, vector<2x128xf32>,
    %750 = vector.extract_strided_slice %150 {offsets = [24, 0, 0], sizes = [1, 2, 128], strides = [1, 1, 1]} : vector<32x2x128xf32> to vector<1x2x128xf32>
    %751 = vector.shape_cast %750 : vector<1x2x128xf32> to vector<2x128xf32>
    %752 = arith.truncf %747 : vector<2x32xf32> to vector<2x32xbf16>
    %cst_147 = arith.constant dense<0.000000e+00> : vector<2x128xf32>
    %753 = tpu.matmul %752, %137, %cst_147 {dimension_numbers = #tpu.dot_dimension_numbers<[1], [0], [0], [1], [0, 0, 1, 1], [], []>} : vector<2x32xbf16>, vector<32x128xbf16>, vector<2x128xf32> -> vector<2x128xf32>
    %754 = arith.addf %751, %753 : vector<2x128xf32>
    %755 = vector.broadcast %159 : vector<1x128xf32> to vector<2x128xf32>
    %756 = arith.mulf %754, %755 : vector<2x128xf32>
    %757 = math.tanh %756 : vector<2x128xf32>
    %cst_148 = arith.constant 1.000000e+00 : f32
    %758 = vector.broadcast %cst_148 : f32 to vector<2x128xf32>
    %759 = arith.addf %757, %758 : vector<2x128xf32>
    %cst_149 = arith.constant 5.000000e-01 : f32
    %760 = vector.broadcast %cst_149 : f32 to vector<2x128xf32>
    %761 = arith.mulf %760, %759 : vector<2x128xf32>
    %762 = vector.shape_cast %156 : vector<1x128xi1> to vector<1x128xi1>
    %763 = vector.broadcast %762 : vector<1x128xi1> to vector<2x128xi1>
    %764 = arith.select %763, %757, %761 : vector<2x128xi1>, vector<2x128xf32>
    %765 = vector.extract_strided_slice %764 {offsets = [0, 0], sizes = [2, 32], strides = [1, 1]} : vector<2x128xf32> to vector<2x32xf32>
    %766 = vector.extract_strided_slice %764 {offsets = [0, 32], sizes = [2, 32], strides = [1, 1]} : vector<2x128xf32> to vector<2x32xf32>
    %767 = vector.extract_strided_slice %764 {offsets = [0, 64], sizes = [2, 32], strides = [1, 1]} : vector<2x128xf32> to vector<2x32xf32>
    %768 = vector.extract_strided_slice %764 {offsets = [0, 96], sizes = [2, 32], strides = [1, 1]} : vector<2x128xf32> to vector<2x32xf32>
    %769 = arith.mulf %766, %745 : vector<2x32xf32>
    %770 = arith.mulf %765, %767 : vector<2x32xf32>
    %771 = arith.addf %769, %770 : vector<2x32xf32>
    %772 = math.tanh %771 : vector<2x32xf32>
    %773 = arith.mulf %768, %772 : vector<2x32xf32>
    %774 = vector.extract_strided_slice %150 {offsets = [25, 0, 0], sizes = [1, 2, 128], strides = [1, 1, 1]} : vector<32x2x128xf32> to vector<1x2x128xf32>
    %775 = vector.shape_cast %774 : vector<1x2x128xf32> to vector<2x128xf32>
    %776 = arith.truncf %773 : vector<2x32xf32> to vector<2x32xbf16>
    %cst_150 = arith.constant dense<0.000000e+00> : vector<2x128xf32>
    %777 = tpu.matmul %776, %137, %cst_150 {dimension_numbers = #tpu.dot_dimension_numbers<[1], [0], [0], [1], [0, 0, 1, 1], [], []>} : vector<2x32xbf16>, vector<32x128xbf16>, vector<2x128xf32> -> vector<2x128xf32>
    %778 = arith.addf %775, %777 : vector<2x128xf32>
    %779 = vector.broadcast %159 : vector<1x128xf32> to vector<2x128xf32>
    %780 = arith.mulf %778, %779 : vector<2x128xf32>
    %781 = math.tanh %780 : vector<2x128xf32>
    %cst_151 = arith.constant 1.000000e+00 : f32
    %782 = vector.broadcast %cst_151 : f32 to vector<2x128xf32>
    %783 = arith.addf %781, %782 : vector<2x128xf32>
    %cst_152 = arith.constant 5.000000e-01 : f32
    %784 = vector.broadcast %cst_152 : f32 to vector<2x128xf32>
    %785 = arith.mulf %784, %783 : vector<2x128xf32>
    %786 = vector.shape_cast %156 : vector<1x128xi1> to vector<1x128xi1>
    %787 = vector.broadcast %786 : vector<1x128xi1> to vector<2x128xi1>
    %788 = arith.select %787, %781, %785 : vector<2x128xi1>, vector<2x128xf32>
    %789 = vector.extract_strided_slice %788 {offsets = [0, 0], sizes = [2, 32], strides = [1, 1]} : vector<2x128xf32> to vector<2x32xf32>
    %790 = vector.extract_strided_slice %788 {offsets = [0, 32], sizes = [2, 32], strides = [1, 1]} : vector<2x128xf32> to vector<2x32xf32>
    %791 = vector.extract_strided_slice %788 {offsets = [0, 64], sizes = [2, 32], strides = [1, 1]} : vector<2x128xf32> to vector<2x32xf32>
    %792 = vector.extract_strided_slice %788 {offsets = [0, 96], sizes = [2, 32], strides = [1, 1]} : vector<2x128xf32> to vector<2x32xf32>
    %793 = arith.mulf %790, %771 : vector<2x32xf32>
    %794 = arith.mulf %789, %791 : vector<2x32xf32>
    %795 = arith.addf %793, %794 : vector<2x32xf32>
    %796 = math.tanh %795 : vector<2x32xf32>
    %797 = arith.mulf %792, %796 : vector<2x32xf32>
    %798 = vector.extract_strided_slice %150 {offsets = [26, 0, 0], sizes = [1, 2, 128], strides = [1, 1, 1]} : vector<32x2x128xf32> to vector<1x2x128xf32>
    %799 = vector.shape_cast %798 : vector<1x2x128xf32> to vector<2x128xf32>
    %800 = arith.truncf %797 : vector<2x32xf32> to vector<2x32xbf16>
    %cst_153 = arith.constant dense<0.000000e+00> : vector<2x128xf32>
    %801 = tpu.matmul %800, %137, %cst_153 {dimension_numbers = #tpu.dot_dimension_numbers<[1], [0], [0], [1], [0, 0, 1, 1], [], []>} : vector<2x32xbf16>, vector<32x128xbf16>, vector<2x128xf32> -> vector<2x128xf32>
    %802 = arith.addf %799, %801 : vector<2x128xf32>
    %803 = vector.broadcast %159 : vector<1x128xf32> to vector<2x128xf32>
    %804 = arith.mulf %802, %803 : vector<2x128xf32>
    %805 = math.tanh %804 : vector<2x128xf32>
    %cst_154 = arith.constant 1.000000e+00 : f32
    %806 = vector.broadcast %cst_154 : f32 to vector<2x128xf32>
    %807 = arith.addf %805, %806 : vector<2x128xf32>
    %cst_155 = arith.constant 5.000000e-01 : f32
    %808 = vector.broadcast %cst_155 : f32 to vector<2x128xf32>
    %809 = arith.mulf %808, %807 : vector<2x128xf32>
    %810 = vector.shape_cast %156 : vector<1x128xi1> to vector<1x128xi1>
    %811 = vector.broadcast %810 : vector<1x128xi1> to vector<2x128xi1>
    %812 = arith.select %811, %805, %809 : vector<2x128xi1>, vector<2x128xf32>
    %813 = vector.extract_strided_slice %812 {offsets = [0, 0], sizes = [2, 32], strides = [1, 1]} : vector<2x128xf32> to vector<2x32xf32>
    %814 = vector.extract_strided_slice %812 {offsets = [0, 32], sizes = [2, 32], strides = [1, 1]} : vector<2x128xf32> to vector<2x32xf32>
    %815 = vector.extract_strided_slice %812 {offsets = [0, 64], sizes = [2, 32], strides = [1, 1]} : vector<2x128xf32> to vector<2x32xf32>
    %816 = vector.extract_strided_slice %812 {offsets = [0, 96], sizes = [2, 32], strides = [1, 1]} : vector<2x128xf32> to vector<2x32xf32>
    %817 = arith.mulf %814, %795 : vector<2x32xf32>
    %818 = arith.mulf %813, %815 : vector<2x32xf32>
    %819 = arith.addf %817, %818 : vector<2x32xf32>
    %820 = math.tanh %819 : vector<2x32xf32>
    %821 = arith.mulf %816, %820 : vector<2x32xf32>
    %822 = vector.extract_strided_slice %150 {offsets = [27, 0, 0], sizes = [1, 2, 128], strides = [1, 1, 1]} : vector<32x2x128xf32> to vector<1x2x128xf32>
    %823 = vector.shape_cast %822 : vector<1x2x128xf32> to vector<2x128xf32>
    %824 = arith.truncf %821 : vector<2x32xf32> to vector<2x32xbf16>
    %cst_156 = arith.constant dense<0.000000e+00> : vector<2x128xf32>
    %825 = tpu.matmul %824, %137, %cst_156 {dimension_numbers = #tpu.dot_dimension_numbers<[1], [0], [0], [1], [0, 0, 1, 1], [], []>} : vector<2x32xbf16>, vector<32x128xbf16>, vector<2x128xf32> -> vector<2x128xf32>
    %826 = arith.addf %823, %825 : vector<2x128xf32>
    %827 = vector.broadcast %159 : vector<1x128xf32> to vector<2x128xf32>
    %828 = arith.mulf %826, %827 : vector<2x128xf32>
    %829 = math.tanh %828 : vector<2x128xf32>
    %cst_157 = arith.constant 1.000000e+00 : f32
    %830 = vector.broadcast %cst_157 : f32 to vector<2x128xf32>
    %831 = arith.addf %829, %830 : vector<2x128xf32>
    %cst_158 = arith.constant 5.000000e-01 : f32
    %832 = vector.broadcast %cst_158 : f32 to vector<2x128xf32>
    %833 = arith.mulf %832, %831 : vector<2x128xf32>
    %834 = vector.shape_cast %156 : vector<1x128xi1> to vector<1x128xi1>
    %835 = vector.broadcast %834 : vector<1x128xi1> to vector<2x128xi1>
    %836 = arith.select %835, %829, %833 : vector<2x128xi1>, vector<2x128xf32>
    %837 = vector.extract_strided_slice %836 {offsets = [0, 0], sizes = [2, 32], strides = [1, 1]} : vector<2x128xf32> to vector<2x32xf32>
    %838 = vector.extract_strided_slice %836 {offsets = [0, 32], sizes = [2, 32], strides = [1, 1]} : vector<2x128xf32> to vector<2x32xf32>
    %839 = vector.extract_strided_slice %836 {offsets = [0, 64], sizes = [2, 32], strides = [1, 1]} : vector<2x128xf32> to vector<2x32xf32>
    %840 = vector.extract_strided_slice %836 {offsets = [0, 96], sizes = [2, 32], strides = [1, 1]} : vector<2x128xf32> to vector<2x32xf32>
    %841 = arith.mulf %838, %819 : vector<2x32xf32>
    %842 = arith.mulf %837, %839 : vector<2x32xf32>
    %843 = arith.addf %841, %842 : vector<2x32xf32>
    %844 = math.tanh %843 : vector<2x32xf32>
    %845 = arith.mulf %840, %844 : vector<2x32xf32>
    %846 = tpu.concatenate %773, %797, %821, %845 in 1 : vector<2x32xf32>, vector<2x32xf32>, vector<2x32xf32>, vector<2x32xf32> -> vector<2x128xf32>
    %c0_159 = arith.constant 0 : index
    %c768 = arith.constant 768 : index
    %847 = vector.load %arg17[%c0_159, %c768] : memref<2x1024xf32, #tpu.memory_space<vmem>>, vector<2x128xf32>
    tpu.vector_store %arg17[%c0_159, %c768], %846 {strides = array<i32>} : memref<2x1024xf32, #tpu.memory_space<vmem>>, vector<2x128xf32>,
    %848 = vector.extract_strided_slice %150 {offsets = [28, 0, 0], sizes = [1, 2, 128], strides = [1, 1, 1]} : vector<32x2x128xf32> to vector<1x2x128xf32>
    %849 = vector.shape_cast %848 : vector<1x2x128xf32> to vector<2x128xf32>
    %850 = arith.truncf %845 : vector<2x32xf32> to vector<2x32xbf16>
    %cst_160 = arith.constant dense<0.000000e+00> : vector<2x128xf32>
    %851 = tpu.matmul %850, %137, %cst_160 {dimension_numbers = #tpu.dot_dimension_numbers<[1], [0], [0], [1], [0, 0, 1, 1], [], []>} : vector<2x32xbf16>, vector<32x128xbf16>, vector<2x128xf32> -> vector<2x128xf32>
    %852 = arith.addf %849, %851 : vector<2x128xf32>
    %853 = vector.broadcast %159 : vector<1x128xf32> to vector<2x128xf32>
    %854 = arith.mulf %852, %853 : vector<2x128xf32>
    %855 = math.tanh %854 : vector<2x128xf32>
    %cst_161 = arith.constant 1.000000e+00 : f32
    %856 = vector.broadcast %cst_161 : f32 to vector<2x128xf32>
    %857 = arith.addf %855, %856 : vector<2x128xf32>
    %cst_162 = arith.constant 5.000000e-01 : f32
    %858 = vector.broadcast %cst_162 : f32 to vector<2x128xf32>
    %859 = arith.mulf %858, %857 : vector<2x128xf32>
    %860 = vector.shape_cast %156 : vector<1x128xi1> to vector<1x128xi1>
    %861 = vector.broadcast %860 : vector<1x128xi1> to vector<2x128xi1>
    %862 = arith.select %861, %855, %859 : vector<2x128xi1>, vector<2x128xf32>
    %863 = vector.extract_strided_slice %862 {offsets = [0, 0], sizes = [2, 32], strides = [1, 1]} : vector<2x128xf32> to vector<2x32xf32>
    %864 = vector.extract_strided_slice %862 {offsets = [0, 32], sizes = [2, 32], strides = [1, 1]} : vector<2x128xf32> to vector<2x32xf32>
    %865 = vector.extract_strided_slice %862 {offsets = [0, 64], sizes = [2, 32], strides = [1, 1]} : vector<2x128xf32> to vector<2x32xf32>
    %866 = vector.extract_strided_slice %862 {offsets = [0, 96], sizes = [2, 32], strides = [1, 1]} : vector<2x128xf32> to vector<2x32xf32>
    %867 = arith.mulf %864, %843 : vector<2x32xf32>
    %868 = arith.mulf %863, %865 : vector<2x32xf32>
    %869 = arith.addf %867, %868 : vector<2x32xf32>
    %870 = math.tanh %869 : vector<2x32xf32>
    %871 = arith.mulf %866, %870 : vector<2x32xf32>
    %872 = vector.extract_strided_slice %150 {offsets = [29, 0, 0], sizes = [1, 2, 128], strides = [1, 1, 1]} : vector<32x2x128xf32> to vector<1x2x128xf32>
    %873 = vector.shape_cast %872 : vector<1x2x128xf32> to vector<2x128xf32>
    %874 = arith.truncf %871 : vector<2x32xf32> to vector<2x32xbf16>
    %cst_163 = arith.constant dense<0.000000e+00> : vector<2x128xf32>
    %875 = tpu.matmul %874, %137, %cst_163 {dimension_numbers = #tpu.dot_dimension_numbers<[1], [0], [0], [1], [0, 0, 1, 1], [], []>} : vector<2x32xbf16>, vector<32x128xbf16>, vector<2x128xf32> -> vector<2x128xf32>
    %876 = arith.addf %873, %875 : vector<2x128xf32>
    %877 = vector.broadcast %159 : vector<1x128xf32> to vector<2x128xf32>
    %878 = arith.mulf %876, %877 : vector<2x128xf32>
    %879 = math.tanh %878 : vector<2x128xf32>
    %cst_164 = arith.constant 1.000000e+00 : f32
    %880 = vector.broadcast %cst_164 : f32 to vector<2x128xf32>
    %881 = arith.addf %879, %880 : vector<2x128xf32>
    %cst_165 = arith.constant 5.000000e-01 : f32
    %882 = vector.broadcast %cst_165 : f32 to vector<2x128xf32>
    %883 = arith.mulf %882, %881 : vector<2x128xf32>
    %884 = vector.shape_cast %156 : vector<1x128xi1> to vector<1x128xi1>
    %885 = vector.broadcast %884 : vector<1x128xi1> to vector<2x128xi1>
    %886 = arith.select %885, %879, %883 : vector<2x128xi1>, vector<2x128xf32>
    %887 = vector.extract_strided_slice %886 {offsets = [0, 0], sizes = [2, 32], strides = [1, 1]} : vector<2x128xf32> to vector<2x32xf32>
    %888 = vector.extract_strided_slice %886 {offsets = [0, 32], sizes = [2, 32], strides = [1, 1]} : vector<2x128xf32> to vector<2x32xf32>
    %889 = vector.extract_strided_slice %886 {offsets = [0, 64], sizes = [2, 32], strides = [1, 1]} : vector<2x128xf32> to vector<2x32xf32>
    %890 = vector.extract_strided_slice %886 {offsets = [0, 96], sizes = [2, 32], strides = [1, 1]} : vector<2x128xf32> to vector<2x32xf32>
    %891 = arith.mulf %888, %869 : vector<2x32xf32>
    %892 = arith.mulf %887, %889 : vector<2x32xf32>
    %893 = arith.addf %891, %892 : vector<2x32xf32>
    %894 = math.tanh %893 : vector<2x32xf32>
    %895 = arith.mulf %890, %894 : vector<2x32xf32>
    %896 = vector.extract_strided_slice %150 {offsets = [30, 0, 0], sizes = [1, 2, 128], strides = [1, 1, 1]} : vector<32x2x128xf32> to vector<1x2x128xf32>
    %897 = vector.shape_cast %896 : vector<1x2x128xf32> to vector<2x128xf32>
    %898 = arith.truncf %895 : vector<2x32xf32> to vector<2x32xbf16>
    %cst_166 = arith.constant dense<0.000000e+00> : vector<2x128xf32>
    %899 = tpu.matmul %898, %137, %cst_166 {dimension_numbers = #tpu.dot_dimension_numbers<[1], [0], [0], [1], [0, 0, 1, 1], [], []>} : vector<2x32xbf16>, vector<32x128xbf16>, vector<2x128xf32> -> vector<2x128xf32>
    %900 = arith.addf %897, %899 : vector<2x128xf32>
    %901 = vector.broadcast %159 : vector<1x128xf32> to vector<2x128xf32>
    %902 = arith.mulf %900, %901 : vector<2x128xf32>
    %903 = math.tanh %902 : vector<2x128xf32>
    %cst_167 = arith.constant 1.000000e+00 : f32
    %904 = vector.broadcast %cst_167 : f32 to vector<2x128xf32>
    %905 = arith.addf %903, %904 : vector<2x128xf32>
    %cst_168 = arith.constant 5.000000e-01 : f32
    %906 = vector.broadcast %cst_168 : f32 to vector<2x128xf32>
    %907 = arith.mulf %906, %905 : vector<2x128xf32>
    %908 = vector.shape_cast %156 : vector<1x128xi1> to vector<1x128xi1>
    %909 = vector.broadcast %908 : vector<1x128xi1> to vector<2x128xi1>
    %910 = arith.select %909, %903, %907 : vector<2x128xi1>, vector<2x128xf32>
    %911 = vector.extract_strided_slice %910 {offsets = [0, 0], sizes = [2, 32], strides = [1, 1]} : vector<2x128xf32> to vector<2x32xf32>
    %912 = vector.extract_strided_slice %910 {offsets = [0, 32], sizes = [2, 32], strides = [1, 1]} : vector<2x128xf32> to vector<2x32xf32>
    %913 = vector.extract_strided_slice %910 {offsets = [0, 64], sizes = [2, 32], strides = [1, 1]} : vector<2x128xf32> to vector<2x32xf32>
    %914 = vector.extract_strided_slice %910 {offsets = [0, 96], sizes = [2, 32], strides = [1, 1]} : vector<2x128xf32> to vector<2x32xf32>
    %915 = arith.mulf %912, %893 : vector<2x32xf32>
    %916 = arith.mulf %911, %913 : vector<2x32xf32>
    %917 = arith.addf %915, %916 : vector<2x32xf32>
    %918 = math.tanh %917 : vector<2x32xf32>
    %919 = arith.mulf %914, %918 : vector<2x32xf32>
    %920 = vector.extract_strided_slice %150 {offsets = [31, 0, 0], sizes = [1, 2, 128], strides = [1, 1, 1]} : vector<32x2x128xf32> to vector<1x2x128xf32>
    %921 = vector.shape_cast %920 : vector<1x2x128xf32> to vector<2x128xf32>
    %922 = arith.truncf %919 : vector<2x32xf32> to vector<2x32xbf16>
    %cst_169 = arith.constant dense<0.000000e+00> : vector<2x128xf32>
    %923 = tpu.matmul %922, %137, %cst_169 {dimension_numbers = #tpu.dot_dimension_numbers<[1], [0], [0], [1], [0, 0, 1, 1], [], []>} : vector<2x32xbf16>, vector<32x128xbf16>, vector<2x128xf32> -> vector<2x128xf32>
    %924 = arith.addf %921, %923 : vector<2x128xf32>
    %925 = vector.broadcast %159 : vector<1x128xf32> to vector<2x128xf32>
    %926 = arith.mulf %924, %925 : vector<2x128xf32>
    %927 = math.tanh %926 : vector<2x128xf32>
    %cst_170 = arith.constant 1.000000e+00 : f32
    %928 = vector.broadcast %cst_170 : f32 to vector<2x128xf32>
    %929 = arith.addf %927, %928 : vector<2x128xf32>
    %cst_171 = arith.constant 5.000000e-01 : f32
    %930 = vector.broadcast %cst_171 : f32 to vector<2x128xf32>
    %931 = arith.mulf %930, %929 : vector<2x128xf32>
    %932 = vector.shape_cast %156 : vector<1x128xi1> to vector<1x128xi1>
    %933 = vector.broadcast %932 : vector<1x128xi1> to vector<2x128xi1>
    %934 = arith.select %933, %927, %931 : vector<2x128xi1>, vector<2x128xf32>
    %935 = vector.extract_strided_slice %934 {offsets = [0, 0], sizes = [2, 32], strides = [1, 1]} : vector<2x128xf32> to vector<2x32xf32>
    %936 = vector.extract_strided_slice %934 {offsets = [0, 32], sizes = [2, 32], strides = [1, 1]} : vector<2x128xf32> to vector<2x32xf32>
    %937 = vector.extract_strided_slice %934 {offsets = [0, 64], sizes = [2, 32], strides = [1, 1]} : vector<2x128xf32> to vector<2x32xf32>
    %938 = vector.extract_strided_slice %934 {offsets = [0, 96], sizes = [2, 32], strides = [1, 1]} : vector<2x128xf32> to vector<2x32xf32>
    %939 = arith.mulf %936, %917 : vector<2x32xf32>
    %940 = arith.mulf %935, %937 : vector<2x32xf32>
    %941 = arith.addf %939, %940 : vector<2x32xf32>
    %942 = math.tanh %941 : vector<2x32xf32>
    %943 = arith.mulf %938, %942 : vector<2x32xf32>
    %944 = tpu.concatenate %871, %895, %919, %943 in 1 : vector<2x32xf32>, vector<2x32xf32>, vector<2x32xf32>, vector<2x32xf32> -> vector<2x128xf32>
    %c0_172 = arith.constant 0 : index
    %c896 = arith.constant 896 : index
    %945 = vector.load %arg17[%c0_172, %c896] : memref<2x1024xf32, #tpu.memory_space<vmem>>, vector<2x128xf32>
    tpu.vector_store %arg17[%c0_172, %c896], %944 {strides = array<i32>} : memref<2x1024xf32, #tpu.memory_space<vmem>>, vector<2x128xf32>,
    %c0_173 = arith.constant 0 : index
    %c0_174 = arith.constant 0 : index
    %946 = vector.load %arg17[%c0_173, %c0_174] : memref<2x1024xf32, #tpu.memory_space<vmem>>, vector<2x1024xf32>
    %c0_175 = arith.constant 0 : index
    %c0_176 = arith.constant 0 : index
    %947 = vector.load %arg14[%c0_175, %c0_176] : memref<8x1024xf32, #tpu.memory_space<vmem>>, vector<8x1024xf32>
    %cst_177 = arith.constant dense<0.000000e+00> : vector<2x8xf32>
    %948 = tpu.matmul %946, %947, %cst_177 {dimension_numbers = #tpu.dot_dimension_numbers<[1], [1], [0], [0], [0, 0, 1, 0], [], []>} : vector<2x1024xf32>, vector<8x1024xf32>, vector<2x8xf32> -> vector<2x8xf32>
    %c0_178 = arith.constant 0 : index
    %c0_179 = arith.constant 0 : index
    %949 = vector.load %arg15[%c0_178, %c0_179] : memref<1x8xf32, #tpu.memory_space<vmem>>, vector<1x8xf32>
    %950 = vector.broadcast %949 : vector<1x8xf32> to vector<2x8xf32>
    %951 = arith.addf %948, %950 : vector<2x8xf32>
    %cst_180 = arith.constant 5.000000e-01 : f32
    %952 = vector.broadcast %cst_180 : f32 to vector<2x8xf32>
    %953 = arith.mulf %952, %951 : vector<2x8xf32>
    %954 = math.tanh %953 : vector<2x8xf32>
    %cst_181 = arith.constant 1.000000e+00 : f32
    %955 = vector.broadcast %cst_181 : f32 to vector<2x8xf32>
    %956 = arith.addf %954, %955 : vector<2x8xf32>
    %cst_182 = arith.constant 5.000000e-01 : f32
    %957 = vector.broadcast %cst_182 : f32 to vector<2x8xf32>
    %958 = arith.mulf %957, %956 : vector<2x8xf32>
    %c0_183 = arith.constant 0 : index
    %c0_184 = arith.constant 0 : index
    %959 = vector.load %arg16[%c0_183, %c0_184] : memref<2x8xf32, #tpu.memory_space<vmem>>, vector<2x8xf32>
    tpu.vector_store %arg16[%c0_183, %c0_184], %958 {strides = array<i32>} : memref<2x8xf32, #tpu.memory_space<vmem>>, vector<2x8xf32>,
    return
  }
}

</mosaic_0001>

<bundles_post_ra>
// kernel: tpu_custom_call.1
= control target key start
LH: loop header
LB: loop body
LE: loop exit
PB: predicated region body
PF: predicated region fallthrough
CT: control target
= control target key end

     0   :  { %s7332_s0 = inlined_call_operand.vmem [shape: f32[8,256], index: 0, kind: input, shape index: {}]   ;;  %s7333_s1 = inlined_call_operand.vmem [shape: f32[64,8], index: 1, kind: input, shape index: {}]   ;;  %s7334_s2 = inlined_call_operand.vmem [shape: f32[64,1], index: 2, kind: input, shape index: {}]   ;;  %s7335_s3 = inlined_call_operand.vmem [shape: f32[32,64], index: 3, kind: input, shape index: {}]   ;;  %s7336_s4 = inlined_call_operand.vmem [shape: f32[32,1], index: 4, kind: input, shape index: {}]   ;;  %s7337_s5 = inlined_call_operand.vmem [shape: f32[32,1], index: 5, kind: input, shape index: {}]   ;;  %s7338_s6 = inlined_call_operand.vmem [shape: f32[32,1], index: 6, kind: input, shape index: {}]   ;;  %s7339_s7 = inlined_call_operand.vmem [shape: f32[32,32], index: 7, kind: input, shape index: {}]   ;;  %s7340_s8 = inlined_call_operand.vmem [shape: f32[32,1], index: 8, kind: input, shape index: {}]   ;;  %s7341_s9 = inlined_call_operand.vmem [shape: f32[32,1], index: 9, kind: input, shape index: {}]   ;;  %s7342_s10 = inlined_call_operand.vmem [shape: f32[32,1], index: 10, kind: input, shape index: {}]   ;;  %s7343_s11 = inlined_call_operand.vmem [shape: bf16[128,128], index: 11, kind: input, shape index: {}]   ;;  %s7344_s12 = inlined_call_operand.vmem [shape: bf16[32,128], index: 12, kind: input, shape index: {}]   ;;  %s7345_s13 = inlined_call_operand.vmem [shape: f32[1,128], index: 13, kind: input, shape index: {}]   ;;  %s7346_s14 = inlined_call_operand.vmem [shape: f32[8,1024], index: 14, kind: input, shape index: {}]   ;;  %s7347_s15 = inlined_call_operand.vmem [shape: f32[1,8], index: 15, kind: input, shape index: {}]   ;;  %s7348_s16 = inlined_call_operand.hbm [shape: f32[2,8], index: 16, kind: output, shape index: {}]  }
   0x1   :  { %7352 = sst [smem:[#allocation6_spill]] %s7332_s0 }
   0x2   :  { %s7353_s23 = sld [smem:[#allocation6_spill]]  ;;  %v80_v2 = vld [vmem:[%s7333_s1] sm:$0xff]  ;;  %vm138_vm0 = vcmask 64512   ;;  %v7350_v3 = vmov 0.0   ;;  %v5487_v4 = vmov 0   ;;  %v92_v5 = vld [vmem:[%s7334_s2 + $0x10] sm:$0xff] }
   0x3   :  { %227 = vmatprep.mubr.f32.mxu0 %v7350_v3  ;;  %5235 = vset.pattern.permute.xlu1 %v5487_v4  ;;  %v81_v6 = vld [vmem:[%s7333_s1 + $0x8] sm:$0xff]  ;;  %v90_v7 = vld [vmem:[%s7334_s2] sm:$0xff]  ;;  %v93_v8 = vld [vmem:[%s7334_s2 + $0x18] sm:$0xff] }
   0x4   :  { %5234 = vset.pattern.permute.xlu0 %v5487_v4  ;;  %110 = vperm.xlu1 %5235, %v92_v5   ;;  %v91_v9 = vld [vmem:[%s7334_s2 + $0x8] sm:$0xff]  ;;  %v82_v10 = vld [vmem:[%s7333_s1 + $0x10] sm:$0xff]  ;;  %v94_v12 = vld [vmem:[%s7334_s2 + $0x20] sm:$0xff] }
   0x5   :  { %100 = vperm.xlu0 %5234, %v90_v7   ;;  %525 = vmatprep.mubr.f32.mxu1 %v7350_v3  ;;  %v95_v11 = vld [vmem:[%s7334_s2 + $0x28] sm:$0xff]  ;;  %v83_v13 = vld [vmem:[%s7333_s1 + $0x18] sm:$0xff]  ;;  %v96_v15 = vld [vmem:[%s7334_s2 + $0x30] sm:$0xff] }
   0x6   :  { %v97_v14 = vld [vmem:[%s7334_s2 + $0x38] sm:$0xff]  ;;  %v84_v16 = vld [vmem:[%s7333_s1 + $0x20] sm:$0xff] }
   0x8   :  { %v89_v0 = vld [vmem:[%s7353_s23 + $0x8] sm:$0xff]  ;;  %v88_v1 = vld [vmem:[%s7353_s23] sm:$0xff]  ;;  %115 = vperm.xlu1 %5235, %v93_v8  }
   0x9   :  { %163 = vmatprep.subr.mxu0 %v89_v0  ;;  %105 = vperm.xlu0 %5234, %v91_v9  }
   0xa   :  { %164 = vmatpush1.msra.mxu0 %v88_v1 }
   0xb   :  { %4690 = vmatmul.mubr.msk.f32.vlgmr.msra.gmra.mrb[0].mxu0 %vm138_vm0, %v80_v2 }
   0xc   :  { %233 = vmatprep.mubr.f32.mxu0 %v7350_v3  ;;  %125 = vperm.xlu1 %5235, %v95_v11  }
   0xd   :  { %120 = vperm.xlu0 %5234, %v94_v12  }
   0xf   :  { %4691 = vmatmul.mubr.msk.f32.gmra.mrb[2].mxu0 %vm138_vm0, %v81_v6 }
  0x10   :  { %239 = vmatprep.mubr.f32.mxu0 %v7350_v3  ;;  %135 = vperm.xlu1 %5235, %v97_v14  }
  0x13   :  { %4692 = vmatmul.mubr.msk.f32.gmra.mrb[4].mxu0 %vm138_vm0, %v82_v10 }
  0x14   :  { %245 = vmatprep.mubr.f32.mxu0 %v7350_v3 }
  0x17   :  { %4693 = vmatmul.mubr.msk.f32.gmra.mrb[6].mxu0 %vm138_vm0, %v83_v13 }
  0x18   :  { %251 = vmatprep.mubr.f32.mxu0 %v7350_v3 }
  0x19   :  { %21 = vsyncpa [#allocation4], 0  ;;  %v425_v17 = vld [vmem:[%s7336_s4 + $0x8] sm:$0xff]  ;;  %130 = vperm.xlu0 %5234, %v96_v15   ;;  %v424_v18 = vld [vmem:[%s7336_s4] sm:$0xff]  ;;  %v55_v30 = vlaneseq }
  0x1a   :  { %v85_v19 = vld [vmem:[%s7333_s1 + $0x28] sm:$0xff]  ;;  %435 = vperm.xlu1 %5235, %v425_v17   ;;  %v427_v20 = vld [vmem:[%s7336_s4 + $0x18] sm:$0xff]  ;;  %v426_v21 = vld [vmem:[%s7336_s4 + $0x10] sm:$0xff] }
  0x1b   :  { %4694 = vmatmul.mubr.msk.f32.gmra.mrb[8].mxu0 %vm138_vm0, %v84_v16  ;;  %v86_v22 = vld [vmem:[%s7333_s1 + $0x30] sm:$0xff]  ;;  %v558_v23 = vld [vmem:[%s7337_s5] sm:$0xff]  ;;  %v559_v24 = vld [vmem:[%s7337_s5 + $0x8] sm:$0xff]  ;;  %v5687_v35 = vand.u32 127, %v55_v30 }
  0x1c   :  { %257 = vmatprep.mubr.f32.mxu0 %v7350_v3  ;;  %v87_v25 = vld [vmem:[%s7333_s1 + $0x38] sm:$0xff]  ;;  %v560_v26 = vld [vmem:[%s7337_s5 + $0x10] sm:$0xff]  ;;  %v562_v27 = vld [vmem:[%s7338_s6] sm:$0xff] }
  0x1d   :  { %430 = vperm.xlu0 %5234, %v424_v18   ;;  %v561_v28 = vld [vmem:[%s7337_s5 + $0x18] sm:$0xff]  ;;  %v563_v29 = vld [vmem:[%s7338_s6 + $0x8] sm:$0xff]  ;;  %v57_v44 = vadd.s32 128, %v5687_v35  ;;  %vm60_vm3 = vcmp.ge.s32.totalorder %v5687_v35, 2  ;;  %vm62_vm4 = vcmp.lt.s32.totalorder %v5687_v35, 55 }
  0x1e   :  { %445 = vperm.xlu1 %5235, %v427_v20   ;;  %vm64_vm6 = vmand %vm60_vm3, %vm62_vm4 }
  0x1f   :  { %4695 = vmatmul.mubr.msk.f32.gmra.mrb[10].mxu0 %vm138_vm0, %v85_v19  ;;  %v5702_v54 = vand.u32 127, %v57_v44 }
  0x20   :  { %263 = vmatprep.mubr.f32.mxu0 %v7350_v3 }
  0x21   :  { %440 = vperm.xlu0 %5234, %v426_v21   ;;  %vm61_vm1 = vcmp.ge.s32.totalorder %v5702_v54, 2  ;;  %vm63_vm2 = vcmp.lt.s32.totalorder %v5702_v54, 55 }
  0x22   :  { %628 = vperm.xlu1 %5235, %v558_v23   ;;  %vm65_vm5 = vmand %vm61_vm1, %vm63_vm2 }
  0x23   :  { %4696 = vmatmul.mubr.msk.f32.gmra.mrb[12].mxu0 %vm138_vm0, %v86_v22  ;;  %v5724_v17 = vsel %vm65_vm5, 1.0, %v7350_v3  ;;  %v5728_v22 = vsel %vm64_vm6, 1.0, %v7350_v3 }
  0x24   :  { %269 = vmatprep.mubr.f32.mxu0 %v7350_v3 }
  0x25   :  { %633 = vperm.xlu0 %5234, %v559_v24  }
  0x26   :  { %638 = vperm.xlu1 %5235, %v560_v26  }
  0x27   :  { %4697 = vmatmul.mubr.msk.f32.gmra.mrb[14].mxu0 %vm138_vm0, %v87_v25 }
  0x29   :  { %672 = vperm.xlu0 %5234, %v562_v27  }
  0x2a   :  { %643 = vperm.xlu1 %5235, %v561_v28  }
  0x2e   :  { %677 = vperm.xlu1 %5235, %v563_v29  }
  0x83   :  { %v111_v45 = vpop.permute.xlu1 %110 }
  0x84   :  { %v101_v31 = vpop.permute.xlu0 %100 }
  0x87   :  { %v116_v58 = vpop.permute.xlu1 %115 }
  0x88   :  { %v106_v38 = vpop.permute.xlu0 %105 }
  0x8b   :  { %v126_v18 = vpop.permute.xlu1 %125 }
  0x8c   :  { %v121_v5 = vpop.permute.xlu0 %120 }
  0xde   :  { %v229_v32 = vpop.f32.mrb[0].mxu0 }
  0xdf   :  { %v5684_v33 = vadd.f32 %v229_v32, %v101_v31  ;;  %v231_v34 = vpop.f32.mrb[1].mxu0 }
  0xe0   :  { %v5689_v36 = vadd.f32 %v231_v34, %v101_v31 }
  0xe1   :  { %v292_v37 = vmin.f32 %v5684_v33, 0.0  ;;  %vm276_vm7 = vcmp.gt.f32.partialorder %v5684_v33, 0.0 }
  0xe2   :  { %v293_v39 = vmin.f32 %v5689_v36, 0.0  ;;  %v235_v40 = vpop.f32.mrb[2].mxu0  ;;  %vm277_vm8 = vcmp.gt.f32.partialorder %v5689_v36, 0.0 }
  0xe3   :  { %v308_v41 = vmul.f32 1.442695, %v292_v37  ;;  %v5693_v42 = vadd.f32 %v235_v40, %v106_v38  ;;  %v237_v43 = vpop.f32.mrb[3].mxu0 }
  0xe4   :  { %v310_v46 = vmul.f32 1.442695, %v293_v39  ;;  %v5696_v47 = vadd.f32 %v237_v43, %v106_v38  ;;  %v131_v38 = vpop.permute.xlu0 %130 }
  0xe5   :  { %5248 = vpow2.f32 %v308_v41  ;;  %v294_v48 = vmin.f32 %v5693_v42, 0.0  ;;  %vm278_vm9 = vcmp.gt.f32.partialorder %v5693_v42, 0.0 }
  0xe6   :  { %5250 = vpow2.f32 %v310_v46  ;;  %v295_v49 = vmin.f32 %v5696_v47, 0.0  ;;  %v241_v50 = vpop.f32.mrb[4].mxu0  ;;  %vm279_vm12 = vcmp.gt.f32.partialorder %v5696_v47, 0.0 }
  0xe7   :  { %v312_v51 = vmul.f32 1.442695, %v294_v48  ;;  %v5700_v52 = vadd.f32 %v241_v50, %v111_v45  ;;  %v243_v53 = vpop.f32.mrb[5].mxu0 }
  0xe8   :  { %v314_v55 = vmul.f32 1.442695, %v295_v49  ;;  %v5704_v56 = vadd.f32 %v243_v53, %v111_v45 }
  0xe9   :  { %5252 = vpow2.f32 %v312_v51  ;;  %v296_v57 = vmin.f32 %v5700_v52, 0.0  ;;  %vm280_vm10 = vcmp.gt.f32.partialorder %v5700_v52, 0.0 }
  0xea   :  { %5254 = vpow2.f32 %v314_v55  ;;  %v297_v59 = vmin.f32 %v5704_v56, 0.0  ;;  %v247_v60 = vpop.f32.mrb[6].mxu0  ;;  %vm281_vm11 = vcmp.gt.f32.partialorder %v5704_v56, 0.0 }
  0xeb   :  { %v316_v61 = vmul.f32 1.442695, %v296_v57  ;;  %v5708_v62 = vadd.f32 %v247_v60, %v116_v58  ;;  %v249_v63 = vpop.f32.mrb[7].mxu0 }
  0xec   :  { %v318_v0 = vmul.f32 1.442695, %v297_v59  ;;  %v5712_v1 = vadd.f32 %v249_v63, %v116_v58  ;;  %v136_v59 = vpop.permute.xlu1 %135 }
  0xed   :  { %5256 = vpow2.f32 %v316_v61  ;;  %v298_v2 = vmin.f32 %v5708_v62, 0.0  ;;  %vm282_vm13 = vcmp.gt.f32.partialorder %v5708_v62, 0.0 }
  0xee   :  { %5258 = vpow2.f32 %v318_v0  ;;  %v299_v6 = vmin.f32 %v5712_v1, 0.0  ;;  %v253_v7 = vpop.f32.mrb[8].mxu0  ;;  %vm283_vm14 = vcmp.gt.f32.partialorder %v5712_v1, 0.0 }
  0xef   :  { %v5249_v8 = vpop.eup %5248  ;;  %v320_v9 = vmul.f32 1.442695, %v298_v2  ;;  %v5718_v10 = vadd.f32 %v253_v7, %v121_v5  ;;  %v255_v11 = vpop.f32.mrb[9].mxu0 }
  0xf0   :  { %v5251_v12 = vpop.eup %5250  ;;  %v4698_v13 = vadd.f32 -1.0, %v5249_v8  ;;  %v322_v14 = vmul.f32 1.442695, %v299_v6  ;;  %v5720_v15 = vadd.f32 %v255_v11, %v121_v5 }
  0xf1   :  { %5260 = vpow2.f32 %v320_v9  ;;  %v300_v16 = vmin.f32 %v5718_v10, 0.0  ;;  %v4699_v24 = vadd.f32 -1.0, %v5251_v12  ;;  %vm284_vm15 = vcmp.gt.f32.partialorder %v5718_v10, 0.0 }
  0xf2   :  { %v356_v19 = vmul.f32 1.6732632, %v4698_v13  ;;  %5262 = vpow2.f32 %v322_v14  ;;  %v301_v20 = vmin.f32 %v5720_v15, 0.0  ;;  %v259_v21 = vpop.f32.mrb[10].mxu0  ;;  %vm285_vm0 = vcmp.gt.f32.partialorder %v5720_v15, 0.0 }
  0xf3   :  { %v5253_v23 = vpop.eup %5252  ;;  %v324_v25 = vmul.f32 1.442695, %v300_v16  ;;  %v5731_v26 = vadd.f32 %v259_v21, %v126_v18  ;;  %v261_v27 = vpop.f32.mrb[11].mxu0  ;;  %v357_v46 = vmul.f32 1.6732632, %v4699_v24 }
  0xf4   :  { %v5255_v28 = vpop.eup %5254  ;;  %v4700_v29 = vadd.f32 -1.0, %v5253_v23  ;;  %v326_v31 = vmul.f32 1.442695, %v301_v20  ;;  %v5735_v32 = vadd.f32 %v261_v27, %v126_v18  ;;  %v372_v34 = vsel %vm276_vm7, %v5684_v33, %v356_v19 }
  0xf5   :  { %v4701_v37 = vadd.f32 -1.0, %v5255_v28  ;;  %5264 = vpow2.f32 %v324_v25  ;;  %v302_v40 = vmin.f32 %v5731_v26, 0.0  ;;  %v388_v49 = vmul.f32 1.050701, %v372_v34 }
  0xf6   :  { %v358_v39 = vmul.f32 1.6732632, %v4700_v29  ;;  %5266 = vpow2.f32 %v326_v31  ;;  %v265_v41 = vpop.f32.mrb[12].mxu0  ;;  %v303_v44 = vmin.f32 %v5735_v32, 0.0  ;;  %v373_v19 = vsel %vm277_vm8, %v5689_v36, %v357_v46 }
  0xf7   :  { %v5257_v43 = vpop.eup %5256  ;;  %v5744_v33 = vadd.f32 %v265_v41, %v131_v38  ;;  %v267_v45 = vpop.f32.mrb[13].mxu0  ;;  %v328_v51 = vmul.f32 1.442695, %v302_v40  ;;  %v359_v58 = vmul.f32 1.6732632, %v4701_v37  ;;  %vm286_vm1 = vcmp.gt.f32.partialorder %v5731_v26, 0.0 }
  0xf8   :  { %v5259_v48 = vpop.eup %5258  ;;  %v4702_v50 = vadd.f32 -1.0, %v5257_v43  ;;  %v5746_v53 = vadd.f32 %v267_v45, %v131_v38  ;;  %v330_v57 = vmul.f32 1.442695, %v303_v44  ;;  %v374_v60 = vsel %vm278_vm9, %v5693_v42, %v358_v39 }
  0xf9   :  { %v4703_v55 = vadd.f32 -1.0, %v5259_v48  ;;  %5268 = vpow2.f32 %v328_v51  ;;  %v304_v63 = vmin.f32 %v5744_v33, 0.0  ;;  %v390_v20 = vmul.f32 1.050701, %v374_v60 }
  0xfa   :  { %v360_v61 = vmul.f32 1.6732632, %v4702_v50  ;;  %v271_v0 = vpop.f32.mrb[14].mxu0  ;;  %5270 = vpow2.f32 %v330_v57  ;;  %v305_v6 = vmin.f32 %v5746_v53, 0.0  ;;  %v375_v31 = vsel %vm279_vm12, %v5696_v47, %v359_v58 }
  0xfb   :  { %v5261_v2 = vpop.eup %5260  ;;  %v361_v5 = vmul.f32 1.6732632, %v4703_v55  ;;  %v5754_v7 = vadd.f32 %v271_v0, %v136_v59  ;;  %v273_v8 = vpop.f32.mrb[15].mxu0  ;;  %v332_v42 = vmul.f32 1.442695, %v304_v63  ;;  %vm287_vm2 = vcmp.gt.f32.partialorder %v5735_v32, 0.0 }
  0xfc   :  { %v5263_v9 = vpop.eup %5262  ;;  %v376_v11 = vsel %vm280_vm10, %v5700_v52, %v360_v61  ;;  %v4704_v12 = vadd.f32 -1.0, %v5261_v2  ;;  %v5761_v13 = vadd.f32 %v273_v8, %v136_v59  ;;  %v334_v18 = vmul.f32 1.442695, %v305_v6 }
  0xfd   :  { %v377_v14 = vsel %vm281_vm11, %v5704_v56, %v361_v5  ;;  %v4705_v16 = vadd.f32 -1.0, %v5263_v9  ;;  %v392_v52 = vmul.f32 1.050701, %v376_v11  ;;  %5272 = vpow2.f32 %v332_v42 }
  0xfe   :  { %v362_v21 = vmul.f32 1.6732632, %v4704_v12  ;;  %v393_v24 = vmul.f32 1.050701, %v377_v14  ;;  %5274 = vpow2.f32 %v334_v18  ;;  %v306_v27 = vmin.f32 %v5754_v7, 0.0 }
  0xff   :  { %v5265_v23 = vpop.eup %5264  ;;  %v363_v25 = vmul.f32 1.6732632, %v4705_v16  ;;  %v307_v36 = vmin.f32 %v5761_v13, 0.0  ;;  %v389_v44 = vmul.f32 1.050701, %v373_v19  ;;  %v404_v47 = vmul.f32 %v388_v49, %v5728_v22 }
 0x100   :  { %v5267_v28 = vpop.eup %5266  ;;  %v378_v56 = vsel %vm282_vm13, %v5708_v62, %v362_v21  ;;  %v4706_v29 = vadd.f32 -1.0, %v5265_v23  ;;  %v336_v39 = vmul.f32 1.442695, %v306_v27  ;;  %v391_v45 = vmul.f32 1.050701, %v375_v31 }
 0x101   :  { %v394_v34 = vmul.f32 1.050701, %v378_v56  ;;  %v379_v37 = vsel %vm283_vm14, %v5712_v1, %v363_v25  ;;  %v4707_v38 = vadd.f32 -1.0, %v5267_v28  ;;  %v338_v43 = vmul.f32 1.442695, %v307_v36 }
 0x102   :  { %v395_v40 = vmul.f32 1.050701, %v379_v37  ;;  %v364_v41 = vmul.f32 1.6732632, %v4706_v29  ;;  %5276 = vpow2.f32 %v336_v39  ;;  %v406_v48 = vmul.f32 %v390_v20, %v5728_v22 }
 0x103   :  { %v365_v62 = vmul.f32 1.6732632, %v4707_v38  ;;  %v5269_v46 = vpop.eup %5268  ;;  %5278 = vpow2.f32 %v338_v43  ;;  %v409_v57 = vmul.f32 %v393_v24, %v5724_v17  ;;  %v405_v59 = vmul.f32 %v389_v44, %v5724_v17 }
 0x104   :  { %v5271_v50 = vpop.eup %5270  ;;  %v380_v1 = vsel %vm284_vm15, %v5718_v10, %v364_v41  ;;  %v4708_v55 = vadd.f32 -1.0, %v5269_v46  ;;  %v407_v60 = vmul.f32 %v391_v45, %v5724_v17  ;;  %v5195_v49 = vpack.c.bf16 %v406_v48, %v404_v47 }
 0x105   :  { %v381_v51 = vsel %vm285_vm0, %v5720_v15, %v365_v62  ;;  %v4709_v58 = vadd.f32 -1.0, %v5271_v50  ;;  %v411_v63 = vmul.f32 %v395_v40, %v5724_v17  ;;  %v408_v0 = vmul.f32 %v392_v52, %v5728_v22  ;;  %v431_v50 = vpop.permute.xlu0 %430 }
 0x106   :  { %v366_v61 = vmul.f32 1.6732632, %v4708_v55  ;;  %v410_v10 = vmul.f32 %v394_v34, %v5728_v22  ;;  %v396_v5 = vmul.f32 1.050701, %v380_v1  ;;  %v397_v6 = vmul.f32 1.050701, %v381_v51 }
 0x107   :  { %v5273_v2 = vpop.eup %5272  ;;  %v367_v15 = vmul.f32 1.6732632, %v4709_v58  ;;  %v5193_v8 = vpack.c.bf16 %v407_v60, %v405_v59  ;;  %v5197_v42 = vpack.c.bf16 %v411_v63, %v409_v57  ;;  %vm288_vm3 = vcmp.gt.f32.partialorder %v5744_v33, 0.0 }
 0x108   :  { %v5275_v9 = vpop.eup %5274  ;;  %v382_v11 = vsel %vm286_vm1, %v5731_v26, %v366_v61  ;;  %v4710_v12 = vadd.f32 -1.0, %v5273_v2  ;;  %v5199_v14 = vpack.c.bf16 %v410_v10, %v408_v0  ;;  %v412_v23 = vmul.f32 %v396_v5, %v5728_v22 }
 0x109   :  { %v398_v16 = vmul.f32 1.050701, %v382_v11  ;;  %v383_v18 = vsel %vm287_vm2, %v5735_v32, %v367_v15  ;;  %v4711_v19 = vadd.f32 -1.0, %v5275_v9  ;;  %5194 = vmatprep.subr.bf16.mxu1 %v5193_v8  ;;  %v413_v25 = vmul.f32 %v397_v6, %v5724_v17  ;;  %v441_v9 = vpop.permute.xlu0 %440 }
 0x10a   :  { %v399_v20 = vmul.f32 1.050701, %v383_v18  ;;  %v368_v52 = vmul.f32 1.6732632, %v4710_v12  ;;  %5196 = vmatpush1.bf16.msra.mxu1 %v5195_v49  ;;  %vm289_vm4 = vcmp.gt.f32.partialorder %v5746_v53, 0.0  ;;  %vm290_vm5 = vcmp.gt.f32.partialorder %v5754_v7, 0.0  ;;  %v436_v49 = vpop.permute.xlu1 %435 }
 0x10b   :  { %v369_v21 = vmul.f32 1.6732632, %v4711_v19  ;;  %5198 = vmatprep.subr.bf16.mxu1 %v5197_v42  ;;  %v414_v24 = vmul.f32 %v398_v16, %v5728_v22  ;;  %vm291_vm6 = vcmp.gt.f32.partialorder %v5761_v13, 0.0  ;;  %vm448_vm7 = vcmask 523264  }
 0x10c   :  { %v5277_v26 = vpop.eup %5276  ;;  %v415_v27 = vmul.f32 %v399_v20, %v5724_v17  ;;  %v384_v32 = vsel %vm288_vm3, %v5744_v33, %v368_v52  ;;  %vm68_vm8 = vcmp.ge.s32.totalorder %v5687_v35, 1  ;;  %vm70_vm9 = vcmp.lt.s32.totalorder %v5687_v35, 56 }
 0x10d   :  { %v5279_v28 = vpop.eup %5278  ;;  %v4712_v56 = vadd.f32 -1.0, %v5277_v26  ;;  %v5203_v29 = vpack.c.bf16 %v414_v24, %v412_v23  ;;  %v385_v36 = vsel %vm289_vm4, %v5746_v53, %v369_v21  ;;  %v400_v38 = vmul.f32 1.050701, %v384_v32  ;;  %vm72_vm12 = vmand %vm68_vm8, %vm70_vm9 }
 0x10e   :  { %v4713_v31 = vadd.f32 -1.0, %v5279_v28  ;;  %5200 = vmatpush1.bf16.msra.mxu1 %v5199_v14  ;;  %v5201_v34 = vpack.c.bf16 %v415_v27, %v413_v25  ;;  %v401_v40 = vmul.f32 1.050701, %v385_v36  ;;  %vm69_vm10 = vcmp.ge.s32.totalorder %v5702_v54, 1  ;;  %v446_v23 = vpop.permute.xlu1 %445 }
 0x10f   :  { %v370_v37 = vmul.f32 1.6732632, %v4712_v56  ;;  %v416_v53 = vmul.f32 %v400_v38, %v5728_v22  ;;  %vm71_vm11 = vcmp.lt.s32.totalorder %v5702_v54, 56  ;;  %v5843_v1 = vsel %vm72_vm12, 1.0, %v7350_v3 }
 0x110   :  { %v371_v39 = vmul.f32 1.6732632, %v4713_v31  ;;  %5202 = vmatprep.subr.bf16.mxu1 %v5201_v34  ;;  %v417_v45 = vmul.f32 %v401_v40, %v5724_v17  ;;  %vm73_vm13 = vmand %vm69_vm10, %vm71_vm11  ;;  %vm76_vm8 = vcmp.lt.s32.totalorder %v5687_v35, 57  ;;  %vm77_vm9 = vcmp.lt.s32.totalorder %v5702_v54, 57 }
 0x111   :  { %v386_v41 = vsel %vm290_vm5, %v5754_v7, %v370_v37  ;;  %v420_v7 = vld [vmem:[%s7335_s3] sm:$0xff]  ;;  %v5846_v57 = vsel %vm73_vm13, 1.0, %v7350_v3 }
 0x112   :  { %v402_v33 = vmul.f32 1.050701, %v386_v41  ;;  %v387_v43 = vsel %vm291_vm6, %v5761_v13, %v371_v39  ;;  %5204 = vmatpush1.bf16.msra.mxu1 %v5203_v29  ;;  %v423_v13 = vld [vmem:[%s7335_s3 + $0x18] sm:$0xff]  ;;  %vm798_vm6 = vcmask 261120  }
 0x113   :  { %v403_v62 = vmul.f32 1.050701, %v387_v43  ;;  %v775_v43 = vld [vmem:[%s7340_s8 + $0x8] sm:$0xff] }
 0x114   :  { %v418_v44 = vmul.f32 %v402_v33, %v5728_v22  ;;  %v421_v22 = vld [vmem:[%s7335_s3 + $0x8] sm:$0xff]  ;;  %v565_v33 = vld [vmem:[%s7338_s6 + $0x18] sm:$0xff] }
 0x115   :  { %v419_v46 = vmul.f32 %v403_v62, %v5724_v17  ;;  %v422_v17 = vld [vmem:[%s7335_s3 + $0x10] sm:$0xff]  ;;  %v777_v62 = vld [vmem:[%s7340_s8 + $0x18] sm:$0xff] }
 0x116   :  { %v5207_v47 = vpack.c.bf16 %v418_v44, %v416_v53  ;;  %v564_v53 = vld [vmem:[%s7338_s6 + $0x10] sm:$0xff]  ;;  %v908_v44 = vld [vmem:[%s7341_s9] sm:$0xff] }
 0x117   :  { %v5205_v48 = vpack.c.bf16 %v419_v46, %v417_v45  ;;  %v774_v45 = vld [vmem:[%s7340_s8] sm:$0xff]  ;;  %v910_v46 = vld [vmem:[%s7341_s9 + $0x10] sm:$0xff] }
 0x119   :  { %5206 = vmatprep.subr.bf16.mxu1 %v5205_v48  ;;  %v911_v48 = vld [vmem:[%s7341_s9 + $0x18] sm:$0xff] }
 0x11a   :  { %5208 = vmatpush1.bf16.msra.mxu1 %v5207_v47  ;;  %v776_v47 = vld [vmem:[%s7340_s8 + $0x10] sm:$0xff] }
 0x11d   :  { %4714 = vmatmul.mubr.msk.f32.vlgmr.msra.gmra.mrb[0].mxu1 %vm448_vm7, %v420_v7  ;;  %v909_v7 = vld [vmem:[%s7341_s9 + $0x8] sm:$0xff] }
 0x11e   :  { %531 = vmatprep.mubr.f32.mxu1 %v7350_v3 }
 0x121   :  { %4715 = vmatmul.mubr.msk.f32.gmra.mrb[2].mxu1 %vm448_vm7, %v421_v22  ;;  %v913_v22 = vld [vmem:[%s7342_s10 + $0x8] sm:$0xff] }
 0x122   :  { %537 = vmatprep.mubr.f32.mxu1 %v7350_v3 }
 0x125   :  { %4716 = vmatmul.mubr.msk.f32.gmra.mrb[4].mxu1 %vm448_vm7, %v422_v17  ;;  %v912_v17 = vld [vmem:[%s7342_s10] sm:$0xff] }
 0x126   :  { %543 = vmatprep.mubr.f32.mxu1 %v7350_v3 }
 0x129   :  { %4717 = vmatmul.mubr.msk.f32.gmra.mrb[6].mxu1 %vm448_vm7, %v423_v13  ;;  %v629_v13 = vpop.permute.xlu1 %628 }
 0x12a   :  { %875 = vmatprep.mubr.f32.mxu1 %v7350_v3 }
 0x1f0   :  { %v527_v51 = vpop.f32.mrb[0].mxu1 }
 0x1f1   :  { %v528_v55 = vadd.f32 %v527_v51, %v431_v50  ;;  %v529_v58 = vpop.f32.mrb[1].mxu1  ;;  %v634_v51 = vpop.permute.xlu0 %633 }
 0x1f2   :  { %v530_v59 = vadd.f32 %v529_v58, %v431_v50  ;;  %v5932_v50 = vpop.permute.xlu1 %638 }
 0x1f3   :  { %v5849_v60 = vmul.f32 %v528_v55, %v5843_v1 }
 0x1f4   :  { %v5852_v61 = vmul.f32 %v530_v59, %v5846_v57  ;;  %v533_v63 = vpop.f32.mrb[2].mxu1 }
 0x1f5   :  { %v534_v0 = vadd.f32 %v533_v63, %v436_v49  ;;  %v535_v10 = vpop.f32.mrb[3].mxu1  ;;  %v578_v6 = vmul.f32 %v5849_v60, %v5849_v60  ;;  %v673_v58 = vpop.permute.xlu0 %672 }
 0x1f6   :  { %v536_v2 = vadd.f32 %v535_v10, %v436_v49  ;;  %v566_v5 = vadd.f32 %v5852_v61, %v5849_v60  ;;  %v579_v15 = vmul.f32 %v5852_v61, %v5852_v61  ;;  %v5934_v55 = vpop.permute.xlu1 %643 }
 0x1f7   :  { %v5861_v8 = vmul.f32 %v534_v0, %v5843_v1 }
 0x1f8   :  { %v5864_v11 = vmul.f32 %v536_v2, %v5846_v57  ;;  %v539_v12 = vpop.f32.mrb[4].mxu1  ;;  %567 = vadd.xlane.f32.xlu0 %v566_v5  ;;  %v586_v20 = vadd.f32 %v579_v15, %v578_v6 }
 0x1f9   :  { %v540_v42 = vadd.f32 %v539_v12, %v441_v9  ;;  %v541_v14 = vpop.f32.mrb[5].mxu1  ;;  %v580_v16 = vmul.f32 %v5861_v8, %v5861_v8 }
 0x1fa   :  { %v542_v18 = vadd.f32 %v541_v14, %v441_v9  ;;  %v569_v19 = vadd.f32 %v5864_v11, %v5861_v8  ;;  %v581_v52 = vmul.f32 %v5864_v11, %v5864_v11  ;;  %v5936_v59 = vpop.permute.xlu1 %677 }
 0x1fb   :  { %v5873_v21 = vmul.f32 %v540_v42, %v5843_v1 }
 0x1fc   :  { %v5876_v24 = vmul.f32 %v542_v18, %v5846_v57  ;;  %v545_v26 = vpop.f32.mrb[6].mxu1  ;;  %570 = vadd.xlane.f32.xlu1 %v569_v19  ;;  %587 = vadd.xlane.f32.xlu0 %v586_v20  ;;  %v589_v28 = vadd.f32 %v581_v52, %v580_v16 }
 0x1fd   :  { %v546_v25 = vadd.f32 %v545_v26, %v446_v23  ;;  %v547_v27 = vpop.f32.mrb[7].mxu1  ;;  %v582_v29 = vmul.f32 %v5873_v21, %v5873_v21 }
 0x1fe   :  { %v548_v32 = vadd.f32 %v547_v27, %v446_v23  ;;  %v572_v56 = vadd.f32 %v5876_v24, %v5873_v21  ;;  %v583_v36 = vmul.f32 %v5876_v24, %v5876_v24 }
 0x1ff   :  { %v5885_v31 = vmul.f32 %v546_v25, %v5843_v1 }
 0x200   :  { %v5888_v34 = vmul.f32 %v548_v32, %v5846_v57  ;;  %573 = vadd.xlane.f32.xlu1 %v572_v56  ;;  %590 = vadd.xlane.f32.xlu0 %v589_v28  ;;  %v592_v37 = vadd.f32 %v583_v36, %v582_v29 }
 0x201   :  { %v584_v39 = vmul.f32 %v5885_v31, %v5885_v31 }
 0x202   :  { %v575_v38 = vadd.f32 %v5888_v34, %v5885_v31  ;;  %v585_v40 = vmul.f32 %v5888_v34, %v5888_v34 }
 0x204   :  { %593 = vadd.xlane.f32.xlu1 %v592_v37  ;;  %576 = vadd.xlane.f32.xlu0 %v575_v38  ;;  %v595_v41 = vadd.f32 %v585_v40, %v584_v39 }
 0x208   :  { %596 = vadd.xlane.f32.xlu0 %v595_v41 }
 0x215   :  { %687 = vperm.xlu1 %5235, %v565_v33  }
 0x219   :  { %785 = vperm.xlu1 %5235, %v775_v43  }
 0x21d   :  { %795 = vperm.xlu1 %5235, %v777_v62  }
 0x21e   :  { %682 = vperm.xlu0 %5234, %v564_v53  }
 0x221   :  { %978 = vperm.xlu1 %5235, %v908_v44  }
 0x222   :  { %780 = vperm.xlu0 %5234, %v774_v45  }
 0x225   :  { %988 = vperm.xlu1 %5235, %v910_v46  }
 0x226   :  { %790 = vperm.xlu0 %5234, %v776_v47  }
 0x229   :  { %993 = vperm.xlu1 %5235, %v911_v48  }
 0x22a   :  { %983 = vperm.xlu0 %5234, %v909_v7  }
 0x22d   :  { %1027 = vperm.xlu1 %5235, %v913_v22  }
 0x22e   :  { %1022 = vperm.xlu0 %5234, %v912_v17  }
 0x285   :  { %v568_v49 = vpop.xlane.xlu0 %567 }
 0x286   :  { %v598_v63 = vmul.f32 0.009090909, %v568_v49 }
 0x288   :  { %v606_v2 = vmul.f32 %v598_v63, %v598_v63  ;;  %v618_v39 = vsub.f32 %v5849_v60, %v598_v63  ;;  %v619_v40 = vsub.f32 %v5852_v61, %v598_v63 }
 0x289   :  { %v571_v0 = vpop.xlane.xlu1 %570  ;;  %v588_v10 = vpop.xlane.xlu0 %587 }
 0x28a   :  { %v602_v5 = vmul.f32 0.009090909, %v588_v10  ;;  %v599_v6 = vmul.f32 0.009090909, %v571_v0  ;;  %v646_v62 = vmul.f32 %v629_v13, %v618_v39  ;;  %v647_v53 = vmul.f32 %v629_v13, %v619_v40 }
 0x28c   :  { %v610_v15 = vsub.f32 %v602_v5, %v606_v2  ;;  %v607_v16 = vmul.f32 %v599_v6, %v599_v6  ;;  %v620_v45 = vsub.f32 %v5861_v8, %v599_v6  ;;  %v621_v46 = vsub.f32 %v5864_v11, %v599_v6 }
 0x28d   :  { %v574_v9 = vpop.xlane.xlu1 %573  ;;  %v591_v12 = vpop.xlane.xlu0 %590 }
 0x28e   :  { %v614_v42 = vmax.f32 %v610_v15, 0.0  ;;  %v600_v14 = vmul.f32 0.009090909, %v574_v9  ;;  %v603_v18 = vmul.f32 0.009090909, %v591_v12  ;;  %v648_v49 = vmul.f32 %v634_v51, %v620_v45 }
 0x28f   :  { %v649_v63 = vmul.f32 %v634_v51, %v621_v46 }
 0x290   :  { %v654_v19 = vadd.f32 1e-05, %v614_v42  ;;  %v611_v20 = vsub.f32 %v603_v18, %v607_v16  ;;  %v608_v26 = vmul.f32 %v600_v14, %v600_v14  ;;  %v622_v22 = vsub.f32 %v5873_v21, %v600_v14 }
 0x291   :  { %v594_v52 = vpop.xlane.xlu1 %593  ;;  %v577_v23 = vpop.xlane.xlu0 %576  ;;  %v623_v60 = vsub.f32 %v5876_v24, %v600_v14 }
 0x292   :  { %5280 = vrsqrt.f32 %v654_v19  ;;  %v604_v25 = vmul.f32 0.009090909, %v594_v52  ;;  %v601_v27 = vmul.f32 0.009090909, %v577_v23  ;;  %v615_v28 = vmax.f32 %v611_v20, 0.0 }
 0x293   :  { %v650_v11 = vmul.f32 %v5932_v50, %v622_v22  ;;  %v651_v21 = vmul.f32 %v5932_v50, %v623_v60 }
 0x294   :  { %v612_v32 = vsub.f32 %v604_v25, %v608_v26  ;;  %v655_v56 = vadd.f32 1e-05, %v615_v28  ;;  %v609_v37 = vmul.f32 %v601_v27, %v601_v27  ;;  %v624_v5 = vsub.f32 %v5885_v31, %v601_v27 }
 0x295   :  { %v597_v29 = vpop.xlane.xlu0 %596 }
 0x296   :  { %v616_v36 = vmax.f32 %v612_v32, 0.0  ;;  %v605_v38 = vmul.f32 0.009090909, %v597_v29  ;;  %5282 = vrsqrt.f32 %v655_v56  ;;  %v652_v19 = vmul.f32 %v5934_v55, %v624_v5 }
 0x298   :  { %v656_v41 = vadd.f32 1e-05, %v616_v36  ;;  %v613_v33 = vsub.f32 %v605_v38, %v609_v37 }
 0x29a   :  { %5284 = vrsqrt.f32 %v656_v41  ;;  %v617_v43 = vmax.f32 %v613_v33, 0.0 }
 0x29c   :  { %v5281_v44 = vpop.eup %5280  ;;  %v657_v47 = vadd.f32 1e-05, %v617_v43 }
 0x29d   :  { %v662_v48 = vmul.f32 %v5281_v44, %v646_v62  ;;  %v663_v7 = vmul.f32 %v5281_v44, %v647_v53  ;;  %v683_v14 = vpop.permute.xlu0 %682 }
 0x29e   :  { %5286 = vrsqrt.f32 %v657_v47 }
 0x29f   :  { %v691_v61 = vadd.f32 %v673_v58, %v663_v7  ;;  %v5944_v17 = vadd.f32 %v673_v58, %v662_v48  ;;  %v625_v58 = vsub.f32 %v5888_v34, %v601_v27 }
 0x2a0   :  { %v5283_v0 = vpop.eup %5282 }
 0x2a1   :  { %v707_v13 = vmin.f32 %v691_v61, 0.0  ;;  %v706_v10 = vmin.f32 %v5944_v17, 0.0  ;;  %v664_v8 = vmul.f32 %v5283_v0, %v648_v49  ;;  %v665_v2 = vmul.f32 %v5283_v0, %v649_v63 }
 0x2a2   :  { %v653_v52 = vmul.f32 %v5934_v55, %v625_v58  ;;  %vm699_vm14 = vcmp.gt.f32.partialorder %v691_v61, 0.0  ;;  %vm698_vm15 = vcmp.gt.f32.partialorder %v5944_v17, 0.0 }
 0x2a3   :  { %v716_v6 = vmul.f32 1.442695, %v707_v13  ;;  %v714_v15 = vmul.f32 1.442695, %v706_v10  ;;  %v693_v9 = vadd.f32 %v5936_v59, %v665_v2  ;;  %v692_v51 = vadd.f32 %v5936_v59, %v664_v8  ;;  %v688_v59 = vpop.permute.xlu1 %687 }
 0x2a4   :  { %v5285_v24 = vpop.eup %5284 }
 0x2a5   :  { %v666_v12 = vmul.f32 %v5285_v24, %v650_v11  ;;  %v667_v42 = vmul.f32 %v5285_v24, %v651_v21  ;;  %5288 = vpow2.f32 %v716_v6  ;;  %v709_v16 = vmin.f32 %v693_v9, 0.0 }
 0x2a6   :  { %v708_v18 = vmin.f32 %v692_v51, 0.0  ;;  %5290 = vpow2.f32 %v714_v15  ;;  %vm701_vm0 = vcmp.gt.f32.partialorder %v693_v9, 0.0  ;;  %vm700_vm1 = vcmp.gt.f32.partialorder %v692_v51, 0.0 }
 0x2a7   :  { %v694_v31 = vadd.f32 %v683_v14, %v666_v12  ;;  %v5954_v20 = vadd.f32 %v683_v14, %v667_v42  ;;  %v720_v34 = vmul.f32 1.442695, %v709_v16 }
 0x2a8   :  { %v5287_v50 = vpop.eup %5286  ;;  %v718_v23 = vmul.f32 1.442695, %v708_v18 }
 0x2a9   :  { %v668_v26 = vmul.f32 %v5287_v50, %v652_v19  ;;  %v710_v25 = vmin.f32 %v694_v31, 0.0  ;;  %v711_v27 = vmin.f32 %v5954_v20, 0.0  ;;  %5292 = vpow2.f32 %v720_v34 }
 0x2aa   :  { %v669_v28 = vmul.f32 %v5287_v50, %v653_v52  ;;  %5294 = vpow2.f32 %v718_v23  ;;  %vm702_vm2 = vcmp.gt.f32.partialorder %v694_v31, 0.0  ;;  %vm703_vm3 = vcmp.gt.f32.partialorder %v5954_v20, 0.0 }
 0x2ab   :  { %v722_v32 = vmul.f32 1.442695, %v710_v25  ;;  %v5958_v56 = vadd.f32 %v688_v59, %v668_v26  ;;  %v724_v29 = vmul.f32 1.442695, %v711_v27 }
 0x2ac   :  { %v5960_v36 = vadd.f32 %v688_v59, %v669_v28 }
 0x2ad   :  { %5296 = vpow2.f32 %v722_v32  ;;  %v712_v37 = vmin.f32 %v5958_v56, 0.0  ;;  %vm704_vm4 = vcmp.gt.f32.partialorder %v5958_v56, 0.0 }
 0x2ae   :  { %5298 = vpow2.f32 %v724_v29  ;;  %v713_v55 = vmin.f32 %v5960_v36, 0.0  ;;  %vm705_vm5 = vcmp.gt.f32.partialorder %v5960_v36, 0.0 }
 0x2af   :  { %v5289_v38 = vpop.eup %5288  ;;  %v726_v39 = vmul.f32 1.442695, %v712_v37 }
 0x2b0   :  { %v4719_v40 = vadd.f32 -1.0, %v5289_v38  ;;  %v728_v41 = vmul.f32 1.442695, %v713_v55  ;;  %v5291_v33 = vpop.eup %5290  ;;  %v781_v55 = vpop.permute.xlu0 %780  ;;  %v78_v38 = vsel %vm76_vm8, 1.0, %v7350_v3  ;;  %vm1874_vm8 = vcmask 1040384  }
 0x2b1   :  { %5300 = vpow2.f32 %v726_v39  ;;  %v4718_v62 = vadd.f32 -1.0, %v5291_v33 }
 0x2b2   :  { %v739_v43 = vmul.f32 1.6732632, %v4719_v40  ;;  %5302 = vpow2.f32 %v728_v41  ;;  %v79_v41 = vsel %vm77_vm9, 1.0, %v7350_v3  ;;  %vm2254_vm9 = vcmask 785408  }
 0x2b3   :  { %v5293_v53 = vpop.eup %5292  ;;  %v738_v44 = vmul.f32 1.6732632, %v4718_v62 }
 0x2b4   :  { %v5295_v45 = vpop.eup %5294  ;;  %v4721_v46 = vadd.f32 -1.0, %v5293_v53  ;;  %v747_v47 = vsel %vm699_vm14, %v691_v61, %v739_v43  ;;  %v786_v53 = vpop.permute.xlu1 %785 }
 0x2b5   :  { %v4720_v48 = vadd.f32 -1.0, %v5295_v45  ;;  %v746_v7 = vsel %vm698_vm15, %v5944_v17, %v738_v44  ;;  %v755_v0 = vmul.f32 1.050701, %v747_v47 }
 0x2b6   :  { %v741_v60 = vmul.f32 1.6732632, %v4721_v46  ;;  %v754_v11 = vmul.f32 1.050701, %v746_v7 }
 0x2b7   :  { %v5297_v22 = vpop.eup %5296  ;;  %v740_v13 = vmul.f32 1.6732632, %v4720_v48  ;;  %v763_v58 = vmul.f32 %v755_v0, %v5846_v57 }
 0x2b8   :  { %v5299_v49 = vpop.eup %5298  ;;  %v4722_v63 = vadd.f32 -1.0, %v5297_v22  ;;  %v749_v8 = vsel %vm701_vm0, %v693_v9, %v741_v60  ;;  %v762_v14 = vmul.f32 %v754_v11, %v5843_v1 }
 0x2b9   :  { %v4723_v10 = vadd.f32 -1.0, %v5299_v49  ;;  %v757_v5 = vmul.f32 1.050701, %v749_v8  ;;  %v748_v21 = vsel %vm700_vm1, %v692_v51, %v740_v13  ;;  %v791_v49 = vpop.permute.xlu0 %790 }
 0x2ba   :  { %v742_v2 = vmul.f32 1.6732632, %v4722_v63  ;;  %v756_v17 = vmul.f32 1.050701, %v748_v21 }
 0x2bb   :  { %v5301_v61 = vpop.eup %5300  ;;  %v743_v6 = vmul.f32 1.6732632, %v4723_v10  ;;  %v765_v12 = vmul.f32 %v757_v5, %v5846_v57 }
 0x2bc   :  { %v5303_v15 = vpop.eup %5302  ;;  %v750_v24 = vsel %vm702_vm2, %v694_v31, %v742_v2  ;;  %v4724_v42 = vadd.f32 -1.0, %v5301_v61  ;;  %v764_v16 = vmul.f32 %v756_v17, %v5843_v1  ;;  %v796_v61 = vpop.permute.xlu1 %795  ;;  %vm5488_vm2 = vmmov 0  }
 0x2bd   :  { %v751_v9 = vsel %vm703_vm3, %v5954_v20, %v743_v6  ;;  %v4725_v51 = vadd.f32 -1.0, %v5303_v15  ;;  %v5209_v18 = vpack.c.bf16 %v765_v12, %v763_v58  ;;  %v758_v50 = vmul.f32 1.050701, %v750_v24 }
 0x2be   :  { %v744_v19 = vmul.f32 1.6732632, %v4724_v42  ;;  %v5211_v52 = vpack.c.bf16 %v764_v16, %v762_v14  ;;  %v759_v31 = vmul.f32 1.050701, %v751_v9  ;;  %vm1946_vm3 = vcmp.ge.s32.totalorder %v5687_v35, 64 }
 0x2bf   :  { %v745_v34 = vmul.f32 1.6732632, %v4725_v51  ;;  %5210 = vmatprep.subr.bf16.mxu1 %v5209_v18  ;;  %v766_v59 = vmul.f32 %v758_v50, %v5843_v1 }
 0x2c0   :  { %v752_v23 = vsel %vm704_vm4, %v5958_v56, %v744_v19  ;;  %5212 = vmatpush1.bf16.msra.mxu1 %v5211_v52  ;;  %v767_v28 = vmul.f32 %v759_v31, %v5846_v57  ;;  %v770_v56 = vld [vmem:[%s7339_s7] sm:$0xff]  ;;  %vm1947_vm4 = vcmp.lt.s32.totalorder %v5687_v35, 96 }
 0x2c1   :  { %v753_v20 = vsel %vm705_vm5, %v5960_v36, %v745_v34  ;;  %v760_v26 = vmul.f32 1.050701, %v752_v23  ;;  %v773_v36 = vld [vmem:[%s7339_s7 + $0x18] sm:$0xff]  ;;  %vm6153_vm5 = vmand %vm1946_vm3, %vm1947_vm4 }
 0x2c2   :  { %v761_v25 = vmul.f32 1.050701, %v753_v20  ;;  %v915_v23 = vld [vmem:[%s7342_s10 + $0x18] sm:$0xff]  ;;  %v914_v20 = vld [vmem:[%s7342_s10 + $0x10] sm:$0xff] }
 0x2c3   :  { %v768_v27 = vmul.f32 %v760_v26, %v5843_v1  ;;  %v771_v1 = vld [vmem:[%s7339_s7 + $0x8] sm:$0xff]  ;;  %v5236_v26 = vld [vmem:[%s7343_s11] sm:$0xff]  }
 0x2c4   :  { %v769_v32 = vmul.f32 %v761_v25, %v5846_v57  ;;  %v772_v57 = vld [vmem:[%s7339_s7 + $0x10] sm:$0xff]  ;;  %4897 = vmatprep.subr.bf16.mxu0 %v5236_v26  ;;  %v5237_v25 = vld [vmem:[%s7343_s11 + $0x8] sm:$0xff]   ;;  %s5492_s7 = smov 32  }
 0x2c5   :  { %v5215_v29 = vpack.c.bf16 %v768_v27, %v766_v59  ;;  %4898 = vmatpush3.bf16.msra.mxu0 %v5236_v26  ;;  %v5238_v59 = vld [vmem:[%s7343_s11 + $0x10] sm:$0xff]   ;;  %v5239_v27 = vld [vmem:[%s7343_s11 + $0x18] sm:$0xff]  }
 0x2c6   :  { %v5213_v37 = vpack.c.bf16 %v769_v32, %v767_v28  ;;  %4899 = vmatprep.subr.bf16.mxu0 %v5237_v25  ;;  %v5240_v28 = vld [vmem:[%s7343_s11 + $0x20] sm:$0xff]   ;;  %v5241_v32 = vld [vmem:[%s7343_s11 + $0x28] sm:$0xff]  }
 0x2c8   :  { %5214 = vmatprep.subr.bf16.mxu1 %v5213_v37  ;;  %v5243_v37 = vld [vmem:[%s7343_s11 + $0x38] sm:$0xff]  }
 0x2c9   :  { %5216 = vmatpush1.bf16.msra.mxu1 %v5215_v29  ;;  %4900 = vmatpush3.bf16.msra.mxu0 %v5237_v25  ;;  %v5242_v29 = vld [vmem:[%s7343_s11 + $0x30] sm:$0xff]  }
 0x2ca   :  { %4917 = vmatprep.subr.bf16.mxu1 %v5236_v26  ;;  %4901 = vmatprep.subr.bf16.mxu0 %v5238_v59 }
 0x2cc   :  { %4726 = vmatmul.mubr.msk.f32.vlgmr.msra.gmra.mrb[8].mxu1 %vm798_vm6, %v770_v56  ;;  %v979_v56 = vpop.permute.xlu1 %978 }
 0x2cd   :  { %881 = vmatprep.mubr.f32.mxu1 %v7350_v3  ;;  %4918 = vmatpush3.bf16.msra.mxu1 %v5236_v26 }
 0x2ce   :  { %4919 = vmatprep.subr.bf16.mxu1 %v5237_v25  ;;  %4902 = vmatpush3.bf16.msra.mxu0 %v5238_v59 }
 0x2cf   :  { %4903 = vmatprep.subr.bf16.mxu0 %v5239_v27 }
 0x2d0   :  { %4727 = vmatmul.mubr.msk.f32.gmra.mrb[10].mxu1 %vm798_vm6, %v771_v1  ;;  %v6075_v1 = vpop.permute.xlu1 %988 }
 0x2d1   :  { %887 = vmatprep.mubr.f32.mxu1 %v7350_v3  ;;  %4920 = vmatpush3.bf16.msra.mxu1 %v5237_v25 }
 0x2d2   :  { %4921 = vmatprep.subr.bf16.mxu1 %v5238_v59  ;;  %4904 = vmatpush3.bf16.msra.mxu0 %v5239_v27 }
 0x2d3   :  { %4905 = vmatprep.subr.bf16.mxu0 %v5240_v28 }
 0x2d4   :  { %4728 = vmatmul.mubr.msk.f32.gmra.mrb[12].mxu1 %vm798_vm6, %v772_v57  ;;  %v984_v57 = vpop.permute.xlu0 %983 }
 0x2d5   :  { %893 = vmatprep.mubr.f32.mxu1 %v7350_v3  ;;  %4922 = vmatpush3.bf16.msra.mxu1 %v5238_v59 }
 0x2d6   :  { %4923 = vmatprep.subr.bf16.mxu1 %v5239_v27  ;;  %4906 = vmatpush3.bf16.msra.mxu0 %v5240_v28 }
 0x2d7   :  { %4907 = vmatprep.subr.bf16.mxu0 %v5241_v32 }
 0x2d8   :  { %4729 = vmatmul.mubr.msk.f32.gmra.mrb[14].mxu1 %vm798_vm6, %v773_v36  ;;  %v6077_v36 = vpop.permute.xlu1 %993 }
 0x2d9   :  { %4924 = vmatpush3.bf16.msra.mxu1 %v5239_v27 }
 0x2da   :  { %4925 = vmatprep.subr.bf16.mxu1 %v5240_v28  ;;  %4908 = vmatpush3.bf16.msra.mxu0 %v5241_v32 }
 0x2db   :  { %4909 = vmatprep.subr.bf16.mxu0 %v5242_v29 }
 0x2dd   :  { %4926 = vmatpush3.bf16.msra.mxu1 %v5240_v28 }
 0x2de   :  { %4927 = vmatprep.subr.bf16.mxu1 %v5241_v32  ;;  %4910 = vmatpush3.bf16.msra.mxu0 %v5242_v29 }
 0x2df   :  { %4911 = vmatprep.subr.bf16.mxu0 %v5243_v37 }
 0x2e1   :  { %4928 = vmatpush3.bf16.msra.mxu1 %v5241_v32 }
 0x2e2   :  { %4929 = vmatprep.subr.bf16.mxu1 %v5242_v29  ;;  %4912 = vmatpush3.bf16.msra.mxu0 %v5243_v37 }
 0x2e3   :  { %4937 = vmatprep.subr.bf16.mxu0 %v7350_v3 }
 0x2e5   :  { %4930 = vmatpush3.bf16.msra.mxu1 %v5242_v29 }
 0x2e6   :  { %4931 = vmatprep.subr.bf16.mxu1 %v5243_v37 }
 0x2e9   :  { %4932 = vmatpush3.bf16.msra.mxu1 %v5243_v37 }
 0x2ea   :  { %4985 = vmatprep.subr.bf16.mxu1 %v7350_v3 }
 0x39f   :  { %v877_v39 = vpop.f32.mrb[8].mxu1 }
 0x3a0   :  { %v878_v40 = vadd.f32 %v877_v39, %v781_v55  ;;  %v879_v33 = vpop.f32.mrb[9].mxu1 }
 0x3a1   :  { %v880_v43 = vadd.f32 %v879_v33, %v781_v55  ;;  %v1023_v55 = vpop.permute.xlu0 %1022 }
 0x3a2   :  { %v6003_v62 = vmul.f32 %v878_v40, %v78_v38 }
 0x3a3   :  { %v6005_v44 = vmul.f32 %v880_v43, %v79_v41  ;;  %v883_v45 = vpop.f32.mrb[10].mxu1 }
 0x3a4   :  { %v884_v46 = vadd.f32 %v883_v45, %v786_v53  ;;  %v885_v47 = vpop.f32.mrb[11].mxu1  ;;  %v928_v54 = vmul.f32 %v6003_v62, %v6003_v62 }
 0x3a5   :  { %v886_v48 = vadd.f32 %v885_v47, %v786_v53  ;;  %v916_v7 = vadd.f32 %v6005_v44, %v6003_v62  ;;  %v929_v22 = vmul.f32 %v6005_v44, %v6005_v44 }
 0x3a6   :  { %v6013_v60 = vmul.f32 %v884_v46, %v78_v38 }
 0x3a7   :  { %v6015_v63 = vmul.f32 %v886_v48, %v79_v41  ;;  %v889_v0 = vpop.f32.mrb[12].mxu1  ;;  %917 = vadd.xlane.f32.xlu0 %v916_v7  ;;  %v936_v13 = vadd.f32 %v929_v22, %v928_v54 }
 0x3a8   :  { %v890_v10 = vadd.f32 %v889_v0, %v791_v49  ;;  %v891_v8 = vpop.f32.mrb[13].mxu1  ;;  %v930_v11 = vmul.f32 %v6013_v60, %v6013_v60 }
 0x3a9   :  { %v892_v2 = vadd.f32 %v891_v8, %v791_v49  ;;  %937 = vadd.xlane.f32.xlu1 %v936_v13  ;;  %v931_v5 = vmul.f32 %v6015_v63, %v6015_v63  ;;  %v919_v15 = vadd.f32 %v6015_v63, %v6013_v60 }
 0x3aa   :  { %v6021_v21 = vmul.f32 %v890_v10, %v78_v38 }
 0x3ab   :  { %v6023_v6 = vmul.f32 %v892_v2, %v79_v41  ;;  %v895_v17 = vpop.f32.mrb[14].mxu1  ;;  %v939_v24 = vadd.f32 %v931_v5, %v930_v11 }
 0x3ac   :  { %v896_v58 = vadd.f32 %v895_v17, %v796_v61  ;;  %v897_v12 = vpop.f32.mrb[15].mxu1  ;;  %v932_v42 = vmul.f32 %v6021_v21, %v6021_v21 }
 0x3ad   :  { %v898_v9 = vadd.f32 %v897_v12, %v796_v61  ;;  %920 = vadd.xlane.f32.xlu1 %v919_v15  ;;  %940 = vadd.xlane.f32.xlu0 %v939_v24  ;;  %v933_v14 = vmul.f32 %v6023_v6, %v6023_v6  ;;  %v922_v19 = vadd.f32 %v6023_v6, %v6021_v21 }
 0x3ae   :  { %v6031_v16 = vmul.f32 %v896_v58, %v78_v38  ;;  %v1028_v38 = vpop.permute.xlu1 %1027 }
 0x3af   :  { %v6033_v51 = vmul.f32 %v898_v9, %v79_v41  ;;  %v942_v18 = vadd.f32 %v933_v14, %v932_v42 }
 0x3b0   :  { %v934_v52 = vmul.f32 %v6031_v16, %v6031_v16 }
 0x3b1   :  { %943 = vadd.xlane.f32.xlu1 %v942_v18  ;;  %923 = vadd.xlane.f32.xlu0 %v922_v19  ;;  %v925_v50 = vadd.f32 %v6033_v51, %v6031_v16  ;;  %v935_v34 = vmul.f32 %v6033_v51, %v6033_v51 }
 0x3b3   :  { %v945_v31 = vadd.f32 %v935_v34, %v934_v52 }
 0x3b5   :  { %926 = vadd.xlane.f32.xlu0 %v925_v50 }
 0x3b9   :  { %946 = vadd.xlane.f32.xlu0 %v945_v31 }
 0x3c2   :  { %1037 = vperm.xlu1 %5235, %v915_v23  }
 0x3cf   :  { %1032 = vperm.xlu0 %5234, %v914_v20  }
 0x434   :  { %v918_v39 = vpop.xlane.xlu0 %917 }
 0x435   :  { %v948_v40 = vmul.f32 0.00877193, %v918_v39 }
 0x436   :  { %v938_v41 = vpop.xlane.xlu1 %937 }
 0x437   :  { %v952_v33 = vmul.f32 0.00877193, %v938_v41  ;;  %v956_v43 = vmul.f32 %v948_v40, %v948_v40  ;;  %v968_v15 = vsub.f32 %v6003_v62, %v948_v40  ;;  %v969_v24 = vsub.f32 %v6005_v44, %v948_v40 }
 0x439   :  { %v960_v53 = vsub.f32 %v952_v33, %v956_v43  ;;  %v996_v18 = vmul.f32 %v979_v56, %v968_v15  ;;  %v997_v19 = vmul.f32 %v979_v56, %v969_v24 }
 0x43a   :  { %v921_v45 = vpop.xlane.xlu1 %920  ;;  %v941_v46 = vpop.xlane.xlu0 %940 }
 0x43b   :  { %v964_v47 = vmax.f32 %v960_v53, 0.0  ;;  %v949_v54 = vmul.f32 0.00877193, %v921_v45  ;;  %v953_v22 = vmul.f32 0.00877193, %v941_v46 }
 0x43d   :  { %v1004_v48 = vadd.f32 1e-05, %v964_v47  ;;  %v957_v7 = vmul.f32 %v949_v54, %v949_v54  ;;  %v970_v34 = vsub.f32 %v6013_v60, %v949_v54  ;;  %v971_v23 = vsub.f32 %v6015_v63, %v949_v54 }
 0x43e   :  { %v924_v49 = vpop.xlane.xlu0 %923  ;;  %v944_v13 = vpop.xlane.xlu1 %943 }
 0x43f   :  { %5304 = vrsqrt.f32 %v1004_v48  ;;  %v961_v0 = vsub.f32 %v953_v22, %v957_v7  ;;  %v950_v10 = vmul.f32 0.00877193, %v924_v49  ;;  %v954_v11 = vmul.f32 0.00877193, %v944_v13 }
 0x440   :  { %v998_v27 = vmul.f32 %v984_v57, %v970_v34  ;;  %v999_v28 = vmul.f32 %v984_v57, %v971_v23 }
 0x441   :  { %v965_v8 = vmax.f32 %v961_v0, 0.0  ;;  %v958_v2 = vmul.f32 %v950_v10, %v950_v10  ;;  %v972_v60 = vsub.f32 %v6021_v21, %v950_v10  ;;  %v973_v63 = vsub.f32 %v6023_v6, %v950_v10 }
 0x442   :  { %v927_v5 = vpop.xlane.xlu0 %926 }
 0x443   :  { %v1005_v61 = vadd.f32 1e-05, %v965_v8  ;;  %v951_v17 = vmul.f32 0.00877193, %v927_v5  ;;  %v962_v58 = vsub.f32 %v954_v11, %v958_v2  ;;  %v1000_v57 = vmul.f32 %v6075_v1, %v972_v60  ;;  %v1038_v11 = vpop.permute.xlu1 %1037 }
 0x444   :  { %v1001_v43 = vmul.f32 %v6075_v1, %v973_v63 }
 0x445   :  { %5306 = vrsqrt.f32 %v1005_v61  ;;  %v966_v12 = vmax.f32 %v962_v58, 0.0  ;;  %v959_v9 = vmul.f32 %v951_v17, %v951_v17  ;;  %v974_v45 = vsub.f32 %v6031_v16, %v951_v17 }
 0x446   :  { %v947_v42 = vpop.xlane.xlu0 %946  ;;  %v975_v21 = vsub.f32 %v6033_v51, %v951_v17 }
 0x447   :  { %v955_v14 = vmul.f32 0.00877193, %v947_v42  ;;  %v1006_v50 = vadd.f32 1e-05, %v966_v12  ;;  %v1002_v1 = vmul.f32 %v6077_v36, %v974_v45 }
 0x448   :  { %v1003_v0 = vmul.f32 %v6077_v36, %v975_v21 }
 0x449   :  { %v5305_v52 = vpop.eup %5304  ;;  %v963_v31 = vsub.f32 %v955_v14, %v959_v9  ;;  %5308 = vrsqrt.f32 %v1006_v50 }
 0x44a   :  { %v1012_v20 = vmul.f32 %v5305_v52, %v996_v18  ;;  %v1013_v62 = vmul.f32 %v5305_v52, %v997_v19 }
 0x44b   :  { %v967_v26 = vmax.f32 %v963_v31, 0.0 }
 0x44c   :  { %v6083_v44 = vadd.f32 %v1023_v55, %v1012_v20  ;;  %v6085_v25 = vadd.f32 %v1023_v55, %v1013_v62 }
 0x44d   :  { %v1007_v59 = vadd.f32 1e-05, %v967_v26 }
 0x44e   :  { %v1056_v32 = vmin.f32 %v6083_v44, 0.0  ;;  %v1057_v29 = vmin.f32 %v6085_v25, 0.0  ;;  %v1033_v48 = vpop.permute.xlu0 %1032  ;;  %vm1048_vm10 = vcmp.gt.f32.partialorder %v6083_v44, 0.0  ;;  %vm1049_vm12 = vcmp.gt.f32.partialorder %v6085_v25, 0.0 }
 0x44f   :  { %v5307_v37 = vpop.eup %5306  ;;  %5310 = vrsqrt.f32 %v1007_v59 }
 0x450   :  { %v1014_v56 = vmul.f32 %v5307_v37, %v998_v27  ;;  %v1064_v39 = vmul.f32 1.442695, %v1056_v32  ;;  %v1015_v40 = vmul.f32 %v5307_v37, %v999_v28  ;;  %v1066_v41 = vmul.f32 1.442695, %v1057_v29 }
 0x452   :  { %v1042_v33 = vadd.f32 %v1028_v38, %v1014_v56  ;;  %5312 = vpow2.f32 %v1064_v39  ;;  %v6091_v55 = vadd.f32 %v1028_v38, %v1015_v40 }
 0x453   :  { %5314 = vpow2.f32 %v1066_v41  ;;  %v5309_v53 = vpop.eup %5308 }
 0x454   :  { %v1058_v6 = vmin.f32 %v1042_v33, 0.0  ;;  %v1059_v46 = vmin.f32 %v6091_v55, 0.0  ;;  %v1016_v47 = vmul.f32 %v5309_v53, %v1000_v57  ;;  %v1017_v54 = vmul.f32 %v5309_v53, %v1001_v43 }
 0x455   :  { %vm1050_vm11 = vcmp.gt.f32.partialorder %v1042_v33, 0.0  ;;  %vm1051_vm13 = vcmp.gt.f32.partialorder %v6091_v55, 0.0 }
 0x456   :  { %v1068_v7 = vmul.f32 1.442695, %v1058_v6  ;;  %v1070_v22 = vmul.f32 1.442695, %v1059_v46  ;;  %v6098_v38 = vadd.f32 %v1033_v48, %v1016_v47  ;;  %v6100_v49 = vadd.f32 %v1033_v48, %v1017_v54 }
 0x458   :  { %5316 = vpow2.f32 %v1068_v7  ;;  %v1060_v51 = vmin.f32 %v6098_v38, 0.0  ;;  %v1061_v13 = vmin.f32 %v6100_v49, 0.0  ;;  %vm1052_vm14 = vcmp.gt.f32.partialorder %v6098_v38, 0.0 }
 0x459   :  { %v5311_v16 = vpop.eup %5310  ;;  %5318 = vpow2.f32 %v1070_v22  ;;  %vm1053_vm15 = vcmp.gt.f32.partialorder %v6100_v49, 0.0 }
 0x45a   :  { %v1018_v10 = vmul.f32 %v5311_v16, %v1002_v1  ;;  %v1019_v8 = vmul.f32 %v5311_v16, %v1003_v0  ;;  %v1072_v2 = vmul.f32 1.442695, %v1060_v51  ;;  %v1074_v5 = vmul.f32 1.442695, %v1061_v13  ;;  %v6119_v1 = vld [vmem:[%s7344_s12] sm:$0xff]  }
 0x45c   :  { %v5313_v61 = vpop.eup %5312  ;;  %v1046_v17 = vadd.f32 %v1038_v11, %v1018_v10  ;;  %v1047_v15 = vadd.f32 %v1038_v11, %v1019_v8  ;;  %5320 = vpow2.f32 %v1072_v2  ;;  %v6146_v10 = vshrl.u32 %v55_v30, 7 }
 0x45d   :  { %v5315_v24 = vpop.eup %5314  ;;  %v4730_v58 = vadd.f32 -1.0, %v5313_v61  ;;  %5322 = vpow2.f32 %v1074_v5 }
 0x45e   :  { %v1062_v12 = vmin.f32 %v1046_v17, 0.0  ;;  %v1063_v36 = vmin.f32 %v1047_v15, 0.0  ;;  %v4731_v42 = vadd.f32 -1.0, %v5315_v24  ;;  %vm1054_vm0 = vcmp.gt.f32.partialorder %v1046_v17, 0.0 }
 0x45f   :  { %v1088_v18 = vmul.f32 1.6732632, %v4730_v58  ;;  %vm1055_vm1 = vcmp.gt.f32.partialorder %v1047_v15, 0.0  ;;  %v6158_v2 = vsub.s32 0, %v6146_v10 }
 0x460   :  { %v1076_v9 = vmul.f32 1.442695, %v1062_v12  ;;  %v1078_v14 = vmul.f32 1.442695, %v1063_v36  ;;  %v1089_v52 = vmul.f32 1.6732632, %v4731_v42 }
 0x461   :  { %v1096_v23 = vsel %vm1048_vm10, %v6083_v44, %v1088_v18  ;;  %v5490_v36 = vmov 0.5  }
 0x462   :  { %v5317_v19 = vpop.eup %5316  ;;  %5324 = vpow2.f32 %v1076_v9  ;;  %v1097_v27 = vsel %vm1049_vm12, %v6085_v25, %v1089_v52  ;;  %v1104_v32 = vmul.f32 1.050701, %v1096_v23  ;;  %v6164_v42 = vsel %vm6153_vm5, 1.0, %v5490_v36 }
 0x463   :  { %5326 = vpow2.f32 %v1078_v14  ;;  %v4732_v50 = vadd.f32 -1.0, %v5317_v19  ;;  %v5319_v34 = vpop.eup %5318  ;;  %v1105_v44 = vmul.f32 1.050701, %v1097_v27 }
 0x464   :  { %v4733_v20 = vadd.f32 -1.0, %v5319_v34 }
 0x465   :  { %v1090_v31 = vmul.f32 1.6732632, %v4732_v50 }
 0x466   :  { %v5321_v62 = vpop.eup %5320  ;;  %v1091_v59 = vmul.f32 1.6732632, %v4733_v20 }
 0x467   :  { %v1098_v26 = vsel %vm1050_vm11, %v1042_v33, %v1090_v31  ;;  %v4734_v28 = vadd.f32 -1.0, %v5321_v62  ;;  %v5323_v37 = vpop.eup %5322 }
 0x468   :  { %v1106_v29 = vmul.f32 1.050701, %v1098_v26  ;;  %v1099_v60 = vsel %vm1051_vm13, %v6091_v55, %v1091_v59  ;;  %v4735_v63 = vadd.f32 -1.0, %v5323_v37 }
 0x469   :  { %v1107_v39 = vmul.f32 1.050701, %v1099_v60  ;;  %v1092_v40 = vmul.f32 1.6732632, %v4734_v28 }
 0x46a   :  { %v1132_v56 = vpack.c.bf16 %v1106_v29, %v1104_v32  ;;  %v1093_v57 = vmul.f32 1.6732632, %v4735_v63 }
 0x46b   :  { %v1231_v33 = vpack.c.bf16 %v1107_v39, %v1105_v44  ;;  %v1100_v55 = vsel %vm1052_vm14, %v6098_v38, %v1092_v40  ;;  %v6125_v38 = vld [vmem:[%s7344_s12 + $0x8] sm:$0xff]  }
 0x46c   :  { %v5325_v41 = vpop.eup %5324  ;;  %4913 = vmatprep.mubr.bf16.mxu0 %v1132_v56  ;;  %v1101_v6 = vsel %vm1053_vm15, %v6100_v49, %v1093_v57  ;;  %v1108_v48 = vmul.f32 1.050701, %v1100_v55  ;;  %v5489_v49 = vmov 1966171168  }
 0x46d   :  { %v5327_v43 = vpop.eup %5326  ;;  %v4736_v53 = vadd.f32 -1.0, %v5325_v41  ;;  %4933 = vmatprep.mubr.bf16.mxu1 %v1231_v33  ;;  %v1109_v22 = vmul.f32 1.050701, %v1101_v6  ;;  %v1288_v51 = vunpack.c.l.s4 %v5489_v49 }
 0x46e   :  { %v4737_v25 = vadd.f32 -1.0, %v5327_v43 }
 0x46f   :  { %v1094_v45 = vmul.f32 1.6732632, %v4736_v53  ;;  %v1289_v13 = vunpack.c.0.s8 %v1288_v51 }
 0x470   :  { %v1095_v21 = vmul.f32 1.6732632, %v4737_v25 }
 0x471   :  { %v1102_v46 = vsel %vm1054_vm0, %v1046_v17, %v1094_v45 }
 0x472   :  { %v1103_v47 = vsel %vm1055_vm1, %v1047_v15, %v1095_v21  ;;  %v1110_v54 = vmul.f32 1.050701, %v1102_v46 }
 0x473   :  { %v1111_v7 = vmul.f32 1.050701, %v1103_v47 }
 0x474   :  { %v1133_v0 = vpack.c.bf16 %v1110_v54, %v1108_v48 }
 0x475   :  { %v1232_v16 = vpack.c.bf16 %v1111_v7, %v1109_v22 }
 0x476   :  { %4914 = vmatmul.mubr.bf16.vlgmr.msra.gmra.mrb[16].mxu0 %v1133_v0 }
 0x477   :  { %4934 = vmatmul.mubr.bf16.vlgmr.msra.gmra.mrb[16].mxu1 %v1232_v16  ;;  %4938 = vmatpush3.bf16.msra.mxu0 %v6119_v1 }
 0x478   :  { %4939 = vmatprep.subr.bf16.mxu0 %v7350_v3  ;;  %4941 = vmatprep.mubr.msk.bf16.mxu0 %vm5488_vm2, %v7350_v3 }
 0x479   :  { %4986 = vmatpush3.bf16.msra.mxu1 %v6119_v1  ;;  %4989 = vmatprep.mubr.msk.bf16.mxu1 %vm5488_vm2, %v7350_v3 }
 0x47a   :  { %4987 = vmatprep.subr.bf16.mxu1 %v7350_v3 }
 0x47b   :  { %4940 = vmatpush3.bf16.msra.mxu0 %v6125_v38 }
 0x47c   :  { %4945 = vmatprep.subr.bf16.mxu0 %v7350_v3 }
 0x47d   :  { %4988 = vmatpush3.bf16.msra.mxu1 %v6125_v38 }
 0x47e   :  { %4942 = vmatmul.mubr.bf16.vlgmr.msra.gmra.mrb[20].mxu0 %v5487_v4  ;;  %5001 = vmatprep.subr.bf16.mxu1 %v7350_v3  ;;  %v6151_v4 = vsub.s32 %v1289_v13, %v6146_v10 }
 0x47f   :  { %4946 = vmatpush3.bf16.msra.mxu0 %v6119_v1  ;;  %4949 = vmatprep.mubr.msk.bf16.mxu0 %vm5488_vm2, %v7350_v3 }
 0x480   :  { %4947 = vmatprep.subr.bf16.mxu0 %v7350_v3 }
 0x483   :  { %4948 = vmatpush3.bf16.msra.mxu0 %v6125_v38 }
 0x484   :  { %4953 = vmatprep.subr.bf16.mxu0 %v7350_v3 }
 0x549   :  { %v4915_v11 = vpop.f32.mrb[16].mxu0 }
 0x54a   :  { %v1384_v5 = vcombine.high %v4915_v11, %v4915_v11  ;;  %v1391_v61 = vrot.slane %v4915_v11, %v6151_v4  ;;  %v4935_v30 = vpop.f32.mrb[16].mxu1  ;;  %v1216_v17 = vpop.f32.mrb[17].mxu0 }
 0x54b   :  { %v1616_v15 = vcombine.high %v4935_v30, %v4935_v30  ;;  %v1623_v24 = vrot.slane %v4935_v30, %v6151_v4  ;;  %v1286_v35 = vcombine.high %v1216_v17, %v1216_v17  ;;  %v1267_v58 = vpop.f32.mrb[17].mxu1  ;;  %v4916_v12 = vpop.f32.mrb[18].mxu0  ;;  %v1293_v19 = vrot.slane %v1216_v17, %v6151_v4 }
 0x54c   :  { %v1398_v9 = vrot.slane %v1384_v5, %v6151_v4  ;;  %v1399_v14 = vcombine.high %v1391_v61, %v1391_v61  ;;  %v6168_v18 = vrot.slane %v1391_v61, %v6151_v4  ;;  %v6171_v50 = vpop.f32.mrb[18].mxu1  ;;  %v6173_v52 = vpop.f32.mrb[19].mxu0  ;;  %v1518_v28 = vcombine.high %v1267_v58, %v1267_v58 }
 0x54d   :  { %v1630_v34 = vrot.slane %v1616_v15, %v6151_v4  ;;  %v1631_v31 = vcombine.high %v1623_v24, %v1623_v24  ;;  %v6177_v23 = vrot.slane %v1623_v24, %v6151_v4  ;;  %v1300_v20 = vrot.slane %v1286_v35, %v6151_v4  ;;  %v6180_v62 = vpop.f32.mrb[19].mxu1 }
 0x54e   :  { %v1400_v26 = vcombine.high %v1398_v9, %v1398_v9  ;;  %v6183_v59 = vrot.slane %v1398_v9, %v6151_v4  ;;  %v6186_v27 = vrot.slane %v1399_v14, %v6151_v4  ;;  %v1301_v45 = vcombine.high %v1293_v19, %v1293_v19 }
 0x54f   :  { %v1632_v32 = vcombine.high %v1630_v34, %v1630_v34  ;;  %v6189_v29 = vrot.slane %v1630_v34, %v6151_v4  ;;  %v6192_v37 = vrot.slane %v1631_v31, %v6151_v4  ;;  %v1661_v60 = vcombine.high %v6177_v23, %v6177_v23 }
 0x550   :  { %v6197_v63 = vrot.slane %v1400_v26, %v6151_v4  ;;  %v1302_v55 = vcombine.high %v1300_v20, %v1300_v20  ;;  %v6224_v46 = vrot.slane %v1293_v19, %v6151_v4  ;;  %v6227_v47 = vrot.slane %v1300_v20, %v6151_v4 }
 0x551   :  { %v6208_v41 = vrot.slane %v1632_v32, %v6151_v4  ;;  %v6214_v43 = vpop.f32.mrb[20].mxu0  ;;  %v6217_v53 = vrot.slane %v1661_v60, %v6158_v2  ;;  %v1525_v54 = vrot.slane %v1267_v58, %v6151_v4  ;;  %v6231_v7 = vrot.slane %v1301_v45, %v6151_v4 }
 0x552   :  { %v4943_v21 = vpop.f32.mrb[21].mxu0  ;;  %v6234_v22 = vrot.slane %v1302_v55, %v6151_v4  ;;  %v1532_v0 = vrot.slane %v1518_v28, %v6151_v4  ;;  %v1433_v16 = vcombine.high %v4916_v12, %v4916_v12  ;;  %v1331_v13 = vcombine.high %v6224_v46, %v6224_v46 }
 0x553   :  { %v2002_v48 = vpop.f32.mrb[22].mxu0  ;;  %v1533_v11 = vcombine.high %v1525_v54, %v1525_v54  ;;  %v6242_v5 = vrot.slane %v1525_v54, %v6151_v4  ;;  %v1440_v15 = vrot.slane %v4916_v12, %v6151_v4  ;;  %v1333_v24 = vcombine.high %v6231_v7, %v6231_v7 }
 0x554   :  { %v4944_v49 = vpop.f32.mrb[23].mxu0  ;;  %v1534_v30 = vcombine.high %v1532_v0, %v1532_v0  ;;  %v6247_v17 = vrot.slane %v1532_v0, %v6151_v4  ;;  %v1447_v36 = vrot.slane %v1433_v16, %v6151_v4  ;;  %v1665_v21 = vcombine.high %v6171_v50, %v6171_v50 }
 0x555   :  { %v6253_v35 = vrot.slane %v1533_v11, %v6151_v4  ;;  %v1563_v58 = vcombine.high %v6242_v5, %v6242_v5  ;;  %v1717_v14 = vrot.slane %v6242_v5, %v6158_v2  ;;  %v1448_v19 = vcombine.high %v1440_v15, %v1440_v15 }
 0x556   :  { %v6259_v9 = vrot.slane %v1534_v30, %v6151_v4  ;;  %v1733_v12 = vrot.slane %v6247_v17, %v6158_v2  ;;  %v1564_v34 = vcombine.high %v6247_v17, %v6247_v17  ;;  %v1449_v26 = vcombine.high %v1447_v36, %v1447_v36 }
 0x557   :  { %v1721_v31 = vrot.slane %v6253_v35, %v6158_v2  ;;  %v1725_v20 = vrot.slane %v1563_v58, %v6158_v2  ;;  %v1565_v28 = vcombine.high %v6253_v35, %v6253_v35  ;;  %v6273_v32 = vrot.slane %v1440_v15, %v6151_v4 }
 0x558   :  { %v6276_v60 = vrot.slane %v1447_v36, %v6151_v4  ;;  %v6279_v45 = vrot.slane %v1448_v19, %v6151_v4  ;;  %v6282_v55 = vrot.slane %v1449_v26, %v6151_v4  ;;  %v1672_v54 = vrot.slane %v6171_v50, %v6151_v4 }
 0x559   :  { %v1335_v48 = vcombine.high %v6173_v52, %v6173_v52  ;;  %v1342_v11 = vrot.slane %v6173_v52, %v6151_v4  ;;  %v1679_v5 = vrot.slane %v1665_v21, %v6151_v4  ;;  %v1567_v19 = vcombine.high %v6180_v62, %v6180_v62 }
 0x55a   :  { %v1680_v30 = vcombine.high %v1672_v54, %v1672_v54  ;;  %v6300_v50 = vrot.slane %v1672_v54, %v6151_v4  ;;  %v1574_v26 = vrot.slane %v6180_v62, %v6151_v4  ;;  %v1875_v57 = vsel %vm1874_vm8, %v6224_v46, %v1717_v14 }
 0x55b   :  { %v1349_v15 = vrot.slane %v1335_v48, %v6151_v4  ;;  %v1350_v58 = vcombine.high %v1342_v11, %v1342_v11  ;;  %v6304_v36 = vrot.slane %v1342_v11, %v6151_v4  ;;  %v1681_v3 = vcombine.high %v1679_v5, %v1679_v5 }
 0x55c   :  { %v6311_v52 = vrot.slane %v1679_v5, %v6151_v4  ;;  %v6314_v21 = vrot.slane %v1680_v30, %v6151_v4  ;;  %v1710_v54 = vcombine.high %v6300_v50, %v6300_v50  ;;  %v6348_v5 = vld [vmem:[%s7345_s13] ss:$0 sm:$0xff]  ;;  %v1582_v44 = vcombine.high %v1574_v26, %v1574_v26  ;;  %s5491_s13 = smov 64  }
 0x55d   :  { %v1351_v11 = vcombine.high %v1349_v15, %v1349_v15  ;;  %v6321_v49 = vrot.slane %v1349_v15, %v6151_v4  ;;  %v6324_v16 = vrot.slane %v1350_v58, %v6151_v4  ;;  %v6327_v62 = vrot.slane %v1681_v3, %v6151_v4 }
 0x55e   :  { %v6336_v48 = vrot.slane %v1710_v54, %v6158_v2  ;;  %v1380_v3 = vcombine.high %v6304_v36, %v6304_v36  ;;  %v1590_v51 = vrot.slane %v1574_v26, %v6151_v4  ;;  %v1876_v40 = vsel %vm1874_vm8, %v6231_v7, %v1721_v31 }
 0x55f   :  { %v6341_v58 = vrot.slane %v1351_v11, %v6151_v4  ;;  %v1381_v54 = vcombine.high %v6321_v49, %v6321_v49  ;;  %v1382_v15 = vcombine.high %v6324_v16, %v6324_v16  ;;  %v1581_v11 = vrot.slane %v1567_v19, %v6151_v4 }
 0x560   :  { %v1914_v6 = vadd.f32 %v6348_v5, %v1875_v57  ;;  %v6365_v56 = vadd.f32 %v6348_v5, %v1876_v40  ;;  %v1604_v33 = vrot.slane %v1582_v44, %v6151_v4  ;;  %v1612_v19 = vcombine.high %v1590_v51, %v1590_v51 }
 0x561   :  { %v1583_v25 = vcombine.high %v1581_v11, %v1581_v11  ;;  %v1597_v30 = vrot.slane %v1581_v11, %v6151_v4  ;;  %v1749_v39 = vrot.slane %v1590_v51, %v6158_v2  ;;  %v1877_v14 = vsel %vm1874_vm8, %v1331_v13, %v1725_v20 }
 0x562   :  { %v2005_v57 = vadd.f32 %v6214_v43, %v1914_v6  ;;  %v1614_v61 = vcombine.high %v1604_v33, %v1604_v33  ;;  %v1753_v40 = vrot.slane %v1604_v33, %v6158_v2  ;;  %v1757_v44 = vrot.slane %v1612_v19, %v6158_v2 }
 0x563   :  { %v1611_v31 = vrot.slane %v1583_v25, %v6151_v4  ;;  %v1613_v26 = vcombine.high %v1597_v30, %v1597_v30  ;;  %v1765_v11 = vrot.slane %v1597_v30, %v6158_v2  ;;  %v6379_v0 = vadd.f32 %v6348_v5, %v1877_v14 }
 0x564   :  { %v2006_v46 = vmul.f32 %v2005_v57, %v6164_v42  ;;  %v1729_v4 = vrot.slane %v1565_v28, %v6158_v2  ;;  %v1879_v43 = vsel %vm1874_vm8, %v6227_v47, %v1733_v12  ;;  %v1737_v25 = vrot.slane %v6259_v9, %v6158_v2 }
 0x565   :  { %v1615_v51 = vcombine.high %v1611_v31, %v1611_v31  ;;  %v6392_v33 = vadd.f32 %v6348_v5, %v1879_v43  ;;  %v1741_v6 = vrot.slane %v1564_v34, %v6158_v2  ;;  %v1334_v13 = vcombine.high %v6234_v22, %v6234_v22 }
 0x566   :  { %5328 = vtanh.f32 %v2006_v46  ;;  %v1878_v35 = vsel %vm1874_vm8, %v1333_v24, %v1729_v4  ;;  %v7356_v12 = vcombine.high %v6259_v9, %v6259_v9  ;;  %v1883_v28 = vsel %vm1874_vm8, %v6304_v36, %v1749_v39 }
 0x567   :  { %v6413_v17 = vadd.f32 %v6348_v5, %v1878_v35  ;;  %v1880_v34 = vsel %vm1874_vm8, %v6234_v22, %v1737_v25  ;;  %v7357_v30 = vcombine.high %v6227_v47, %v6227_v47  ;;  %v6422_v24 = vadd.f32 %v6348_v5, %v1883_v28 }
 0x568   :  { %v1745_v20 = vrot.slane %v7356_v12, %v6158_v2  ;;  %v6425_v9 = vadd.f32 %v6348_v5, %v1880_v34  ;;  %v1884_v36 = vsel %vm1874_vm8, %v6324_v16, %v1753_v40  ;;  %v1885_v14 = vsel %vm1874_vm8, %v1380_v3, %v1757_v44 }
 0x569   :  { %v1881_v7 = vsel %vm1874_vm8, %v7357_v30, %v1741_v6  ;;  %v6437_v47 = vadd.f32 %v6348_v5, %v1884_v36  ;;  %v1761_v57 = vrot.slane %v1614_v61, %v6158_v2  ;;  %v6442_v46 = vadd.f32 %v6348_v5, %v1885_v14 }
 0x56a   :  { %v6428_v19 = vadd.f32 %v6348_v5, %v1881_v7  ;;  %v1882_v39 = vsel %vm1874_vm8, %v1334_v13, %v1745_v20  ;;  %v1887_v4 = vsel %vm1874_vm8, %v6321_v49, %v1765_v11  ;;  %v1769_v43 = vrot.slane %v1611_v31, %v6158_v2 }
 0x56b   :  { %v6434_v22 = vadd.f32 %v6348_v5, %v1882_v39  ;;  %v1773_v16 = vrot.slane %v1613_v26, %v6158_v2  ;;  %v1886_v40 = vsel %vm1874_vm8, %v1382_v15, %v1761_v57  ;;  %v6450_v25 = vadd.f32 %v6348_v5, %v1887_v4 }
 0x56c   :  { %v1383_v3 = vcombine.high %v6341_v58, %v6341_v58  ;;  %v1777_v61 = vrot.slane %v1615_v51, %v6158_v2  ;;  %v6456_v44 = vadd.f32 %v6348_v5, %v1886_v40  ;;  %v1888_v49 = vsel %vm1874_vm8, %v6341_v58, %v1769_v43 }
 0x56d   :  { %v1889_v31 = vsel %vm1874_vm8, %v1381_v54, %v1773_v16  ;;  %v7358_v26 = vrot.slane %v6177_v23, %v6158_v2  ;;  %v6467_v11 = vadd.f32 %v6348_v5, %v1888_v49  ;;  %v7359_v23 = vrot.slane %v6192_v37, %v6158_v2 }
 0x56e   :  { %v6470_v6 = vadd.f32 %v6348_v5, %v1889_v31  ;;  %v1890_v51 = vsel %vm1874_vm8, %v1383_v3, %v1777_v61  ;;  %v7360_v35 = vcombine.high %v6168_v18, %v6168_v18  ;;  %v7361_v20 = vcombine.high %v6192_v37, %v6192_v37 }
 0x56f   :  { %v1891_v15 = vsel %vm1874_vm8, %v6168_v18, %v7358_v26  ;;  %v6477_v58 = vadd.f32 %v6348_v5, %v1890_v51  ;;  %v1892_v54 = vsel %vm1874_vm8, %v6186_v27, %v7359_v23  ;;  %v7362_v7 = vrot.slane %v6189_v29, %v6158_v2 }
 0x570   :  { %v6474_v13 = vadd.f32 %v6348_v5, %v1891_v15  ;;  %v1893_v12 = vsel %vm1874_vm8, %v7360_v35, %v6217_v53  ;;  %v1793_v28 = vrot.slane %v7361_v20, %v6158_v2  ;;  %v6494_v34 = vadd.f32 %v6348_v5, %v1892_v54  ;;  %v5329_v53 = vpop.eup %5328 }
 0x571   :  { %v6497_v30 = vadd.f32 %v6348_v5, %v1893_v12  ;;  %v1895_v39 = vsel %vm1874_vm8, %v6183_v59, %v7362_v7  ;;  %v1801_v18 = vrot.slane %v6208_v41, %v6158_v2  ;;  %v7363_v37 = vcombine.high %v6186_v27, %v6186_v27 }
 0x572   :  { %v6511_v14 = vadd.f32 %v6348_v5, %v1895_v39  ;;  %v7364_v57 = vcombine.high %v6189_v29, %v6189_v29  ;;  %v1432_v43 = vcombine.high %v6197_v63, %v6197_v63  ;;  %v2008_v16 = vadd.f32 1.0, %v5329_v53 }
 0x573   :  { %v1894_v36 = vsel %vm1874_vm8, %v7363_v37, %v1793_v28  ;;  %v1896_v27 = vsel %vm1874_vm8, %v6197_v63, %v1801_v18  ;;  %v7365_v3 = vcombine.high %v6208_v41, %v6208_v41  ;;  %v7366_v29 = vcombine.high %v6183_v59, %v6183_v59 }
 0x574   :  { %v1805_v4 = vrot.slane %v7364_v57, %v6158_v2  ;;  %v6520_v40 = vadd.f32 %v6348_v5, %v1894_v36  ;;  %v6529_v49 = vadd.f32 %v6348_v5, %v1896_v27  ;;  %v7367_v26 = vrot.slane %v6300_v50, %v6158_v2 }
 0x575   :  { %v1809_v61 = vrot.slane %v7365_v3, %v6158_v2  ;;  %v7368_v63 = vrot.slane %v6314_v21, %v6158_v2  ;;  %v2009_v51 = vmul.f32 0.5, %v2008_v16  ;;  %v7369_v12 = vcombine.high %v6273_v32, %v6273_v32 }
 0x576   :  { %v1897_v31 = vsel %vm1874_vm8, %v7366_v29, %v1805_v4  ;;  %v1899_v15 = vsel %vm1874_vm8, %v6273_v32, %v7367_v26  ;;  %v7370_v28 = vcombine.high %v6314_v21, %v6314_v21  ;;  %v7371_v37 = vrot.slane %v6311_v52, %v6158_v2 }
 0x577   :  { %v1900_v41 = vsel %vm1874_vm8, %v6279_v45, %v7368_v63  ;;  %v6546_v23 = vadd.f32 %v6348_v5, %v1897_v31  ;;  %v1898_v59 = vsel %vm1874_vm8, %v1432_v43, %v1809_v61  ;;  %v6550_v54 = vadd.f32 %v6348_v5, %v1899_v15 }
 0x578   :  { %v6553_v50 = vadd.f32 %v6348_v5, %v1898_v59  ;;  %v6556_v35 = vadd.f32 %v6348_v5, %v1900_v41  ;;  %v1901_v20 = vsel %vm1874_vm8, %v7369_v12, %v6336_v48  ;;  %v1825_v7 = vrot.slane %v7370_v28, %v6158_v2 }
 0x579   :  { %v2012_v39 = vsel %vm6153_vm5, %v5329_v53, %v2009_v51  ;;  %v6570_v18 = vadd.f32 %v6348_v5, %v1901_v20  ;;  %v1903_v36 = vsel %vm1874_vm8, %v6276_v60, %v7371_v37  ;;  %v1833_v32 = vrot.slane %v6327_v62, %v6158_v2 }
 0x57a   :  { %v1479_v48 = vcombine.high %v6276_v60, %v6276_v60  ;;  %2015 = vrot.lane.b32.xlu0 %v2012_v39, %s5491_s13  ;;  %v7372_v21 = vcombine.high %v6279_v45, %v6279_v45  ;;  %v6587_v57 = vadd.f32 %v6348_v5, %v1903_v36  ;;  %v7373_v4 = vcombine.high %v6311_v52, %v6311_v52 }
 0x57b   :  { %v1904_v60 = vsel %vm1874_vm8, %v6282_v55, %v1833_v32  ;;  %v1481_v27 = vcombine.high %v6282_v55, %v6282_v55  ;;  %v7374_v45 = vcombine.high %v6327_v62, %v6327_v62  ;;  %v2013_v62 = vmul.f32 0.0, %v2012_v39 }
 0x57c   :  { %v1902_v53 = vsel %vm1874_vm8, %v7372_v21, %v1825_v7  ;;  %v1837_v43 = vrot.slane %v7373_v4, %v6158_v2  ;;  %v6605_v61 = vadd.f32 %v6348_v5, %v1904_v60  ;;  %v7375_v20 = vmov 0.0  }
 0x57d   :  { %v6594_v16 = vadd.f32 %v6348_v5, %v1902_v53  ;;  %v1841_v3 = vrot.slane %v7374_v45, %v6158_v2 }
 0x57e   :  { %v1905_v52 = vsel %vm1874_vm8, %v1479_v48, %v1837_v43 }
 0x57f   :  { %v6609_v29 = vadd.f32 %v6348_v5, %v1905_v52  ;;  %v1906_v31 = vsel %vm1874_vm8, %v1481_v27, %v1841_v3 }
 0x580   :  { %v6613_v26 = vadd.f32 %v6348_v5, %v1906_v31 }
 0x5ec   :  { %v2016_v15 = vpop.permute.xlu0 %2015 }
 0x5ed   :  { %v2018_v55 = vmul.f32 %v2016_v15, %v2012_v39 }
 0x5ef   :  { %2020 = vrot.lane.b32.xlu1 %v2018_v55, %s5492_s7 }
 0x661   :  { %v2021_v2 = vpop.permute.xlu1 %2020 }
 0x662   :  { %v2023_v63 = vadd.f32 %v2021_v2, %v2013_v62 }
 0x664   :  { %5330 = vtanh.f32 %v2023_v63 }
 0x66e   :  { %v5331_v41 = vpop.eup %5330 }
 0x66f   :  { %2026 = vrot.lane.b32.xlu0 %v5331_v41, %s5491_s13 }
 0x6e1   :  { %v2027_v51 = vpop.permute.xlu0 %2026 }
 0x6e2   :  { %v6617_v59 = vmul.f32 %v2027_v51, %v2012_v39 }
 0x6e4   :  { %v2030_v12 = vpack.c.bf16 %v6617_v59, %v6617_v59 }
 0x6e6   :  { %2032 = vrot.lane.b32.xlu1 %v2030_v12, %s5492_s7 }
 0x758   :  { %v2033_v5 = vpop.permute.xlu1 %2032 }
 0x759   :  { %4950 = vmatmul.mubr.msk.bf16.vlgmr.msra.gmra.mrb[24].mxu0 %vm798_vm6, %v2033_v5 }
 0x75a   :  { %4954 = vmatpush3.bf16.msra.mxu0 %v6119_v1  ;;  %4957 = vmatprep.mubr.msk.bf16.mxu0 %vm5488_vm2, %v7375_v20 }
 0x75b   :  { %4955 = vmatprep.subr.bf16.mxu0 %v7375_v20 }
 0x75e   :  { %4956 = vmatpush3.bf16.msra.mxu0 %v6125_v38 }
 0x75f   :  { %4961 = vmatprep.subr.bf16.mxu0 %v7375_v20 }
 0x82c   :  { %v2071_v28 = vpop.f32.mrb[24].mxu0 }
 0x82d   :  { %v2077_v7 = vadd.f32 %v2071_v28, %v6365_v56  ;;  %v4951_v39 = vpop.f32.mrb[25].mxu0 }
 0x82e   :  { %v2074_v37 = vpop.f32.mrb[26].mxu0 }
 0x82f   :  { %v2078_v36 = vmul.f32 %v2077_v7, %v6164_v42  ;;  %v4952_v32 = vpop.f32.mrb[27].mxu0 }
 0x831   :  { %5332 = vtanh.f32 %v2078_v36 }
 0x83b   :  { %v5333_v48 = vpop.eup %5332 }
 0x83c   :  { %v2080_v21 = vadd.f32 1.0, %v5333_v48 }
 0x83e   :  { %v2081_v53 = vmul.f32 0.5, %v2080_v21 }
 0x840   :  { %v2082_v4 = vsel %vm6153_vm5, %v5333_v48, %v2081_v53 }
 0x841   :  { %2085 = vrot.lane.b32.xlu0 %v2082_v4, %s5491_s13  ;;  %v2083_v27 = vmul.f32 %v2082_v4, %v2023_v63 }
 0x8b3   :  { %v2086_v43 = vpop.permute.xlu0 %2085 }
 0x8b4   :  { %v2088_v60 = vmul.f32 %v2086_v43, %v2082_v4 }
 0x8b6   :  { %2090 = vrot.lane.b32.xlu1 %v2088_v60, %s5492_s7 }
 0x928   :  { %v2091_v56 = vpop.permute.xlu1 %2090 }
 0x929   :  { %v2093_v45 = vadd.f32 %v2091_v56, %v2083_v27 }
 0x92b   :  { %5334 = vtanh.f32 %v2093_v45 }
 0x935   :  { %v5335_v3 = vpop.eup %5334 }
 0x936   :  { %2096 = vrot.lane.b32.xlu0 %v5335_v3, %s5491_s13 }
 0x9a8   :  { %v2097_v52 = vpop.permute.xlu0 %2096 }
 0x9a9   :  { %v6636_v31 = vmul.f32 %v2097_v52, %v2082_v4 }
 0x9ab   :  { %v2100_v15 = vpack.c.bf16 %v6636_v31, %v6636_v31 }
 0x9ad   :  { %2102 = vrot.lane.b32.xlu1 %v2100_v15, %s5492_s7 }
 0xa1f   :  { %v2103_v55 = vpop.permute.xlu1 %2102 }
 0xa20   :  { %4958 = vmatmul.mubr.msk.bf16.vlgmr.msra.gmra.mrb[28].mxu0 %vm798_vm6, %v2103_v55 }
 0xa21   :  { %4962 = vmatpush3.bf16.msra.mxu0 %v6119_v1  ;;  %4965 = vmatprep.mubr.msk.bf16.mxu0 %vm5488_vm2, %v7375_v20 }
 0xa22   :  { %4963 = vmatprep.subr.bf16.mxu0 %v7375_v20 }
 0xa25   :  { %4964 = vmatpush3.bf16.msra.mxu0 %v6125_v38 }
 0xa26   :  { %4969 = vmatprep.subr.bf16.mxu0 %v7375_v20 }
 0xaf3   :  { %v2141_v62 = vpop.f32.mrb[28].mxu0 }
 0xaf4   :  { %v2147_v2 = vadd.f32 %v2141_v62, %v6379_v0  ;;  %v4959_v63 = vpop.f32.mrb[29].mxu0 }
 0xaf5   :  { %v2144_v41 = vpop.f32.mrb[30].mxu0 }
 0xaf6   :  { %v2148_v51 = vmul.f32 %v2147_v2, %v6164_v42  ;;  %v4960_v12 = vpop.f32.mrb[31].mxu0 }
 0xaf8   :  { %5336 = vtanh.f32 %v2148_v51 }
 0xb02   :  { %v5337_v5 = vpop.eup %5336 }
 0xb03   :  { %v2150_v28 = vadd.f32 1.0, %v5337_v5 }
 0xb05   :  { %v2151_v7 = vmul.f32 0.5, %v2150_v28 }
 0xb07   :  { %v2152_v39 = vsel %vm6153_vm5, %v5337_v5, %v2151_v7 }
 0xb08   :  { %2155 = vrot.lane.b32.xlu0 %v2152_v39, %s5491_s13  ;;  %v2153_v32 = vmul.f32 %v2152_v39, %v2093_v45 }
 0xb7a   :  { %v2156_v37 = vpop.permute.xlu0 %2155 }
 0xb7b   :  { %v2158_v36 = vmul.f32 %v2156_v37, %v2152_v39 }
 0xb7d   :  { %2160 = vrot.lane.b32.xlu1 %v2158_v36, %s5492_s7 }
 0xbef   :  { %v2161_v0 = vpop.permute.xlu1 %2160 }
 0xbf0   :  { %v2163_v48 = vadd.f32 %v2161_v0, %v2153_v32 }
 0xbf2   :  { %5338 = vtanh.f32 %v2163_v48 }
 0xbfc   :  { %v5339_v21 = vpop.eup %5338 }
 0xbfd   :  { %2166 = vrot.lane.b32.xlu0 %v5339_v21, %s5491_s13 }
 0xc6f   :  { %v2167_v53 = vpop.permute.xlu0 %2166 }
 0xc70   :  { %v6655_v4 = vmul.f32 %v2167_v53, %v2152_v39 }
 0xc72   :  { %v2170_v43 = vpack.c.bf16 %v6655_v4, %v6655_v4 }
 0xc74   :  { %2172 = vrot.lane.b32.xlu1 %v2170_v43, %s5492_s7 }
 0xce6   :  { %v2173_v60 = vpop.permute.xlu1 %2172 }
 0xce7   :  { %4966 = vmatmul.mubr.msk.bf16.vlgmr.msra.gmra.mrb[32].mxu0 %vm798_vm6, %v2173_v60 }
 0xce8   :  { %4970 = vmatpush3.bf16.msra.mxu0 %v6119_v1  ;;  %4973 = vmatprep.mubr.msk.bf16.mxu0 %vm5488_vm2, %v7375_v20 }
 0xce9   :  { %4971 = vmatprep.subr.bf16.mxu0 %v7375_v20 }
 0xcec   :  { %4972 = vmatpush3.bf16.msra.mxu0 %v6125_v38 }
 0xced   :  { %4977 = vmatprep.subr.bf16.mxu0 %v7375_v20 }
 0xdba   :  { %v2211_v27 = vpop.f32.mrb[32].mxu0 }
 0xdbb   :  { %v2217_v56 = vadd.f32 %v2211_v27, %v6413_v17  ;;  %v4967_v45 = vpop.f32.mrb[33].mxu0 }
 0xdbc   :  { %v2214_v3 = vpop.f32.mrb[34].mxu0 }
 0xdbd   :  { %v2218_v52 = vmul.f32 %v2217_v56, %v6164_v42  ;;  %v4968_v15 = vpop.f32.mrb[35].mxu0 }
 0xdbf   :  { %5340 = vtanh.f32 %v2218_v52 }
 0xdc9   :  { %v5341_v55 = vpop.eup %5340 }
 0xdca   :  { %v2220_v62 = vadd.f32 1.0, %v5341_v55 }
 0xdcc   :  { %v2221_v2 = vmul.f32 0.5, %v2220_v62 }
 0xdce   :  { %v2222_v63 = vsel %vm6153_vm5, %v5341_v55, %v2221_v2 }
 0xdcf   :  { %2225 = vrot.lane.b32.xlu0 %v2222_v63, %s5491_s13  ;;  %v2223_v12 = vmul.f32 %v2222_v63, %v2163_v48 }
 0xe41   :  { %v2226_v41 = vpop.permute.xlu0 %2225 }
 0xe42   :  { %v2228_v51 = vmul.f32 %v2226_v41, %v2222_v63 }
 0xe44   :  { %2230 = vrot.lane.b32.xlu1 %v2228_v51, %s5492_s7 }
 0xeb6   :  { %v2231_v17 = vpop.permute.xlu1 %2230 }
 0xeb7   :  { %v2233_v5 = vadd.f32 %v2231_v17, %v2223_v12 }
 0xeb9   :  { %5342 = vtanh.f32 %v2233_v5 }
 0xec3   :  { %v5343_v28 = vpop.eup %5342 }
 0xec4   :  { %2236 = vrot.lane.b32.xlu0 %v5343_v28, %s5491_s13 }
 0xf36   :  { %v2237_v7 = vpop.permute.xlu0 %2236 }
 0xf37   :  { %v6674_v39 = vmul.f32 %v2237_v7, %v2222_v63 }
 0xf39   :  { %v2257_v37 = vpack.c.bf16 %v6674_v39, %v6674_v39 }
 0xf3b   :  { %2259 = vrot.lane.b32.xlu1 %v2257_v37, %s5492_s7 }
 0xfad   :  { %v2260_v36 = vpop.permute.xlu1 %2259 }
 0xfae   :  { %4974 = vmatmul.mubr.msk.bf16.vlgmr.msra.gmra.mrb[36].mxu0 %vm798_vm6, %v2260_v36 }
 0xfaf   :  { %4978 = vmatpush3.bf16.msra.mxu0 %v6119_v1  ;;  %4981 = vmatprep.mubr.msk.bf16.mxu0 %vm5488_vm2, %v7375_v20 }
 0xfb0   :  { %4979 = vmatprep.subr.bf16.mxu0 %v7375_v20 }
 0xfb3   :  { %4980 = vmatpush3.bf16.msra.mxu0 %v6125_v38 }
 0xfb4   :  { %4993 = vmatprep.subr.bf16.mxu0 %v7375_v20 }
0x1081   :  { %v2298_v32 = vpop.f32.mrb[36].mxu0 }
0x1082   :  { %v2304_v0 = vadd.f32 %v2298_v32, %v6392_v33  ;;  %v4975_v48 = vpop.f32.mrb[37].mxu0 }
0x1083   :  { %v2301_v21 = vpop.f32.mrb[38].mxu0 }
0x1084   :  { %v2305_v53 = vmul.f32 %v2304_v0, %v6164_v42  ;;  %v4976_v43 = vpop.f32.mrb[39].mxu0 }
0x1086   :  { %5344 = vtanh.f32 %v2305_v53 }
0x1090   :  { %v5345_v60 = vpop.eup %5344 }
0x1091   :  { %v2307_v27 = vadd.f32 1.0, %v5345_v60 }
0x1093   :  { %v2308_v56 = vmul.f32 0.5, %v2307_v27 }
0x1095   :  { %v2309_v45 = vsel %vm6153_vm5, %v5345_v60, %v2308_v56 }
0x1096   :  { %2312 = vrot.lane.b32.xlu0 %v2309_v45, %s5491_s13  ;;  %v2310_v15 = vmul.f32 %v2309_v45, %v2233_v5 }
0x1108   :  { %v2313_v3 = vpop.permute.xlu0 %2312 }
0x1109   :  { %v2315_v52 = vmul.f32 %v2313_v3, %v2309_v45 }
0x110b   :  { %2317 = vrot.lane.b32.xlu1 %v2315_v52, %s5492_s7 }
0x117d   :  { %v2318_v33 = vpop.permute.xlu1 %2317 }
0x117e   :  { %v2320_v55 = vadd.f32 %v2318_v33, %v2310_v15 }
0x1180   :  { %5346 = vtanh.f32 %v2320_v55 }
0x118a   :  { %v5347_v62 = vpop.eup %5346 }
0x118b   :  { %2323 = vrot.lane.b32.xlu0 %v5347_v62, %s5491_s13 }
0x11fd   :  { %v2324_v2 = vpop.permute.xlu0 %2323 }
0x11fe   :  { %v6693_v63 = vmul.f32 %v2324_v2, %v2309_v45 }
0x1200   :  { %v2327_v41 = vpack.c.bf16 %v6693_v63, %v6693_v63 }
0x1202   :  { %2329 = vrot.lane.b32.xlu1 %v2327_v41, %s5492_s7 }
0x1274   :  { %v2330_v51 = vpop.permute.xlu1 %2329 }
0x1275   :  { %4982 = vmatmul.mubr.msk.bf16.vlgmr.msra.gmra.mrb[40].mxu0 %vm798_vm6, %v2330_v51 }
0x1276   :  { %4994 = vmatpush3.bf16.msra.mxu0 %v6119_v1  ;;  %4997 = vmatprep.mubr.msk.bf16.mxu0 %vm5488_vm2, %v7375_v20 }
0x1277   :  { %4995 = vmatprep.subr.bf16.mxu0 %v7375_v20 }
0x127a   :  { %4996 = vmatpush3.bf16.msra.mxu0 %v6125_v38 }
0x127b   :  { %5009 = vmatprep.subr.bf16.mxu0 %v7375_v20 }
0x1348   :  { %v2368_v12 = vpop.f32.mrb[40].mxu0 }
0x1349   :  { %v2374_v17 = vadd.f32 %v2368_v12, %v6425_v9  ;;  %v4983_v5 = vpop.f32.mrb[41].mxu0 }
0x134a   :  { %v2371_v28 = vpop.f32.mrb[42].mxu0 }
0x134b   :  { %v2375_v7 = vmul.f32 %v2374_v17, %v6164_v42  ;;  %v4984_v37 = vpop.f32.mrb[43].mxu0 }
0x134d   :  { %5348 = vtanh.f32 %v2375_v7 }
0x1357   :  { %v5349_v36 = vpop.eup %5348 }
0x1358   :  { %v2377_v32 = vadd.f32 1.0, %v5349_v36 }
0x135a   :  { %v2378_v0 = vmul.f32 0.5, %v2377_v32 }
0x135c   :  { %v2379_v48 = vsel %vm6153_vm5, %v5349_v36, %v2378_v0 }
0x135d   :  { %2382 = vrot.lane.b32.xlu0 %v2379_v48, %s5491_s13  ;;  %v2380_v43 = vmul.f32 %v2379_v48, %v2320_v55 }
0x13cf   :  { %v2383_v21 = vpop.permute.xlu0 %2382 }
0x13d0   :  { %v2385_v53 = vmul.f32 %v2383_v21, %v2379_v48 }
0x13d2   :  { %2387 = vrot.lane.b32.xlu1 %v2385_v53, %s5492_s7 }
0x1444   :  { %v2388_v9 = vpop.permute.xlu1 %2387 }
0x1445   :  { %v2390_v60 = vadd.f32 %v2388_v9, %v2380_v43 }
0x1447   :  { %5350 = vtanh.f32 %v2390_v60 }
0x1451   :  { %v5351_v27 = vpop.eup %5350 }
0x1452   :  { %2393 = vrot.lane.b32.xlu0 %v5351_v27, %s5491_s13 }
0x14c4   :  { %v2394_v56 = vpop.permute.xlu0 %2393 }
0x14c5   :  { %v6712_v45 = vmul.f32 %v2394_v56, %v2379_v48 }
0x14c7   :  { %v2397_v3 = vpack.c.bf16 %v6712_v45, %v6712_v45 }
0x14c9   :  { %2399 = vrot.lane.b32.xlu1 %v2397_v3, %s5492_s7 }
0x153b   :  { %v2400_v52 = vpop.permute.xlu1 %2399 }
0x153c   :  { %4990 = vmatmul.mubr.msk.bf16.vlgmr.msra.gmra.mrb[20].mxu1 %vm798_vm6, %v2400_v52 }
0x153d   :  { %5002 = vmatpush3.bf16.msra.mxu1 %v6119_v1  ;;  %5005 = vmatprep.mubr.msk.bf16.mxu1 %vm5488_vm2, %v7375_v20 }
0x153e   :  { %5003 = vmatprep.subr.bf16.mxu1 %v7375_v20 }
0x1541   :  { %5004 = vmatpush3.bf16.msra.mxu1 %v6125_v38 }
0x1542   :  { %5017 = vmatprep.subr.bf16.mxu1 %v7375_v20 }
0x160f   :  { %v2438_v15 = vpop.f32.mrb[20].mxu1 }
0x1610   :  { %v2444_v33 = vadd.f32 %v2438_v15, %v6428_v19  ;;  %v4991_v55 = vpop.f32.mrb[21].mxu1 }
0x1611   :  { %v2441_v62 = vpop.f32.mrb[22].mxu1 }
0x1612   :  { %v2445_v2 = vmul.f32 %v2444_v33, %v6164_v42  ;;  %v4992_v41 = vpop.f32.mrb[23].mxu1 }
0x1614   :  { %5352 = vtanh.f32 %v2445_v2 }
0x161e   :  { %v5353_v51 = vpop.eup %5352 }
0x161f   :  { %v2447_v12 = vadd.f32 1.0, %v5353_v51 }
0x1621   :  { %v2448_v17 = vmul.f32 0.5, %v2447_v12 }
0x1623   :  { %v2449_v5 = vsel %vm6153_vm5, %v5353_v51, %v2448_v17 }
0x1624   :  { %2452 = vrot.lane.b32.xlu0 %v2449_v5, %s5491_s13  ;;  %v2450_v37 = vmul.f32 %v2449_v5, %v2390_v60 }
0x1696   :  { %v2453_v28 = vpop.permute.xlu0 %2452 }
0x1697   :  { %v2455_v7 = vmul.f32 %v2453_v28, %v2449_v5 }
0x1699   :  { %2457 = vrot.lane.b32.xlu1 %v2455_v7, %s5492_s7 }
0x170b   :  { %v2458_v19 = vpop.permute.xlu1 %2457 }
0x170c   :  { %v2460_v36 = vadd.f32 %v2458_v19, %v2450_v37 }
0x170e   :  { %5354 = vtanh.f32 %v2460_v36 }
0x1718   :  { %v5355_v32 = vpop.eup %5354 }
0x1719   :  { %2463 = vrot.lane.b32.xlu0 %v5355_v32, %s5491_s13 }
0x178b   :  { %v2464_v0 = vpop.permute.xlu0 %2463 }
0x178c   :  { %v6731_v48 = vmul.f32 %v2464_v0, %v2449_v5 }
0x178e   :  { %v2467_v21 = vpack.c.bf16 %v6731_v48, %v6731_v48 }
0x1790   :  { %2469 = vrot.lane.b32.xlu1 %v2467_v21, %s5492_s7 }
0x1802   :  { %v2470_v53 = vpop.permute.xlu1 %2469 }
0x1803   :  { %4998 = vmatmul.mubr.msk.bf16.vlgmr.msra.gmra.mrb[44].mxu0 %vm798_vm6, %v2470_v53 }
0x1804   :  { %5010 = vmatpush3.bf16.msra.mxu0 %v6119_v1  ;;  %5013 = vmatprep.mubr.msk.bf16.mxu0 %vm5488_vm2, %v7375_v20 }
0x1805   :  { %5011 = vmatprep.subr.bf16.mxu0 %v7375_v20 }
0x1808   :  { %5012 = vmatpush3.bf16.msra.mxu0 %v6125_v38 }
0x1809   :  { %5025 = vmatprep.subr.bf16.mxu0 %v7375_v20 }
0x18d6   :  { %v2508_v43 = vpop.f32.mrb[44].mxu0 }
0x18d7   :  { %v2514_v9 = vadd.f32 %v2508_v43, %v6434_v22  ;;  %v4999_v60 = vpop.f32.mrb[45].mxu0 }
0x18d8   :  { %v2511_v27 = vpop.f32.mrb[46].mxu0 }
0x18d9   :  { %v2515_v56 = vmul.f32 %v2514_v9, %v6164_v42  ;;  %v5000_v3 = vpop.f32.mrb[47].mxu0 }
0x18db   :  { %5356 = vtanh.f32 %v2515_v56 }
0x18e5   :  { %v5357_v52 = vpop.eup %5356 }
0x18e6   :  { %v2517_v15 = vadd.f32 1.0, %v5357_v52 }
0x18e8   :  { %v2518_v33 = vmul.f32 0.5, %v2517_v15 }
0x18ea   :  { %v2519_v55 = vsel %vm6153_vm5, %v5357_v52, %v2518_v33 }
0x18eb   :  { %2522 = vrot.lane.b32.xlu0 %v2519_v55, %s5491_s13  ;;  %v2520_v41 = vmul.f32 %v2519_v55, %v2460_v36 }
0x195d   :  { %v2523_v62 = vpop.permute.xlu0 %2522 }
0x195e   :  { %v2525_v2 = vmul.f32 %v2523_v62, %v2519_v55  ;;  %v6778_v62 = vld [vmem:[%s7344_s12] sm:$0xff]  }
0x1960   :  { %2527 = vrot.lane.b32.xlu1 %v2525_v2, %s5492_s7  ;;  %v6787_v2 = vld [vmem:[%s7344_s12 + $0x8] sm:$0xff]  }
0x19d2   :  { %v2528_v22 = vpop.permute.xlu1 %2527 }
0x19d3   :  { %v2530_v51 = vadd.f32 %v2528_v22, %v2520_v41 }
0x19d5   :  { %5358 = vtanh.f32 %v2530_v51 }
0x19df   :  { %v5359_v12 = vpop.eup %5358 }
0x19e0   :  { %2533 = vrot.lane.b32.xlu0 %v5359_v12, %s5491_s13 }
0x1a52   :  { %v2534_v17 = vpop.permute.xlu0 %2533 }
0x1a53   :  { %v6750_v5 = vmul.f32 %v2534_v17, %v2519_v55 }
0x1a55   :  { %v2553_v28 = vpack.c.bf16 %v6750_v5, %v6750_v5 }
0x1a57   :  { %2555 = vrot.lane.b32.xlu1 %v2553_v28, %s5492_s7 }
0x1ac9   :  { %v2556_v7 = vpop.permute.xlu1 %2555 }
0x1aca   :  { %5006 = vmatmul.mubr.msk.bf16.vlgmr.msra.gmra.mrb[24].mxu1 %vm798_vm6, %v2556_v7 }
0x1acb   :  { %5018 = vmatpush3.bf16.msra.mxu1 %v6119_v1  ;;  %5021 = vmatprep.mubr.msk.bf16.mxu1 %vm5488_vm2, %v7375_v20 }
0x1acc   :  { %5019 = vmatprep.subr.bf16.mxu1 %v7375_v20 }
0x1acf   :  { %5020 = vmatpush3.bf16.msra.mxu1 %v6125_v38 }
0x1ad0   :  { %5033 = vmatprep.subr.bf16.mxu1 %v7375_v20 }
0x1b9d   :  { %v2594_v37 = vpop.f32.mrb[24].mxu1 }
0x1b9e   :  { %v2600_v19 = vadd.f32 %v2594_v37, %v6422_v24  ;;  %v5007_v36 = vpop.f32.mrb[25].mxu1 }
0x1b9f   :  { %v2597_v32 = vpop.f32.mrb[26].mxu1 }
0x1ba0   :  { %v2601_v0 = vmul.f32 %v2600_v19, %v6164_v42  ;;  %v5008_v21 = vpop.f32.mrb[27].mxu1 }
0x1ba2   :  { %5360 = vtanh.f32 %v2601_v0 }
0x1bac   :  { %v5361_v53 = vpop.eup %5360 }
0x1bad   :  { %v2603_v1 = vadd.f32 1.0, %v5361_v53 }
0x1baf   :  { %v2604_v43 = vmul.f32 0.5, %v2603_v1 }
0x1bb1   :  { %v2605_v9 = vsel %vm6153_vm5, %v5361_v53, %v2604_v43 }
0x1bb2   :  { %2608 = vrot.lane.b32.xlu0 %v2605_v9, %s5491_s13  ;;  %v2606_v27 = vmul.f32 %v2605_v9, %v2530_v51 }
0x1c24   :  { %v2609_v38 = vpop.permute.xlu0 %2608 }
0x1c25   :  { %v2611_v60 = vmul.f32 %v2609_v38, %v2605_v9 }
0x1c27   :  { %2613 = vrot.lane.b32.xlu1 %v2611_v60, %s5492_s7 }
0x1c99   :  { %v2614_v24 = vpop.permute.xlu1 %2613 }
0x1c9a   :  { %v2616_v56 = vadd.f32 %v2614_v24, %v2606_v27 }
0x1c9c   :  { %5362 = vtanh.f32 %v2616_v56 }
0x1ca6   :  { %v5363_v3 = vpop.eup %5362 }
0x1ca7   :  { %2619 = vrot.lane.b32.xlu0 %v5363_v3, %s5491_s13 }
0x1d19   :  { %v2620_v52 = vpop.permute.xlu0 %2619 }
0x1d1a   :  { %v6769_v15 = vmul.f32 %v2620_v52, %v2605_v9 }
0x1d1c   :  { %v2623_v33 = vpack.c.bf16 %v6769_v15, %v6769_v15 }
0x1d1e   :  { %2625 = vrot.lane.b32.xlu1 %v2623_v33, %s5492_s7 }
0x1d90   :  { %v2626_v55 = vpop.permute.xlu1 %2625 }
0x1d91   :  { %5014 = vmatmul.mubr.msk.bf16.vlgmr.msra.gmra.mrb[48].mxu0 %vm798_vm6, %v2626_v55 }
0x1d92   :  { %5026 = vmatpush3.bf16.msra.mxu0 %v6778_v62  ;;  %5029 = vmatprep.mubr.msk.bf16.mxu0 %vm5488_vm2, %v7375_v20 }
0x1d93   :  { %5027 = vmatprep.subr.bf16.mxu0 %v7375_v20 }
0x1d96   :  { %5028 = vmatpush3.bf16.msra.mxu0 %v6787_v2 }
0x1d97   :  { %5041 = vmatprep.subr.bf16.mxu0 %v7375_v20 }
0x1e64   :  { %v2664_v41 = vpop.f32.mrb[48].mxu0 }
0x1e65   :  { %v2670_v22 = vadd.f32 %v2664_v41, %v6437_v47  ;;  %v5015_v51 = vpop.f32.mrb[49].mxu0 }
0x1e66   :  { %v2667_v12 = vpop.f32.mrb[50].mxu0 }
0x1e67   :  { %v2671_v17 = vmul.f32 %v2670_v22, %v6164_v42  ;;  %v5016_v28 = vpop.f32.mrb[51].mxu0 }
0x1e69   :  { %5364 = vtanh.f32 %v2671_v17 }
0x1e73   :  { %v5365_v7 = vpop.eup %5364 }
0x1e74   :  { %v2673_v37 = vadd.f32 1.0, %v5365_v7 }
0x1e76   :  { %v2674_v19 = vmul.f32 0.5, %v2673_v37 }
0x1e78   :  { %v2675_v36 = vsel %vm6153_vm5, %v5365_v7, %v2674_v19 }
0x1e79   :  { %2678 = vrot.lane.b32.xlu0 %v2675_v36, %s5491_s13  ;;  %v2676_v21 = vmul.f32 %v2675_v36, %v2616_v56 }
0x1eeb   :  { %v2679_v32 = vpop.permute.xlu0 %2678 }
0x1eec   :  { %v2681_v0 = vmul.f32 %v2679_v32, %v2675_v36 }
0x1eee   :  { %2683 = vrot.lane.b32.xlu1 %v2681_v0, %s5492_s7 }
0x1f60   :  { %v2684_v47 = vpop.permute.xlu1 %2683 }
0x1f61   :  { %v2686_v53 = vadd.f32 %v2684_v47, %v2676_v21 }
0x1f63   :  { %5366 = vtanh.f32 %v2686_v53 }
0x1f6d   :  { %v5367_v1 = vpop.eup %5366 }
0x1f6e   :  { %2689 = vrot.lane.b32.xlu0 %v5367_v1, %s5491_s13 }
0x1fe0   :  { %v2690_v43 = vpop.permute.xlu0 %2689 }
0x1fe1   :  { %v6798_v9 = vmul.f32 %v2690_v43, %v2675_v36 }
0x1fe3   :  { %v2693_v38 = vpack.c.bf16 %v6798_v9, %v6798_v9 }
0x1fe5   :  { %2695 = vrot.lane.b32.xlu1 %v2693_v38, %s5492_s7 }
0x2057   :  { %v2696_v60 = vpop.permute.xlu1 %2695 }
0x2058   :  { %5022 = vmatmul.mubr.msk.bf16.vlgmr.msra.gmra.mrb[28].mxu1 %vm798_vm6, %v2696_v60 }
0x2059   :  { %5034 = vmatpush3.bf16.msra.mxu1 %v6778_v62  ;;  %5037 = vmatprep.mubr.msk.bf16.mxu1 %vm5488_vm2, %v7375_v20 }
0x205a   :  { %5035 = vmatprep.subr.bf16.mxu1 %v7375_v20 }
0x205d   :  { %5036 = vmatpush3.bf16.msra.mxu1 %v6787_v2 }
0x205e   :  { %5049 = vmatprep.subr.bf16.mxu1 %v7375_v20 }
0x212b   :  { %v2734_v27 = vpop.f32.mrb[28].mxu1 }
0x212c   :  { %v2740_v24 = vadd.f32 %v2734_v27, %v6442_v46  ;;  %v5023_v56 = vpop.f32.mrb[29].mxu1 }
0x212d   :  { %v2737_v3 = vpop.f32.mrb[30].mxu1 }
0x212e   :  { %v2741_v52 = vmul.f32 %v2740_v24, %v6164_v42  ;;  %v5024_v33 = vpop.f32.mrb[31].mxu1 }
0x2130   :  { %5368 = vtanh.f32 %v2741_v52 }
0x213a   :  { %v5369_v55 = vpop.eup %5368 }
0x213b   :  { %v2743_v41 = vadd.f32 1.0, %v5369_v55 }
0x213d   :  { %v2744_v22 = vmul.f32 0.5, %v2743_v41 }
0x213f   :  { %v2745_v51 = vsel %vm6153_vm5, %v5369_v55, %v2744_v22 }
0x2140   :  { %2748 = vrot.lane.b32.xlu0 %v2745_v51, %s5491_s13  ;;  %v2746_v28 = vmul.f32 %v2745_v51, %v2686_v53 }
0x21b2   :  { %v2749_v12 = vpop.permute.xlu0 %2748 }
0x21b3   :  { %v2751_v17 = vmul.f32 %v2749_v12, %v2745_v51 }
0x21b5   :  { %2753 = vrot.lane.b32.xlu1 %v2751_v17, %s5492_s7 }
0x2227   :  { %v2754_v46 = vpop.permute.xlu1 %2753 }
0x2228   :  { %v2756_v7 = vadd.f32 %v2754_v46, %v2746_v28 }
0x222a   :  { %5370 = vtanh.f32 %v2756_v7 }
0x2234   :  { %v5371_v37 = vpop.eup %5370 }
0x2235   :  { %2759 = vrot.lane.b32.xlu0 %v5371_v37, %s5491_s13 }
0x22a7   :  { %v2760_v19 = vpop.permute.xlu0 %2759 }
0x22a8   :  { %v6817_v36 = vmul.f32 %v2760_v19, %v2745_v51 }
0x22aa   :  { %v2763_v32 = vpack.c.bf16 %v6817_v36, %v6817_v36 }
0x22ac   :  { %2765 = vrot.lane.b32.xlu1 %v2763_v32, %s5492_s7 }
0x231e   :  { %v2766_v0 = vpop.permute.xlu1 %2765 }
0x231f   :  { %5030 = vmatmul.mubr.msk.bf16.vlgmr.msra.gmra.mrb[52].mxu0 %vm798_vm6, %v2766_v0 }
0x2320   :  { %5042 = vmatpush3.bf16.msra.mxu0 %v6778_v62  ;;  %5045 = vmatprep.mubr.msk.bf16.mxu0 %vm5488_vm2, %v7375_v20 }
0x2321   :  { %5043 = vmatprep.subr.bf16.mxu0 %v7375_v20 }
0x2324   :  { %5044 = vmatpush3.bf16.msra.mxu0 %v6787_v2 }
0x2325   :  { %5057 = vmatprep.subr.bf16.mxu0 %v7375_v20 }
0x23f2   :  { %v2804_v21 = vpop.f32.mrb[52].mxu0 }
0x23f3   :  { %v2810_v47 = vadd.f32 %v2804_v21, %v6456_v44  ;;  %v5031_v53 = vpop.f32.mrb[53].mxu0 }
0x23f4   :  { %v2807_v1 = vpop.f32.mrb[54].mxu0 }
0x23f5   :  { %v2811_v43 = vmul.f32 %v2810_v47, %v6164_v42  ;;  %v5032_v38 = vpop.f32.mrb[55].mxu0 }
0x23f7   :  { %5372 = vtanh.f32 %v2811_v43 }
0x2401   :  { %v5373_v60 = vpop.eup %5372 }
0x2402   :  { %v2813_v27 = vadd.f32 1.0, %v5373_v60 }
0x2404   :  { %v2814_v24 = vmul.f32 0.5, %v2813_v27 }
0x2406   :  { %v2815_v56 = vsel %vm6153_vm5, %v5373_v60, %v2814_v24 }
0x2407   :  { %2818 = vrot.lane.b32.xlu0 %v2815_v56, %s5491_s13  ;;  %v2816_v33 = vmul.f32 %v2815_v56, %v2756_v7 }
0x2479   :  { %v2819_v3 = vpop.permute.xlu0 %2818 }
0x247a   :  { %v2821_v52 = vmul.f32 %v2819_v3, %v2815_v56 }
0x247c   :  { %2823 = vrot.lane.b32.xlu1 %v2821_v52, %s5492_s7 }
0x24ee   :  { %v2824_v44 = vpop.permute.xlu1 %2823 }
0x24ef   :  { %v2826_v55 = vadd.f32 %v2824_v44, %v2816_v33 }
0x24f1   :  { %5374 = vtanh.f32 %v2826_v55 }
0x24fb   :  { %v5375_v41 = vpop.eup %5374 }
0x24fc   :  { %2829 = vrot.lane.b32.xlu0 %v5375_v41, %s5491_s13 }
0x256e   :  { %v2830_v22 = vpop.permute.xlu0 %2829 }
0x256f   :  { %v6836_v51 = vmul.f32 %v2830_v22, %v2815_v56 }
0x2571   :  { %v2849_v12 = vpack.c.bf16 %v6836_v51, %v6836_v51 }
0x2573   :  { %2851 = vrot.lane.b32.xlu1 %v2849_v12, %s5492_s7 }
0x25e5   :  { %v2852_v17 = vpop.permute.xlu1 %2851 }
0x25e6   :  { %5038 = vmatmul.mubr.msk.bf16.vlgmr.msra.gmra.mrb[32].mxu1 %vm798_vm6, %v2852_v17 }
0x25e7   :  { %5050 = vmatpush3.bf16.msra.mxu1 %v6778_v62  ;;  %5053 = vmatprep.mubr.msk.bf16.mxu1 %vm5488_vm2, %v7375_v20 }
0x25e8   :  { %5051 = vmatprep.subr.bf16.mxu1 %v7375_v20 }
0x25eb   :  { %5052 = vmatpush3.bf16.msra.mxu1 %v6787_v2 }
0x25ec   :  { %5065 = vmatprep.subr.bf16.mxu1 %v7375_v20 }
0x26b9   :  { %v2890_v28 = vpop.f32.mrb[32].mxu1 }
0x26ba   :  { %v2896_v46 = vadd.f32 %v2890_v28, %v6450_v25  ;;  %v5039_v7 = vpop.f32.mrb[33].mxu1 }
0x26bb   :  { %v2893_v37 = vpop.f32.mrb[34].mxu1 }
0x26bc   :  { %v2897_v19 = vmul.f32 %v2896_v46, %v6164_v42  ;;  %v5040_v32 = vpop.f32.mrb[35].mxu1 }
0x26be   :  { %5376 = vtanh.f32 %v2897_v19 }
0x26c8   :  { %v5377_v0 = vpop.eup %5376 }
0x26c9   :  { %v2899_v21 = vadd.f32 1.0, %v5377_v0 }
0x26cb   :  { %v2900_v47 = vmul.f32 0.5, %v2899_v21 }
0x26cd   :  { %v2901_v53 = vsel %vm6153_vm5, %v5377_v0, %v2900_v47 }
0x26ce   :  { %2904 = vrot.lane.b32.xlu0 %v2901_v53, %s5491_s13  ;;  %v2902_v38 = vmul.f32 %v2901_v53, %v2826_v55 }
0x2740   :  { %v2905_v1 = vpop.permute.xlu0 %2904 }
0x2741   :  { %v2907_v43 = vmul.f32 %v2905_v1, %v2901_v53 }
0x2743   :  { %2909 = vrot.lane.b32.xlu1 %v2907_v43, %s5492_s7 }
0x27b5   :  { %v2910_v25 = vpop.permute.xlu1 %2909 }
0x27b6   :  { %v2912_v60 = vadd.f32 %v2910_v25, %v2902_v38 }
0x27b8   :  { %5378 = vtanh.f32 %v2912_v60 }
0x27c2   :  { %v5379_v27 = vpop.eup %5378 }
0x27c3   :  { %2915 = vrot.lane.b32.xlu0 %v5379_v27, %s5491_s13 }
0x2835   :  { %v2916_v24 = vpop.permute.xlu0 %2915 }
0x2836   :  { %v6855_v56 = vmul.f32 %v2916_v24, %v2901_v53 }
0x2838   :  { %v2919_v3 = vpack.c.bf16 %v6855_v56, %v6855_v56 }
0x283a   :  { %2921 = vrot.lane.b32.xlu1 %v2919_v3, %s5492_s7 }
0x28ac   :  { %v2922_v52 = vpop.permute.xlu1 %2921 }
0x28ad   :  { %5046 = vmatmul.mubr.msk.bf16.vlgmr.msra.gmra.mrb[56].mxu0 %vm798_vm6, %v2922_v52 }
0x28ae   :  { %5058 = vmatpush3.bf16.msra.mxu0 %v6778_v62  ;;  %5061 = vmatprep.mubr.msk.bf16.mxu0 %vm5488_vm2, %v7375_v20 }
0x28af   :  { %5059 = vmatprep.subr.bf16.mxu0 %v7375_v20 }
0x28b2   :  { %5060 = vmatpush3.bf16.msra.mxu0 %v6787_v2 }
0x28b3   :  { %5073 = vmatprep.subr.bf16.mxu0 %v7375_v20 }
0x2980   :  { %v2960_v33 = vpop.f32.mrb[56].mxu0 }
0x2981   :  { %v2966_v44 = vadd.f32 %v2960_v33, %v6467_v11  ;;  %v5047_v55 = vpop.f32.mrb[57].mxu0 }
0x2982   :  { %v2963_v41 = vpop.f32.mrb[58].mxu0 }
0x2983   :  { %v2967_v22 = vmul.f32 %v2966_v44, %v6164_v42  ;;  %v5048_v12 = vpop.f32.mrb[59].mxu0 }
0x2985   :  { %5380 = vtanh.f32 %v2967_v22 }
0x298f   :  { %v5381_v17 = vpop.eup %5380 }
0x2990   :  { %v2969_v28 = vadd.f32 1.0, %v5381_v17 }
0x2992   :  { %v2970_v46 = vmul.f32 0.5, %v2969_v28 }
0x2994   :  { %v2971_v7 = vsel %vm6153_vm5, %v5381_v17, %v2970_v46 }
0x2995   :  { %2974 = vrot.lane.b32.xlu0 %v2971_v7, %s5491_s13  ;;  %v2972_v32 = vmul.f32 %v2971_v7, %v2912_v60 }
0x2a07   :  { %v2975_v37 = vpop.permute.xlu0 %2974 }
0x2a08   :  { %v2977_v19 = vmul.f32 %v2975_v37, %v2971_v7 }
0x2a0a   :  { %2979 = vrot.lane.b32.xlu1 %v2977_v19, %s5492_s7 }
0x2a7c   :  { %v2980_v11 = vpop.permute.xlu1 %2979 }
0x2a7d   :  { %v2982_v0 = vadd.f32 %v2980_v11, %v2972_v32 }
0x2a7f   :  { %5382 = vtanh.f32 %v2982_v0 }
0x2a89   :  { %v5383_v21 = vpop.eup %5382 }
0x2a8a   :  { %2985 = vrot.lane.b32.xlu0 %v5383_v21, %s5491_s13 }
0x2afc   :  { %v2986_v47 = vpop.permute.xlu0 %2985 }
0x2afd   :  { %v6874_v53 = vmul.f32 %v2986_v47, %v2971_v7 }
0x2aff   :  { %v2989_v1 = vpack.c.bf16 %v6874_v53, %v6874_v53 }
0x2b01   :  { %2991 = vrot.lane.b32.xlu1 %v2989_v1, %s5492_s7 }
0x2b73   :  { %v2992_v43 = vpop.permute.xlu1 %2991 }
0x2b74   :  { %5054 = vmatmul.mubr.msk.bf16.vlgmr.msra.gmra.mrb[36].mxu1 %vm798_vm6, %v2992_v43 }
0x2b75   :  { %5066 = vmatpush3.bf16.msra.mxu1 %v6778_v62  ;;  %5069 = vmatprep.mubr.msk.bf16.mxu1 %vm5488_vm2, %v7375_v20 }
0x2b76   :  { %5067 = vmatprep.subr.bf16.mxu1 %v7375_v20 }
0x2b79   :  { %5068 = vmatpush3.bf16.msra.mxu1 %v6787_v2 }
0x2b7a   :  { %5081 = vmatprep.subr.bf16.mxu1 %v7375_v20 }
0x2c47   :  { %v3030_v38 = vpop.f32.mrb[36].mxu1 }
0x2c48   :  { %v3036_v25 = vadd.f32 %v3030_v38, %v6470_v6  ;;  %v5055_v60 = vpop.f32.mrb[37].mxu1 }
0x2c49   :  { %v3033_v27 = vpop.f32.mrb[38].mxu1 }
0x2c4a   :  { %v3037_v24 = vmul.f32 %v3036_v25, %v6164_v42  ;;  %v5056_v3 = vpop.f32.mrb[39].mxu1 }
0x2c4c   :  { %5384 = vtanh.f32 %v3037_v24 }
0x2c56   :  { %v5385_v52 = vpop.eup %5384 }
0x2c57   :  { %v3039_v33 = vadd.f32 1.0, %v5385_v52 }
0x2c59   :  { %v3040_v44 = vmul.f32 0.5, %v3039_v33 }
0x2c5b   :  { %v3041_v55 = vsel %vm6153_vm5, %v5385_v52, %v3040_v44 }
0x2c5c   :  { %3044 = vrot.lane.b32.xlu0 %v3041_v55, %s5491_s13  ;;  %v3042_v12 = vmul.f32 %v3041_v55, %v2982_v0 }
0x2cce   :  { %v3045_v41 = vpop.permute.xlu0 %3044 }
0x2ccf   :  { %v3047_v22 = vmul.f32 %v3045_v41, %v3041_v55 }
0x2cd1   :  { %3049 = vrot.lane.b32.xlu1 %v3047_v22, %s5492_s7 }
0x2d43   :  { %v3050_v6 = vpop.permute.xlu1 %3049 }
0x2d44   :  { %v3052_v17 = vadd.f32 %v3050_v6, %v3042_v12 }
0x2d46   :  { %5386 = vtanh.f32 %v3052_v17 }
0x2d50   :  { %v5387_v28 = vpop.eup %5386 }
0x2d51   :  { %3055 = vrot.lane.b32.xlu0 %v5387_v28, %s5491_s13 }
0x2dc3   :  { %v3056_v46 = vpop.permute.xlu0 %3055 }
0x2dc4   :  { %v6893_v7 = vmul.f32 %v3056_v46, %v3041_v55 }
0x2dc6   :  { %v3059_v37 = vpack.c.bf16 %v6893_v7, %v6893_v7 }
0x2dc8   :  { %3061 = vrot.lane.b32.xlu1 %v3059_v37, %s5492_s7 }
0x2e3a   :  { %v3062_v19 = vpop.permute.xlu1 %3061 }
0x2e3b   :  { %5062 = vmatmul.mubr.msk.bf16.vlgmr.msra.gmra.mrb[60].mxu0 %vm798_vm6, %v3062_v19 }
0x2e3c   :  { %5074 = vmatpush3.bf16.msra.mxu0 %v6778_v62  ;;  %5077 = vmatprep.mubr.msk.bf16.mxu0 %vm5488_vm2, %v7375_v20 }
0x2e3d   :  { %5075 = vmatprep.subr.bf16.mxu0 %v7375_v20 }
0x2e40   :  { %5076 = vmatpush3.bf16.msra.mxu0 %v6787_v2 }
0x2e41   :  { %5089 = vmatprep.subr.bf16.mxu0 %v7375_v20 }
0x2f0e   :  { %v3100_v32 = vpop.f32.mrb[60].mxu0 }
0x2f0f   :  { %v3106_v11 = vadd.f32 %v3100_v32, %v6477_v58  ;;  %v5063_v0 = vpop.f32.mrb[61].mxu0 }
0x2f10   :  { %v3103_v21 = vpop.f32.mrb[62].mxu0 }
0x2f11   :  { %v3107_v47 = vmul.f32 %v3106_v11, %v6164_v42  ;;  %v5064_v1 = vpop.f32.mrb[63].mxu0 }
0x2f13   :  { %5388 = vtanh.f32 %v3107_v47 }
0x2f1d   :  { %v5389_v43 = vpop.eup %5388 }
0x2f1e   :  { %v3109_v38 = vadd.f32 1.0, %v5389_v43 }
0x2f20   :  { %v3110_v25 = vmul.f32 0.5, %v3109_v38 }
0x2f22   :  { %v3111_v60 = vsel %vm6153_vm5, %v5389_v43, %v3110_v25 }
0x2f23   :  { %3114 = vrot.lane.b32.xlu0 %v3111_v60, %s5491_s13  ;;  %v3112_v3 = vmul.f32 %v3111_v60, %v3052_v17 }
0x2f95   :  { %v3115_v27 = vpop.permute.xlu0 %3114 }
0x2f96   :  { %v3117_v24 = vmul.f32 %v3115_v27, %v3111_v60 }
0x2f98   :  { %3119 = vrot.lane.b32.xlu1 %v3117_v24, %s5492_s7 }
0x300a   :  { %v3120_v58 = vpop.permute.xlu1 %3119 }
0x300b   :  { %v3122_v52 = vadd.f32 %v3120_v58, %v3112_v3 }
0x300d   :  { %5390 = vtanh.f32 %v3122_v52 }
0x3017   :  { %v5391_v33 = vpop.eup %5390 }
0x3018   :  { %3125 = vrot.lane.b32.xlu0 %v5391_v33, %s5491_s13 }
0x308a   :  { %v3126_v44 = vpop.permute.xlu0 %3125 }
0x308b   :  { %v6912_v55 = vmul.f32 %v3126_v44, %v3111_v60 }
0x308d   :  { %v3145_v41 = vpack.c.bf16 %v6912_v55, %v6912_v55 }
0x308f   :  { %3147 = vrot.lane.b32.xlu1 %v3145_v41, %s5492_s7 }
0x3101   :  { %v3148_v22 = vpop.permute.xlu1 %3147 }
0x3102   :  { %5070 = vmatmul.mubr.msk.bf16.vlgmr.msra.gmra.mrb[40].mxu1 %vm798_vm6, %v3148_v22 }
0x3103   :  { %5082 = vmatpush3.bf16.msra.mxu1 %v6778_v62  ;;  %5085 = vmatprep.mubr.msk.bf16.mxu1 %vm5488_vm2, %v7375_v20 }
0x3104   :  { %5083 = vmatprep.subr.bf16.mxu1 %v7375_v20 }
0x3107   :  { %5084 = vmatpush3.bf16.msra.mxu1 %v6787_v2 }
0x3108   :  { %5097 = vmatprep.subr.bf16.mxu1 %v7375_v20 }
0x31d5   :  { %v3186_v12 = vpop.f32.mrb[40].mxu1 }
0x31d6   :  { %v3192_v6 = vadd.f32 %v3186_v12, %v6474_v13  ;;  %v5071_v17 = vpop.f32.mrb[41].mxu1 }
0x31d7   :  { %v3189_v28 = vpop.f32.mrb[42].mxu1 }
0x31d8   :  { %v3193_v46 = vmul.f32 %v3192_v6, %v6164_v42  ;;  %v5072_v37 = vpop.f32.mrb[43].mxu1 }
0x31da   :  { %5392 = vtanh.f32 %v3193_v46 }
0x31e4   :  { %v5393_v19 = vpop.eup %5392 }
0x31e5   :  { %v3195_v32 = vadd.f32 1.0, %v5393_v19 }
0x31e7   :  { %v3196_v11 = vmul.f32 0.5, %v3195_v32 }
0x31e9   :  { %v3197_v0 = vsel %vm6153_vm5, %v5393_v19, %v3196_v11 }
0x31ea   :  { %3200 = vrot.lane.b32.xlu0 %v3197_v0, %s5491_s13  ;;  %v3198_v1 = vmul.f32 %v3197_v0, %v3122_v52 }
0x325c   :  { %v3201_v21 = vpop.permute.xlu0 %3200 }
0x325d   :  { %v3203_v47 = vmul.f32 %v3201_v21, %v3197_v0 }
0x325f   :  { %3205 = vrot.lane.b32.xlu1 %v3203_v47, %s5492_s7 }
0x32d1   :  { %v3206_v13 = vpop.permute.xlu1 %3205 }
0x32d2   :  { %v3208_v43 = vadd.f32 %v3206_v13, %v3198_v1 }
0x32d4   :  { %5394 = vtanh.f32 %v3208_v43 }
0x32de   :  { %v5395_v38 = vpop.eup %5394 }
0x32df   :  { %3211 = vrot.lane.b32.xlu0 %v5395_v38, %s5491_s13 }
0x3351   :  { %v3212_v25 = vpop.permute.xlu0 %3211 }
0x3352   :  { %v6931_v60 = vmul.f32 %v3212_v25, %v3197_v0 }
0x3354   :  { %v3215_v27 = vpack.c.bf16 %v6931_v60, %v6931_v60 }
0x3356   :  { %3217 = vrot.lane.b32.xlu1 %v3215_v27, %s5492_s7 }
0x33c8   :  { %v3218_v24 = vpop.permute.xlu1 %3217 }
0x33c9   :  { %5078 = vmatmul.mubr.msk.bf16.vlgmr.msra.gmra.mrb[64].mxu0 %vm798_vm6, %v3218_v24 }
0x33ca   :  { %5090 = vmatpush3.bf16.msra.mxu0 %v6778_v62  ;;  %5093 = vmatprep.mubr.msk.bf16.mxu0 %vm5488_vm2, %v7375_v20 }
0x33cb   :  { %5091 = vmatprep.subr.bf16.mxu0 %v7375_v20 }
0x33ce   :  { %5092 = vmatpush3.bf16.msra.mxu0 %v6787_v2 }
0x33cf   :  { %5105 = vmatprep.subr.bf16.mxu0 %v7375_v20 }
0x349c   :  { %v3256_v3 = vpop.f32.mrb[64].mxu0 }
0x349d   :  { %v3262_v58 = vadd.f32 %v3256_v3, %v6494_v34  ;;  %v5079_v52 = vpop.f32.mrb[65].mxu0 }
0x349e   :  { %v3259_v33 = vpop.f32.mrb[66].mxu0 }
0x349f   :  { %v3263_v44 = vmul.f32 %v3262_v58, %v6164_v42  ;;  %v5080_v41 = vpop.f32.mrb[67].mxu0 }
0x34a1   :  { %5396 = vtanh.f32 %v3263_v44 }
0x34ab   :  { %v5397_v22 = vpop.eup %5396 }
0x34ac   :  { %v3265_v12 = vadd.f32 1.0, %v5397_v22 }
0x34ae   :  { %v3266_v6 = vmul.f32 0.5, %v3265_v12 }
0x34b0   :  { %v3267_v17 = vsel %vm6153_vm5, %v5397_v22, %v3266_v6 }
0x34b1   :  { %3270 = vrot.lane.b32.xlu0 %v3267_v17, %s5491_s13  ;;  %v3268_v37 = vmul.f32 %v3267_v17, %v3208_v43 }
0x3523   :  { %v3271_v28 = vpop.permute.xlu0 %3270 }
0x3524   :  { %v3273_v46 = vmul.f32 %v3271_v28, %v3267_v17 }
0x3526   :  { %3275 = vrot.lane.b32.xlu1 %v3273_v46, %s5492_s7 }
0x3598   :  { %v3276_v34 = vpop.permute.xlu1 %3275 }
0x3599   :  { %v3278_v19 = vadd.f32 %v3276_v34, %v3268_v37 }
0x359b   :  { %5398 = vtanh.f32 %v3278_v19 }
0x35a5   :  { %v5399_v32 = vpop.eup %5398 }
0x35a6   :  { %3281 = vrot.lane.b32.xlu0 %v5399_v32, %s5491_s13 }
0x3618   :  { %v3282_v11 = vpop.permute.xlu0 %3281 }
0x3619   :  { %v6950_v0 = vmul.f32 %v3282_v11, %v3267_v17 }
0x361b   :  { %v3285_v21 = vpack.c.bf16 %v6950_v0, %v6950_v0 }
0x361d   :  { %3287 = vrot.lane.b32.xlu1 %v3285_v21, %s5492_s7 }
0x368f   :  { %v3288_v47 = vpop.permute.xlu1 %3287 }
0x3690   :  { %5086 = vmatmul.mubr.msk.bf16.vlgmr.msra.gmra.mrb[44].mxu1 %vm798_vm6, %v3288_v47 }
0x3691   :  { %5098 = vmatpush3.bf16.msra.mxu1 %v6778_v62  ;;  %5101 = vmatprep.mubr.msk.bf16.mxu1 %vm5488_vm2, %v7375_v20 }
0x3692   :  { %5099 = vmatprep.subr.bf16.mxu1 %v7375_v20 }
0x3695   :  { %5100 = vmatpush3.bf16.msra.mxu1 %v6787_v2 }
0x3696   :  { %5113 = vmatprep.subr.bf16.mxu1 %v7375_v20 }
0x3763   :  { %v3326_v1 = vpop.f32.mrb[44].mxu1 }
0x3764   :  { %v3332_v13 = vadd.f32 %v3326_v1, %v6497_v30  ;;  %v5087_v43 = vpop.f32.mrb[45].mxu1 }
0x3765   :  { %v3329_v38 = vpop.f32.mrb[46].mxu1 }
0x3766   :  { %v3333_v25 = vmul.f32 %v3332_v13, %v6164_v42  ;;  %v5088_v27 = vpop.f32.mrb[47].mxu1 }
0x3768   :  { %5400 = vtanh.f32 %v3333_v25 }
0x3772   :  { %v5401_v24 = vpop.eup %5400 }
0x3773   :  { %v3335_v3 = vadd.f32 1.0, %v5401_v24 }
0x3775   :  { %v3336_v58 = vmul.f32 0.5, %v3335_v3 }
0x3777   :  { %v3337_v52 = vsel %vm6153_vm5, %v5401_v24, %v3336_v58 }
0x3778   :  { %3340 = vrot.lane.b32.xlu0 %v3337_v52, %s5491_s13  ;;  %v3338_v41 = vmul.f32 %v3337_v52, %v3278_v19 }
0x37ea   :  { %v3341_v33 = vpop.permute.xlu0 %3340 }
0x37eb   :  { %v3343_v44 = vmul.f32 %v3341_v33, %v3337_v52 }
0x37ed   :  { %3345 = vrot.lane.b32.xlu1 %v3343_v44, %s5492_s7 }
0x385f   :  { %v3346_v30 = vpop.permute.xlu1 %3345 }
0x3860   :  { %v3348_v22 = vadd.f32 %v3346_v30, %v3338_v41 }
0x3862   :  { %5402 = vtanh.f32 %v3348_v22 }
0x386c   :  { %v5403_v12 = vpop.eup %5402 }
0x386d   :  { %3351 = vrot.lane.b32.xlu0 %v5403_v12, %s5491_s13 }
0x38df   :  { %v3352_v6 = vpop.permute.xlu0 %3351 }
0x38e0   :  { %v6969_v17 = vmul.f32 %v3352_v6, %v3337_v52 }
0x38e2   :  { %v3355_v28 = vpack.c.bf16 %v6969_v17, %v6969_v17 }
0x38e4   :  { %3357 = vrot.lane.b32.xlu1 %v3355_v28, %s5492_s7 }
0x3956   :  { %v3358_v46 = vpop.permute.xlu1 %3357 }
0x3957   :  { %5094 = vmatmul.mubr.msk.bf16.vlgmr.msra.gmra.mrb[68].mxu0 %vm798_vm6, %v3358_v46 }
0x3958   :  { %5106 = vmatpush3.bf16.msra.mxu0 %v6778_v62  ;;  %5109 = vmatprep.mubr.msk.bf16.mxu0 %vm5488_vm2, %v7375_v20 }
0x3959   :  { %5107 = vmatprep.subr.bf16.mxu0 %v7375_v20 }
0x395c   :  { %5108 = vmatpush3.bf16.msra.mxu0 %v6787_v2 }
0x395d   :  { %5121 = vmatprep.subr.bf16.mxu0 %v7375_v20 }
0x3a2a   :  { %v3396_v37 = vpop.f32.mrb[68].mxu0 }
0x3a2b   :  { %v3402_v34 = vadd.f32 %v3396_v37, %v6520_v40  ;;  %v5095_v19 = vpop.f32.mrb[69].mxu0 }
0x3a2c   :  { %v3399_v32 = vpop.f32.mrb[70].mxu0 }
0x3a2d   :  { %v3403_v11 = vmul.f32 %v3402_v34, %v6164_v42  ;;  %v5096_v21 = vpop.f32.mrb[71].mxu0 }
0x3a2f   :  { %5404 = vtanh.f32 %v3403_v11 }
0x3a39   :  { %v5405_v47 = vpop.eup %5404 }
0x3a3a   :  { %v3405_v1 = vadd.f32 1.0, %v5405_v47 }
0x3a3c   :  { %v3406_v13 = vmul.f32 0.5, %v3405_v1 }
0x3a3e   :  { %v3407_v43 = vsel %vm6153_vm5, %v5405_v47, %v3406_v13 }
0x3a3f   :  { %3410 = vrot.lane.b32.xlu0 %v3407_v43, %s5491_s13  ;;  %v3408_v27 = vmul.f32 %v3407_v43, %v3348_v22 }
0x3ab1   :  { %v3411_v38 = vpop.permute.xlu0 %3410 }
0x3ab2   :  { %v3413_v25 = vmul.f32 %v3411_v38, %v3407_v43 }
0x3ab4   :  { %3415 = vrot.lane.b32.xlu1 %v3413_v25, %s5492_s7 }
0x3b26   :  { %v3416_v40 = vpop.permute.xlu1 %3415 }
0x3b27   :  { %v3418_v24 = vadd.f32 %v3416_v40, %v3408_v27 }
0x3b29   :  { %5406 = vtanh.f32 %v3418_v24 }
0x3b33   :  { %v5407_v3 = vpop.eup %5406 }
0x3b34   :  { %3421 = vrot.lane.b32.xlu0 %v5407_v3, %s5491_s13 }
0x3ba6   :  { %v3422_v58 = vpop.permute.xlu0 %3421 }
0x3ba7   :  { %v6988_v52 = vmul.f32 %v3422_v58, %v3407_v43 }
0x3ba9   :  { %v3441_v33 = vpack.c.bf16 %v6988_v52, %v6988_v52 }
0x3bab   :  { %3443 = vrot.lane.b32.xlu1 %v3441_v33, %s5492_s7 }
0x3c1d   :  { %v3444_v44 = vpop.permute.xlu1 %3443 }
0x3c1e   :  { %5102 = vmatmul.mubr.msk.bf16.vlgmr.msra.gmra.mrb[48].mxu1 %vm798_vm6, %v3444_v44 }
0x3c1f   :  { %5114 = vmatpush3.bf16.msra.mxu1 %v6778_v62  ;;  %5117 = vmatprep.mubr.msk.bf16.mxu1 %vm5488_vm2, %v7375_v20 }
0x3c20   :  { %5115 = vmatprep.subr.bf16.mxu1 %v7375_v20 }
0x3c23   :  { %5116 = vmatpush3.bf16.msra.mxu1 %v6787_v2 }
0x3c24   :  { %5129 = vmatprep.subr.bf16.mxu1 %v7375_v20 }
0x3cf1   :  { %v3482_v41 = vpop.f32.mrb[48].mxu1 }
0x3cf2   :  { %v3488_v30 = vadd.f32 %v3482_v41, %v6511_v14  ;;  %v5103_v22 = vpop.f32.mrb[49].mxu1 }
0x3cf3   :  { %v3485_v12 = vpop.f32.mrb[50].mxu1 }
0x3cf4   :  { %v3489_v6 = vmul.f32 %v3488_v30, %v6164_v42  ;;  %v5104_v28 = vpop.f32.mrb[51].mxu1 }
0x3cf6   :  { %5408 = vtanh.f32 %v3489_v6 }
0x3d00   :  { %v5409_v46 = vpop.eup %5408 }
0x3d01   :  { %v3491_v37 = vadd.f32 1.0, %v5409_v46 }
0x3d03   :  { %v3492_v34 = vmul.f32 0.5, %v3491_v37 }
0x3d05   :  { %v3493_v19 = vsel %vm6153_vm5, %v5409_v46, %v3492_v34 }
0x3d06   :  { %3496 = vrot.lane.b32.xlu0 %v3493_v19, %s5491_s13  ;;  %v3494_v21 = vmul.f32 %v3493_v19, %v3418_v24 }
0x3d78   :  { %v3497_v32 = vpop.permute.xlu0 %3496 }
0x3d79   :  { %v3499_v11 = vmul.f32 %v3497_v32, %v3493_v19 }
0x3d7b   :  { %3501 = vrot.lane.b32.xlu1 %v3499_v11, %s5492_s7 }
0x3ded   :  { %v3502_v14 = vpop.permute.xlu1 %3501 }
0x3dee   :  { %v3504_v47 = vadd.f32 %v3502_v14, %v3494_v21 }
0x3df0   :  { %5410 = vtanh.f32 %v3504_v47 }
0x3dfa   :  { %v5411_v1 = vpop.eup %5410 }
0x3dfb   :  { %3507 = vrot.lane.b32.xlu0 %v5411_v1, %s5491_s13 }
0x3e6d   :  { %v3508_v13 = vpop.permute.xlu0 %3507 }
0x3e6e   :  { %v7007_v43 = vmul.f32 %v3508_v13, %v3493_v19 }
0x3e70   :  { %v3511_v38 = vpack.c.bf16 %v7007_v43, %v7007_v43 }
0x3e72   :  { %3513 = vrot.lane.b32.xlu1 %v3511_v38, %s5492_s7 }
0x3ee4   :  { %v3514_v25 = vpop.permute.xlu1 %3513 }
0x3ee5   :  { %5110 = vmatmul.mubr.msk.bf16.vlgmr.msra.gmra.mrb[72].mxu0 %vm798_vm6, %v3514_v25 }
0x3ee6   :  { %5122 = vmatpush3.bf16.msra.mxu0 %v6778_v62  ;;  %5125 = vmatprep.mubr.msk.bf16.mxu0 %vm5488_vm2, %v7375_v20 }
0x3ee7   :  { %5123 = vmatprep.subr.bf16.mxu0 %v7375_v20 }
0x3eea   :  { %5124 = vmatpush3.bf16.msra.mxu0 %v6787_v2 }
0x3eeb   :  { %5137 = vmatprep.subr.bf16.mxu0 %v7375_v20 }
0x3fb8   :  { %v3552_v27 = vpop.f32.mrb[72].mxu0 }
0x3fb9   :  { %v3558_v40 = vadd.f32 %v3552_v27, %v6529_v49  ;;  %v5111_v24 = vpop.f32.mrb[73].mxu0 }
0x3fba   :  { %v3555_v3 = vpop.f32.mrb[74].mxu0 }
0x3fbb   :  { %v3559_v58 = vmul.f32 %v3558_v40, %v6164_v42  ;;  %v5112_v33 = vpop.f32.mrb[75].mxu0 }
0x3fbd   :  { %5412 = vtanh.f32 %v3559_v58 }
0x3fc7   :  { %v5413_v44 = vpop.eup %5412 }
0x3fc8   :  { %v3561_v41 = vadd.f32 1.0, %v5413_v44 }
0x3fca   :  { %v3562_v30 = vmul.f32 0.5, %v3561_v41 }
0x3fcc   :  { %v3563_v22 = vsel %vm6153_vm5, %v5413_v44, %v3562_v30 }
0x3fcd   :  { %3566 = vrot.lane.b32.xlu0 %v3563_v22, %s5491_s13  ;;  %v3564_v28 = vmul.f32 %v3563_v22, %v3504_v47 }
0x403f   :  { %v3567_v12 = vpop.permute.xlu0 %3566 }
0x4040   :  { %v3569_v6 = vmul.f32 %v3567_v12, %v3563_v22 }
0x4042   :  { %3571 = vrot.lane.b32.xlu1 %v3569_v6, %s5492_s7 }
0x40b4   :  { %v3572_v49 = vpop.permute.xlu1 %3571 }
0x40b5   :  { %v3574_v46 = vadd.f32 %v3572_v49, %v3564_v28 }
0x40b7   :  { %5414 = vtanh.f32 %v3574_v46 }
0x40c1   :  { %v5415_v37 = vpop.eup %5414 }
0x40c2   :  { %3577 = vrot.lane.b32.xlu0 %v5415_v37, %s5491_s13 }
0x4134   :  { %v3578_v34 = vpop.permute.xlu0 %3577 }
0x4135   :  { %v7026_v19 = vmul.f32 %v3578_v34, %v3563_v22 }
0x4137   :  { %v3581_v32 = vpack.c.bf16 %v7026_v19, %v7026_v19 }
0x4139   :  { %3583 = vrot.lane.b32.xlu1 %v3581_v32, %s5492_s7 }
0x41ab   :  { %v3584_v11 = vpop.permute.xlu1 %3583 }
0x41ac   :  { %5118 = vmatmul.mubr.msk.bf16.vlgmr.msra.gmra.mrb[52].mxu1 %vm798_vm6, %v3584_v11 }
0x41ad   :  { %5130 = vmatpush3.bf16.msra.mxu1 %v6778_v62  ;;  %5133 = vmatprep.mubr.msk.bf16.mxu1 %vm5488_vm2, %v7375_v20 }
0x41ae   :  { %5131 = vmatprep.subr.bf16.mxu1 %v7375_v20 }
0x41b1   :  { %5132 = vmatpush3.bf16.msra.mxu1 %v6787_v2 }
0x41b2   :  { %5145 = vmatprep.subr.bf16.mxu1 %v7375_v20 }
0x427f   :  { %v3622_v21 = vpop.f32.mrb[52].mxu1 }
0x4280   :  { %v3628_v14 = vadd.f32 %v3622_v21, %v6546_v23  ;;  %v5119_v47 = vpop.f32.mrb[53].mxu1 }
0x4281   :  { %v3625_v1 = vpop.f32.mrb[54].mxu1 }
0x4282   :  { %v3629_v13 = vmul.f32 %v3628_v14, %v6164_v42  ;;  %v5120_v38 = vpop.f32.mrb[55].mxu1 }
0x4284   :  { %5416 = vtanh.f32 %v3629_v13 }
0x428e   :  { %v5417_v25 = vpop.eup %5416 }
0x428f   :  { %v3631_v27 = vadd.f32 1.0, %v5417_v25 }
0x4291   :  { %v3632_v40 = vmul.f32 0.5, %v3631_v27 }
0x4293   :  { %v3633_v24 = vsel %vm6153_vm5, %v5417_v25, %v3632_v40 }
0x4294   :  { %3636 = vrot.lane.b32.xlu0 %v3633_v24, %s5491_s13  ;;  %v3634_v33 = vmul.f32 %v3633_v24, %v3574_v46 }
0x4306   :  { %v3637_v3 = vpop.permute.xlu0 %3636 }
0x4307   :  { %v3639_v58 = vmul.f32 %v3637_v3, %v3633_v24 }
0x4309   :  { %3641 = vrot.lane.b32.xlu1 %v3639_v58, %s5492_s7 }
0x437b   :  { %v3642_v23 = vpop.permute.xlu1 %3641 }
0x437c   :  { %v3644_v44 = vadd.f32 %v3642_v23, %v3634_v33 }
0x437e   :  { %5418 = vtanh.f32 %v3644_v44 }
0x4388   :  { %v5419_v41 = vpop.eup %5418 }
0x4389   :  { %3647 = vrot.lane.b32.xlu0 %v5419_v41, %s5491_s13 }
0x43fb   :  { %v3648_v30 = vpop.permute.xlu0 %3647 }
0x43fc   :  { %v7045_v22 = vmul.f32 %v3648_v30, %v3633_v24 }
0x43fe   :  { %v3651_v12 = vpack.c.bf16 %v7045_v22, %v7045_v22 }
0x4400   :  { %3653 = vrot.lane.b32.xlu1 %v3651_v12, %s5492_s7 }
0x4472   :  { %v3654_v6 = vpop.permute.xlu1 %3653 }
0x4473   :  { %5126 = vmatmul.mubr.msk.bf16.vlgmr.msra.gmra.mrb[76].mxu0 %vm798_vm6, %v3654_v6 }
0x4474   :  { %5138 = vmatpush3.bf16.msra.mxu0 %v6778_v62  ;;  %5141 = vmatprep.mubr.msk.bf16.mxu0 %vm5488_vm2, %v7375_v20 }
0x4475   :  { %5139 = vmatprep.subr.bf16.mxu0 %v7375_v20 }
0x4478   :  { %5140 = vmatpush3.bf16.msra.mxu0 %v6787_v2 }
0x4479   :  { %5153 = vmatprep.subr.bf16.mxu0 %v7375_v20 }
0x4546   :  { %v3692_v28 = vpop.f32.mrb[76].mxu0 }
0x4547   :  { %v3698_v49 = vadd.f32 %v3692_v28, %v6553_v50  ;;  %v5127_v46 = vpop.f32.mrb[77].mxu0 }
0x4548   :  { %v3695_v37 = vpop.f32.mrb[78].mxu0 }
0x4549   :  { %v3699_v34 = vmul.f32 %v3698_v49, %v6164_v42  ;;  %v5128_v32 = vpop.f32.mrb[79].mxu0 }
0x454b   :  { %5420 = vtanh.f32 %v3699_v34 }
0x4555   :  { %v5421_v11 = vpop.eup %5420 }
0x4556   :  { %v3701_v21 = vadd.f32 1.0, %v5421_v11 }
0x4558   :  { %v3702_v14 = vmul.f32 0.5, %v3701_v21 }
0x455a   :  { %v3703_v47 = vsel %vm6153_vm5, %v5421_v11, %v3702_v14 }
0x455b   :  { %3706 = vrot.lane.b32.xlu0 %v3703_v47, %s5491_s13  ;;  %v3704_v38 = vmul.f32 %v3703_v47, %v3644_v44 }
0x45cd   :  { %v3707_v1 = vpop.permute.xlu0 %3706 }
0x45ce   :  { %v3709_v13 = vmul.f32 %v3707_v1, %v3703_v47  ;;  %v7092_v1 = vld [vmem:[%s7344_s12] sm:$0xff]  }
0x45d0   :  { %3711 = vrot.lane.b32.xlu1 %v3709_v13, %s5492_s7  ;;  %v7101_v13 = vld [vmem:[%s7344_s12 + $0x8] sm:$0xff]   ;;  %s5493_s12 = smov 96  }
0x4642   :  { %v3712_v50 = vpop.permute.xlu1 %3711 }
0x4643   :  { %v3714_v25 = vadd.f32 %v3712_v50, %v3704_v38 }
0x4645   :  { %5422 = vtanh.f32 %v3714_v25 }
0x464f   :  { %v5423_v27 = vpop.eup %5422 }
0x4650   :  { %3717 = vrot.lane.b32.xlu0 %v5423_v27, %s5491_s13 }
0x46c2   :  { %v3718_v40 = vpop.permute.xlu0 %3717 }
0x46c3   :  { %v7064_v24 = vmul.f32 %v3718_v40, %v3703_v47 }
0x46c5   :  { %v3737_v3 = vpack.c.bf16 %v7064_v24, %v7064_v24 }
0x46c7   :  { %3739 = vrot.lane.b32.xlu1 %v3737_v3, %s5492_s7 }
0x4739   :  { %v3740_v58 = vpop.permute.xlu1 %3739 }
0x473a   :  { %5134 = vmatmul.mubr.msk.bf16.vlgmr.msra.gmra.mrb[56].mxu1 %vm798_vm6, %v3740_v58 }
0x473b   :  { %5146 = vmatpush3.bf16.msra.mxu1 %v6778_v62  ;;  %5149 = vmatprep.mubr.msk.bf16.mxu1 %vm5488_vm2, %v7375_v20 }
0x473c   :  { %5147 = vmatprep.subr.bf16.mxu1 %v7375_v20 }
0x473f   :  { %5148 = vmatpush3.bf16.msra.mxu1 %v6787_v2 }
0x4740   :  { %5161 = vmatprep.subr.bf16.mxu1 %v7375_v20 }
0x480d   :  { %v3778_v33 = vpop.f32.mrb[56].mxu1 }
0x480e   :  { %v3784_v23 = vadd.f32 %v3778_v33, %v6550_v54  ;;  %v5135_v44 = vpop.f32.mrb[57].mxu1 }
0x480f   :  { %v3781_v41 = vpop.f32.mrb[58].mxu1 }
0x4810   :  { %v3785_v30 = vmul.f32 %v3784_v23, %v6164_v42  ;;  %v5136_v12 = vpop.f32.mrb[59].mxu1 }
0x4812   :  { %5424 = vtanh.f32 %v3785_v30 }
0x481c   :  { %v5425_v6 = vpop.eup %5424 }
0x481d   :  { %v3787_v62 = vadd.f32 1.0, %v5425_v6 }
0x481f   :  { %v3788_v28 = vmul.f32 0.5, %v3787_v62 }
0x4821   :  { %v3789_v49 = vsel %vm6153_vm5, %v5425_v6, %v3788_v28 }
0x4822   :  { %3792 = vrot.lane.b32.xlu0 %v3789_v49, %s5491_s13  ;;  %v3790_v37 = vmul.f32 %v3789_v49, %v3714_v25 }
0x4894   :  { %v3793_v2 = vpop.permute.xlu0 %3792 }
0x4895   :  { %v3795_v46 = vmul.f32 %v3793_v2, %v3789_v49 }
0x4897   :  { %3797 = vrot.lane.b32.xlu1 %v3795_v46, %s5492_s7 }
0x4909   :  { %v3798_v54 = vpop.permute.xlu1 %3797 }
0x490a   :  { %v3800_v34 = vadd.f32 %v3798_v54, %v3790_v37 }
0x490c   :  { %5426 = vtanh.f32 %v3800_v34 }
0x4916   :  { %v5427_v32 = vpop.eup %5426 }
0x4917   :  { %3803 = vrot.lane.b32.xlu0 %v5427_v32, %s5491_s13 }
0x4989   :  { %v3804_v11 = vpop.permute.xlu0 %3803 }
0x498a   :  { %v7083_v21 = vmul.f32 %v3804_v11, %v3789_v49 }
0x498c   :  { %v3807_v14 = vpack.c.bf16 %v7083_v21, %v7083_v21 }
0x498e   :  { %3809 = vrot.lane.b32.xlu1 %v3807_v14, %s5492_s7 }
0x4a00   :  { %v3810_v47 = vpop.permute.xlu1 %3809 }
0x4a01   :  { %5142 = vmatmul.mubr.msk.bf16.vlgmr.msra.gmra.mrb[80].mxu0 %vm798_vm6, %v3810_v47 }
0x4a02   :  { %5154 = vmatpush3.bf16.msra.mxu0 %v7092_v1  ;;  %5157 = vmatprep.mubr.msk.bf16.mxu0 %vm5488_vm2, %v7375_v20 }
0x4a03   :  { %5155 = vmatprep.subr.bf16.mxu0 %v7375_v20 }
0x4a06   :  { %5156 = vmatpush3.bf16.msra.mxu0 %v7101_v13 }
0x4a07   :  { %5169 = vmatprep.subr.bf16.mxu0 %v7375_v20 }
0x4ad4   :  { %v3848_v38 = vpop.f32.mrb[80].mxu0 }
0x4ad5   :  { %v3854_v50 = vadd.f32 %v3848_v38, %v6556_v35  ;;  %v5143_v25 = vpop.f32.mrb[81].mxu0 }
0x4ad6   :  { %v3851_v27 = vpop.f32.mrb[82].mxu0 }
0x4ad7   :  { %v3855_v40 = vmul.f32 %v3854_v50, %v6164_v42  ;;  %v5144_v3 = vpop.f32.mrb[83].mxu0 }
0x4ad9   :  { %5428 = vtanh.f32 %v3855_v40 }
0x4ae3   :  { %v5429_v58 = vpop.eup %5428 }
0x4ae4   :  { %v3857_v33 = vadd.f32 1.0, %v5429_v58 }
0x4ae6   :  { %v3858_v23 = vmul.f32 0.5, %v3857_v33 }
0x4ae8   :  { %v3859_v44 = vsel %vm6153_vm5, %v5429_v58, %v3858_v23 }
0x4ae9   :  { %3862 = vrot.lane.b32.xlu0 %v3859_v44, %s5491_s13  ;;  %v3860_v12 = vmul.f32 %v3859_v44, %v3800_v34 }
0x4b5b   :  { %v3863_v41 = vpop.permute.xlu0 %3862 }
0x4b5c   :  { %v3865_v30 = vmul.f32 %v3863_v41, %v3859_v44 }
0x4b5e   :  { %3867 = vrot.lane.b32.xlu1 %v3865_v30, %s5492_s7 }
0x4bd0   :  { %v3868_v35 = vpop.permute.xlu1 %3867 }
0x4bd1   :  { %v3870_v6 = vadd.f32 %v3868_v35, %v3860_v12 }
0x4bd3   :  { %5430 = vtanh.f32 %v3870_v6 }
0x4bdd   :  { %v5431_v62 = vpop.eup %5430 }
0x4bde   :  { %3873 = vrot.lane.b32.xlu0 %v5431_v62, %s5491_s13 }
0x4c50   :  { %v3874_v28 = vpop.permute.xlu0 %3873 }
0x4c51   :  { %v7112_v49 = vmul.f32 %v3874_v28, %v3859_v44 }
0x4c53   :  { %v3877_v2 = vpack.c.bf16 %v7112_v49, %v7112_v49 }
0x4c55   :  { %3879 = vrot.lane.b32.xlu1 %v3877_v2, %s5492_s7 }
0x4cc7   :  { %v3880_v46 = vpop.permute.xlu1 %3879 }
0x4cc8   :  { %5150 = vmatmul.mubr.msk.bf16.vlgmr.msra.gmra.mrb[60].mxu1 %vm798_vm6, %v3880_v46 }
0x4cc9   :  { %5162 = vmatpush3.bf16.msra.mxu1 %v7092_v1  ;;  %5165 = vmatprep.mubr.msk.bf16.mxu1 %vm5488_vm2, %v7375_v20 }
0x4cca   :  { %5163 = vmatprep.subr.bf16.mxu1 %v7375_v20 }
0x4ccd   :  { %5164 = vmatpush3.bf16.msra.mxu1 %v7101_v13 }
0x4cce   :  { %5177 = vmatprep.subr.bf16.mxu1 %v7375_v20 }
0x4d9b   :  { %v3918_v37 = vpop.f32.mrb[60].mxu1 }
0x4d9c   :  { %v3924_v54 = vadd.f32 %v3918_v37, %v6570_v18  ;;  %v5151_v34 = vpop.f32.mrb[61].mxu1 }
0x4d9d   :  { %v3921_v32 = vpop.f32.mrb[62].mxu1 }
0x4d9e   :  { %v3925_v11 = vmul.f32 %v3924_v54, %v6164_v42  ;;  %v5152_v14 = vpop.f32.mrb[63].mxu1 }
0x4da0   :  { %5432 = vtanh.f32 %v3925_v11 }
0x4daa   :  { %v5433_v47 = vpop.eup %5432 }
0x4dab   :  { %v3927_v38 = vadd.f32 1.0, %v5433_v47 }
0x4dad   :  { %v3928_v50 = vmul.f32 0.5, %v3927_v38 }
0x4daf   :  { %v3929_v25 = vsel %vm6153_vm5, %v5433_v47, %v3928_v50 }
0x4db0   :  { %3932 = vrot.lane.b32.xlu0 %v3929_v25, %s5491_s13  ;;  %v3930_v3 = vmul.f32 %v3929_v25, %v3870_v6 }
0x4e22   :  { %v3933_v27 = vpop.permute.xlu0 %3932 }
0x4e23   :  { %v3935_v40 = vmul.f32 %v3933_v27, %v3929_v25 }
0x4e25   :  { %3937 = vrot.lane.b32.xlu1 %v3935_v40, %s5492_s7 }
0x4e97   :  { %v3938_v18 = vpop.permute.xlu1 %3937 }
0x4e98   :  { %v3940_v58 = vadd.f32 %v3938_v18, %v3930_v3 }
0x4e9a   :  { %5434 = vtanh.f32 %v3940_v58 }
0x4ea4   :  { %v5435_v33 = vpop.eup %5434 }
0x4ea5   :  { %3943 = vrot.lane.b32.xlu0 %v5435_v33, %s5491_s13 }
0x4f17   :  { %v3944_v23 = vpop.permute.xlu0 %3943 }
0x4f18   :  { %v7131_v44 = vmul.f32 %v3944_v23, %v3929_v25 }
0x4f1a   :  { %v3947_v41 = vpack.c.bf16 %v7131_v44, %v7131_v44 }
0x4f1c   :  { %3949 = vrot.lane.b32.xlu1 %v3947_v41, %s5492_s7 }
0x4f8e   :  { %v3950_v30 = vpop.permute.xlu1 %3949 }
0x4f8f   :  { %5158 = vmatmul.mubr.msk.bf16.vlgmr.msra.gmra.mrb[84].mxu0 %vm798_vm6, %v3950_v30 }
0x4f90   :  { %5170 = vmatpush3.bf16.msra.mxu0 %v7092_v1  ;;  %5173 = vmatprep.mubr.msk.bf16.mxu0 %vm5488_vm2, %v7375_v20 }
0x4f91   :  { %5171 = vmatprep.subr.bf16.mxu0 %v7375_v20 }
0x4f94   :  { %5172 = vmatpush3.bf16.msra.mxu0 %v7101_v13 }
0x4f95   :  { %5185 = vmatprep.subr.bf16.mxu0 %v7375_v20 }
0x5062   :  { %v3988_v12 = vpop.f32.mrb[84].mxu0 }
0x5063   :  { %v3994_v35 = vadd.f32 %v3988_v12, %v6594_v16  ;;  %v5159_v6 = vpop.f32.mrb[85].mxu0 }
0x5064   :  { %v3991_v62 = vpop.f32.mrb[86].mxu0 }
0x5065   :  { %v3995_v28 = vmul.f32 %v3994_v35, %v6164_v42  ;;  %v5160_v2 = vpop.f32.mrb[87].mxu0 }
0x5067   :  { %5436 = vtanh.f32 %v3995_v28 }
0x5071   :  { %v5437_v46 = vpop.eup %5436 }
0x5072   :  { %v3997_v37 = vadd.f32 1.0, %v5437_v46 }
0x5074   :  { %v3998_v54 = vmul.f32 0.5, %v3997_v37 }
0x5076   :  { %v3999_v34 = vsel %vm6153_vm5, %v5437_v46, %v3998_v54 }
0x5077   :  { %4002 = vrot.lane.b32.xlu0 %v3999_v34, %s5491_s13  ;;  %v4000_v14 = vmul.f32 %v3999_v34, %v3940_v58 }
0x50e9   :  { %v4003_v32 = vpop.permute.xlu0 %4002 }
0x50ea   :  { %v4005_v11 = vmul.f32 %v4003_v32, %v3999_v34 }
0x50ec   :  { %4007 = vrot.lane.b32.xlu1 %v4005_v11, %s5492_s7 }
0x515e   :  { %v4008_v16 = vpop.permute.xlu1 %4007 }
0x515f   :  { %v4010_v47 = vadd.f32 %v4008_v16, %v4000_v14 }
0x5161   :  { %5438 = vtanh.f32 %v4010_v47 }
0x516b   :  { %v5439_v38 = vpop.eup %5438 }
0x516c   :  { %4013 = vrot.lane.b32.xlu0 %v5439_v38, %s5491_s13 }
0x51de   :  { %v4014_v50 = vpop.permute.xlu0 %4013 }
0x51df   :  { %v7150_v25 = vmul.f32 %v4014_v50, %v3999_v34 }
0x51e1   :  { %v4033_v27 = vpack.c.bf16 %v7150_v25, %v7150_v25 }
0x51e3   :  { %4035 = vrot.lane.b32.xlu1 %v4033_v27, %s5492_s7 }
0x5255   :  { %v4036_v40 = vpop.permute.xlu1 %4035 }
0x5256   :  { %5166 = vmatmul.mubr.msk.bf16.vlgmr.msra.gmra.mrb[64].mxu1 %vm798_vm6, %v4036_v40 }
0x5257   :  { %5178 = vmatpush3.bf16.msra.mxu1 %v7092_v1  ;;  %5181 = vmatprep.mubr.msk.bf16.mxu1 %vm5488_vm2, %v7375_v20 }
0x5258   :  { %5179 = vmatprep.subr.bf16.mxu1 %v7375_v20 }
0x525b   :  { %5180 = vmatpush3.bf16.msra.mxu1 %v7101_v13 }
0x5329   :  { %v4074_v3 = vpop.f32.mrb[64].mxu1 }
0x532a   :  { %v4080_v18 = vadd.f32 %v4074_v3, %v6587_v57  ;;  %v5167_v58 = vpop.f32.mrb[65].mxu1 }
0x532b   :  { %v4077_v33 = vpop.f32.mrb[66].mxu1 }
0x532c   :  { %v4081_v23 = vmul.f32 %v4080_v18, %v6164_v42  ;;  %v5168_v41 = vpop.f32.mrb[67].mxu1 }
0x532e   :  { %5440 = vtanh.f32 %v4081_v23 }
0x5338   :  { %v5441_v30 = vpop.eup %5440 }
0x5339   :  { %v4083_v12 = vadd.f32 1.0, %v5441_v30 }
0x533b   :  { %v4084_v35 = vmul.f32 0.5, %v4083_v12 }
0x533d   :  { %v4085_v6 = vsel %vm6153_vm5, %v5441_v30, %v4084_v35 }
0x533e   :  { %4088 = vrot.lane.b32.xlu0 %v4085_v6, %s5491_s13  ;;  %v4086_v2 = vmul.f32 %v4085_v6, %v4010_v47 }
0x53b0   :  { %v4089_v62 = vpop.permute.xlu0 %4088 }
0x53b1   :  { %v4091_v28 = vmul.f32 %v4089_v62, %v4085_v6 }
0x53b3   :  { %4093 = vrot.lane.b32.xlu1 %v4091_v28, %s5492_s7 }
0x5425   :  { %v4094_v57 = vpop.permute.xlu1 %4093 }
0x5426   :  { %v4096_v46 = vadd.f32 %v4094_v57, %v4086_v2 }
0x5428   :  { %5442 = vtanh.f32 %v4096_v46 }
0x5432   :  { %v5443_v37 = vpop.eup %5442 }
0x5433   :  { %4099 = vrot.lane.b32.xlu0 %v5443_v37, %s5491_s13 }
0x54a5   :  { %v4100_v54 = vpop.permute.xlu0 %4099 }
0x54a6   :  { %v7168_v34 = vmul.f32 %v4100_v54, %v4085_v6 }
0x54a8   :  { %v4103_v32 = vpack.c.bf16 %v7168_v34, %v7168_v34 }
0x54aa   :  { %4105 = vrot.lane.b32.xlu1 %v4103_v32, %s5492_s7 }
0x551c   :  { %v4106_v11 = vpop.permute.xlu1 %4105 }
0x551d   :  { %5174 = vmatmul.mubr.msk.bf16.vlgmr.msra.gmra.mrb[88].mxu0 %vm798_vm6, %v4106_v11 }
0x551e   :  { %5186 = vmatpush3.bf16.msra.mxu0 %v7092_v1  ;;  %5189 = vmatprep.mubr.msk.bf16.mxu0 %vm5488_vm2, %v7375_v20 }
0x551f   :  { %5187 = vmatprep.subr.bf16.mxu0 %v7375_v20 }
0x5522   :  { %5188 = vmatpush3.bf16.msra.mxu0 %v7101_v13 }
0x55f0   :  { %v4144_v14 = vpop.f32.mrb[88].mxu0 }
0x55f1   :  { %v4150_v16 = vadd.f32 %v4144_v14, %v6605_v61  ;;  %v5175_v47 = vpop.f32.mrb[89].mxu0 }
0x55f2   :  { %v4147_v38 = vpop.f32.mrb[90].mxu0 }
0x55f3   :  { %v4151_v50 = vmul.f32 %v4150_v16, %v6164_v42  ;;  %v5176_v27 = vpop.f32.mrb[91].mxu0 }
0x55f5   :  { %5444 = vtanh.f32 %v4151_v50 }
0x55ff   :  { %v5445_v40 = vpop.eup %5444 }
0x5600   :  { %v4153_v3 = vadd.f32 1.0, %v5445_v40 }
0x5602   :  { %v4154_v18 = vmul.f32 0.5, %v4153_v3 }
0x5604   :  { %v4155_v1 = vsel %vm6153_vm5, %v5445_v40, %v4154_v18 }
0x5605   :  { %4158 = vrot.lane.b32.xlu0 %v4155_v1, %s5491_s13  ;;  %v4156_v13 = vmul.f32 %v4155_v1, %v4096_v46 }
0x5677   :  { %v4159_v20 = vpop.permute.xlu0 %4158 }
0x5678   :  { %v4161_v58 = vmul.f32 %v4159_v20, %v4155_v1 }
0x567a   :  { %4163 = vrot.lane.b32.xlu1 %v4161_v58, %s5492_s7 }
0x56ec   :  { %v4164_v61 = vpop.permute.xlu1 %4163 }
0x56ed   :  { %v4166_v33 = vadd.f32 %v4164_v61, %v4156_v13 }
0x56ef   :  { %5446 = vtanh.f32 %v4166_v33 }
0x56f9   :  { %v5447_v23 = vpop.eup %5446 }
0x56fa   :  { %4169 = vrot.lane.b32.xlu0 %v5447_v23, %s5491_s13 }
0x576c   :  { %v4170_v41 = vpop.permute.xlu0 %4169 }
0x576d   :  { %v4172_v30 = vmul.f32 %v4170_v41, %v4155_v1 }
0x576f   :  { %v4173_v12 = vpack.c.bf16 %v4172_v30, %v4172_v30 }
0x5771   :  { %4175 = vrot.lane.b32.xlu1 %v4173_v12, %s5492_s7 }
0x57e3   :  { %v4176_v35 = vpop.permute.xlu1 %4175 }
0x57e4   :  { %5182 = vmatmul.mubr.msk.bf16.vlgmr.msra.gmra.mrb[68].mxu1 %vm798_vm6, %v4176_v35 }
0x58b7   :  { %v4214_v6 = vpop.f32.mrb[68].mxu1 }
0x58b8   :  { %v4220_v62 = vadd.f32 %v4214_v6, %v6609_v29  ;;  %v5183_v28 = vpop.f32.mrb[69].mxu1 }
0x58b9   :  { %v4217_v2 = vpop.f32.mrb[70].mxu1 }
0x58ba   :  { %v4221_v57 = vmul.f32 %v4220_v62, %v6164_v42  ;;  %v5184_v46 = vpop.f32.mrb[71].mxu1 }
0x58bb   :  { %v5494_v46 = vmov 1983009808  }
0x58bc   :  { %5448 = vtanh.f32 %v4221_v57 }
0x58c6   :  { %v5449_v37 = vpop.eup %5448 }
0x58c7   :  { %v4223_v54 = vadd.f32 1.0, %v5449_v37 }
0x58c9   :  { %v4224_v32 = vmul.f32 0.5, %v4223_v54 }
0x58cb   :  { %v4225_v11 = vsel %vm6153_vm5, %v5449_v37, %v4224_v32  ;;  %v4350_v37 = vunpack.c.l.s4 %v5494_v46 }
0x58cc   :  { %4228 = vrot.lane.b32.xlu0 %v4225_v11, %s5491_s13  ;;  %v4226_v47 = vmul.f32 %v4225_v11, %v4166_v33 }
0x593e   :  { %v4229_v14 = vpop.permute.xlu0 %4228 }
0x593f   :  { %v4231_v16 = vmul.f32 %v4229_v14, %v4225_v11 }
0x5941   :  { %4233 = vrot.lane.b32.xlu1 %v4231_v16, %s5492_s7  ;;  %v4351_v16 = vunpack.c.0.s8 %v4350_v37 }
0x59b3   :  { %v4234_v29 = vpop.permute.xlu1 %4233 }
0x59b4   :  { %v4236_v38 = vadd.f32 %v4234_v29, %v4226_v47  ;;  %v4354_v29 = vsub.s32 %v4351_v16, %v6146_v10  ;;  %v4333_v10 = vld [vmem:[%s7346_s14 + $0x10] sm:$0xff] }
0x59b6   :  { %5450 = vtanh.f32 %v4236_v38 }
0x59c0   :  { %v5451_v50 = vpop.eup %5450 }
0x59c1   :  { %4239 = vrot.lane.b32.xlu0 %v5451_v50, %s5491_s13 }
0x5a33   :  { %v4240_v27 = vpop.permute.xlu0 %4239 }
0x5a34   :  { %v7195_v40 = vmul.f32 %v4240_v27, %v4225_v11 }
0x5a36   :  { %v4243_v3 = vpack.c.bf16 %v7195_v40, %v7195_v40 }
0x5a38   :  { %4245 = vrot.lane.b32.xlu1 %v4243_v3, %s5492_s7 }
0x5aaa   :  { %v4246_v18 = vpop.permute.xlu1 %4245 }
0x5aab   :  { %5190 = vmatmul.mubr.msk.bf16.vlgmr.msra.gmra.mrb[92].mxu0 %vm798_vm6, %v4246_v18 }
0x5b7e   :  { %v4284_v1 = vpop.f32.mrb[92].mxu0 }
0x5b7f   :  { %v4290_v20 = vadd.f32 %v4284_v1, %v6613_v26  ;;  %v5191_v58 = vpop.f32.mrb[93].mxu0  ;;  %v4332_v26 = vld [vmem:[%s7346_s14 + $0x8] sm:$0xff] }
0x5b80   :  { %v4287_v13 = vpop.f32.mrb[94].mxu0  ;;  %4390 = vmatprep.subr.mxu1 %v4332_v26 }
0x5b81   :  { %v4291_v61 = vmul.f32 %v4290_v20, %v6164_v42  ;;  %v5192_v33 = vpop.f32.mrb[95].mxu0 }
0x5b83   :  { %5452 = vtanh.f32 %v4291_v61  ;;  %v4336_v61 = vld [vmem:[%s7346_s14 + $0x28] sm:$0xff] }
0x5b8d   :  { %v5453_v23 = vpop.eup %5452 }
0x5b8e   :  { %v4293_v41 = vadd.f32 1.0, %v5453_v23 }
0x5b90   :  { %v4294_v12 = vmul.f32 0.5, %v4293_v41 }
0x5b92   :  { %v7205_v35 = vsel %vm6153_vm5, %v5453_v23, %v4294_v12 }
0x5b93   :  { %4298 = vrot.lane.b32.xlu0 %v7205_v35, %s5491_s13 }
0x5b97   :  { %2241 = vrot.lane.b32.xlu0 %v6617_v59, %s5492_s7  ;;  %v4331_v59 = vld [vmem:[%s7346_s14] sm:$0xff] }
0x5b98   :  { %4391 = vmatpush1.xpose.msra.mxu1 %v4331_v59 }
0x5b9b   :  { %2538 = vrot.lane.b32.xlu0 %v6693_v63, %s5492_s7 }
0x5b9f   :  { %2834 = vrot.lane.b32.xlu0 %v6769_v15, %s5492_s7 }
0x5ba3   :  { %3130 = vrot.lane.b32.xlu0 %v6855_v56, %s5492_s7 }
0x5ba7   :  { %2249 = vrot.lane.b32.xlu0 %v6655_v4, %s5493_s12 }
0x5bab   :  { %2842 = vrot.lane.b32.xlu0 %v6817_v36, %s5493_s12 }
0x5baf   :  { %3426 = vrot.lane.b32.xlu0 %v6931_v60, %s5492_s7 }
0x5bb3   :  { %3722 = vrot.lane.b32.xlu0 %v7007_v43, %s5492_s7 }
0x5bb7   :  { %4018 = vrot.lane.b32.xlu0 %v7083_v21, %s5492_s7 }
0x5bbb   :  { %4318 = vrot.lane.b32.xlu0 %v4172_v30, %s5491_s13 }
0x5bbf   :  { %3730 = vrot.lane.b32.xlu0 %v7045_v22, %s5493_s12 }
0x5c05   :  { %v4299_v8 = vpop.permute.xlu0 %4298 }
0x5c06   :  { %v4301_v42 = vmul.f32 %v4299_v8, %v7205_v35  ;;  %v4335_v8 = vld [vmem:[%s7346_s14 + $0x20] sm:$0xff] }
0x5c08   :  { %4303 = vrot.lane.b32.xlu1 %v4301_v42, %s5492_s7  ;;  %v4338_v42 = vld [vmem:[%s7346_s14 + $0x38] sm:$0xff] }
0x5c09   :  { %v2242_v4 = vpop.permute.xlu0 %2241 }
0x5c0c   :  { %2245 = vrot.lane.b32.xlu1 %v6636_v31, %s5491_s13  ;;  %v4334_v31 = vld [vmem:[%s7346_s14 + $0x18] sm:$0xff] }
0x5c0d   :  { %4460 = vmatprep.subr.mxu1 %v4334_v31  ;;  %v2539_v63 = vpop.permute.xlu0 %2538 }
0x5c10   :  { %2542 = vrot.lane.b32.xlu1 %v6712_v45, %s5491_s13 }
0x5c11   :  { %v2835_v45 = vpop.permute.xlu0 %2834 }
0x5c14   :  { %2838 = vrot.lane.b32.xlu1 %v6798_v9, %s5491_s13  ;;  %v4296_v9 = vmul.f32 %v7205_v35, %v4236_v38 }
0x5c18   :  { %3134 = vrot.lane.b32.xlu1 %v6874_v53, %s5491_s13 }
0x5c1c   :  { %2546 = vrot.lane.b32.xlu1 %v6731_v48, %s5493_s12  ;;  %v3131_v48 = vpop.permute.xlu0 %3130 }
0x5c20   :  { %3138 = vrot.lane.b32.xlu1 %v6893_v7, %s5493_s12  ;;  %v2250_v15 = vpop.permute.xlu0 %2249 }
0x5c24   :  { %3430 = vrot.lane.b32.xlu1 %v6950_v0, %s5491_s13  ;;  %v2843_v53 = vpop.permute.xlu0 %2842 }
0x5c28   :  { %3726 = vrot.lane.b32.xlu1 %v7026_v19, %s5491_s13  ;;  %v3427_v19 = vpop.permute.xlu0 %3426 }
0x5c2c   :  { %4022 = vrot.lane.b32.xlu1 %v7112_v49, %s5491_s13 }
0x5c30   :  { %4314 = vrot.lane.b32.xlu1 %v7168_v34, %s5492_s7  ;;  %v3723_v34 = vpop.permute.xlu0 %3722  ;;  %s5495_s7 = smov [#allocation3]  }
0x5c31   :  { %s4682_s27 = sshll.u32 %s5495_s7, 4  ;;  %s4683_s27 = int_to_ptr.vmem [resolvable:$true] %s4682_s27 }
0x5c32   :  { %p5467_p1 = scmp.lt.s32.totalorder %s4683_s27, %s4683_s27 }
0x5c34   :  { %3434 = vrot.lane.b32.xlu1 %v6969_v17, %s5493_s12  ;;  %v4019_v28 = vpop.permute.xlu0 %4018 }
0x5c38   :  { %4026 = vrot.lane.b32.xlu1 %v7131_v44, %s5493_s12  ;;  %v4319_v14 = vpop.permute.xlu0 %4318 }
0x5c3c   :  { %v3731_v50 = vpop.permute.xlu0 %3730 }
0x5c7a   :  { %v4304_v36 = vpop.permute.xlu1 %4303 }
0x5c7b   :  { %v4306_v56 = vadd.f32 %v4304_v36, %v4296_v9 }
0x5c7d   :  { %5454 = vtanh.f32 %v4306_v56 }
0x5c7e   :  { %v2246_v7 = vpop.permute.xlu1 %2245 }
0x5c7f   :  { %v2252_v60 = vsel %vm798_vm6, %v2242_v4, %v2246_v7 }
0x5c80   :  { %v2253_v0 = vsel %vm448_vm7, %v2252_v60, %v2250_v15 }
0x5c81   :  { %v2255_v17 = vsel %vm2254_vm9, %v2253_v0, %v6674_v39 }
0x5c82   :  { %2256 = vst [vmem:[#allocation2] sm:$0x3] %v2255_v17  ;;  %v2543_v43 = vpop.permute.xlu1 %2542 }
0x5c83   :  { %v2549_v39 = vsel %vm798_vm6, %v2539_v63, %v2543_v43 }
0x5c86   :  { %v2839_v22 = vpop.permute.xlu1 %2838 }
0x5c87   :  { %v5455_v21 = vpop.eup %5454  ;;  %v2845_v49 = vsel %vm798_vm6, %v2835_v45, %v2839_v22 }
0x5c88   :  { %v2846_v44 = vsel %vm448_vm7, %v2845_v49, %v2843_v53  ;;  %4309 = vrot.lane.b32.xlu0 %v5455_v21, %s5491_s13 }
0x5c89   :  { %v2847_v30 = vsel %vm2254_vm9, %v2846_v44, %v6836_v51 }
0x5c8a   :  { %2848 = vst [vmem:[#allocation2 + $0x4] sm:$0x3] %v2847_v30  ;;  %v3135_v6 = vpop.permute.xlu1 %3134 }
0x5c8b   :  { %v3141_v54 = vsel %vm798_vm6, %v3131_v48, %v3135_v6 }
0x5c8c   :  { %4322 = vrot.lane.b32.xlu0 %v7195_v40, %s5493_s12 }
0x5c8e   :  { %v2547_v62 = vpop.permute.xlu1 %2546 }
0x5c8f   :  { %v2550_v2 = vsel %vm448_vm7, %v2549_v39, %v2547_v62 }
0x5c90   :  { %v2551_v57 = vsel %vm2254_vm9, %v2550_v2, %v6750_v5 }
0x5c91   :  { %2552 = vst [vmem:[#allocation2 + $0x2] sm:$0x3] %v2551_v57 }
0x5c92   :  { %v3139_v51 = vpop.permute.xlu1 %3138 }
0x5c93   :  { %v3142_v32 = vsel %vm448_vm7, %v3141_v54, %v3139_v51 }
0x5c94   :  { %v3143_v11 = vsel %vm2254_vm9, %v3142_v32, %v6912_v55 }
0x5c95   :  { %3144 = vst [vmem:[#allocation2 + $0x6] sm:$0x3] %v3143_v11 }
0x5c96   :  { %v3431_v47 = vpop.permute.xlu1 %3430 }
0x5c9a   :  { %v3727_v38 = vpop.permute.xlu1 %3726 }
0x5c9b   :  { %v3733_v5 = vsel %vm798_vm6, %v3723_v34, %v3727_v38 }
0x5c9c   :  { %v3734_v27 = vsel %vm448_vm7, %v3733_v5, %v3731_v50  ;;  %v4329_v40 = vld [vmem:[#allocation2] sm:$0xff] }
0x5c9d   :  { %v3735_v3 = vsel %vm2254_vm9, %v3734_v27, %v7064_v24  ;;  %v4355_v18 = vrot.slane %v4329_v40, %v4354_v29  ;;  %v4348_v1 = vcombine.high %v4329_v40, %v4329_v40  ;;  %v3437_v24 = vsel %vm798_vm6, %v3427_v19, %v3431_v47 }
0x5c9e   :  { %3736 = vst [vmem:[#allocation2 + $0xa] sm:$0x3] %v3735_v3  ;;  %v4023_v55 = vpop.permute.xlu1 %4022 }
0x5c9f   :  { %v4363_v20 = vcombine.high %v4355_v18, %v4355_v18  ;;  %v4362_v58 = vrot.slane %v4348_v1, %v4354_v29  ;;  %v4029_v26 = vsel %vm798_vm6, %v4019_v28, %v4023_v55 }
0x5ca1   :  { %4454 = vmatprep.mubr.f32.mxu1 %v4363_v20  ;;  %v4364_v13 = vcombine.high %v4362_v58, %v4362_v58 }
0x5ca2   :  { %v4315_v33 = vpop.permute.xlu1 %4314  ;;  %4455 = vmatmul.mubr.f32.vlgmr.msra.gmra.mrb[72].mxu1 %v4355_v18 }
0x5ca3   :  { %4524 = vmatprep.mubr.f32.mxu1 %v4364_v13  ;;  %4461 = vmatpush1.xpose.msra.mxu1 %v4333_v10  ;;  %v4325_v63 = vsel %vm798_vm6, %v4315_v33, %v4319_v14 }
0x5ca4   :  { %4530 = vmatprep.subr.mxu1 %v4336_v61 }
0x5ca6   :  { %v3435_v23 = vpop.permute.xlu1 %3434 }
0x5ca7   :  { %v3438_v41 = vsel %vm448_vm7, %v3437_v24, %v3435_v23 }
0x5ca8   :  { %v3439_v12 = vsel %vm2254_vm9, %v3438_v41, %v6988_v52 }
0x5ca9   :  { %3440 = vst [vmem:[#allocation2 + $0x8] sm:$0x3] %v3439_v12 }
0x5caa   :  { %v4027_v59 = vpop.permute.xlu1 %4026  ;;  %4525 = vmatmul.mubr.f32.vlgmr.msra.gmra.mrb[72].mxu1 %v4362_v58 }
0x5cab   :  { %v4030_v31 = vsel %vm448_vm7, %v4029_v26, %v4027_v59  ;;  %4531 = vmatpush1.xpose.msra.mxu1 %v4335_v8 }
0x5cac   :  { %v4031_v4 = vsel %vm2254_vm9, %v4030_v31, %v7150_v25  ;;  %4600 = vmatprep.subr.mxu1 %v4338_v42  ;;  %v4337_v25 = vld [vmem:[%s7346_s14 + $0x30] sm:$0xff]  ;;  %s5462_s14 = scalar_lea.vmem %s4683_s27, 32 }
0x5cad   :  { %4032 = vst [vmem:[#allocation2 + $0xc] sm:$0x3] %v4031_v4  ;;  %p5463_p0 = scmp.ne.s32.totalorder %s4683_s27, %s5462_s14  ;;  %p5468_p2 = scmp.lt.s32.totalorder %s5462_s14, %s5462_s14 }
0x5caf   :  { %p5469_p3 = por %p5468_p2, %p5467_p1 }
0x5cb1   :  { %p5470_p4 = pnand %p5469_p3, %p5463_p0 }
0x5cfa   :  { %v4310_v52 = vpop.permute.xlu0 %4309 }
0x5cfb   :  { %v4312_v45 = vmul.f32 %v4310_v52, %v7205_v35  ;;  %v4780_v35 = vld [vmem:[%s7347_s15] ss:$0 sm:$0xff] }
0x5cfe   :  { %v4323_v48 = vpop.permute.xlu0 %4322 }
0x5cff   :  { %v4326_v15 = vsel %vm448_vm7, %v4325_v63, %v4323_v48  ;;  %vm4674_vm7 = vcmask 58368  }
0x5d00   :  { %v4327_v9 = vsel %vm2254_vm9, %v4326_v15, %v4312_v45 }
0x5d01   :  { %4328 = vst [vmem:[#allocation2 + $0xe] sm:$0x3] %v4327_v9 }
0x5d08   :  { %v4330_v36 = vld [vmem:[#allocation2 + $0x8] sm:$0xff] }
0x5d09   :  { %v4372_v56 = vrot.slane %v4330_v36, %v4354_v29  ;;  %v4365_v53 = vcombine.high %v4330_v36, %v4330_v36 }
0x5d0b   :  { %v4380_v7 = vcombine.high %v4372_v56, %v4372_v56  ;;  %v4379_v60 = vrot.slane %v4365_v53, %v4354_v29 }
0x5d0d   :  { %4594 = vmatprep.mubr.f32.mxu1 %v4380_v7  ;;  %v4381_v0 = vcombine.high %v4379_v60, %v4379_v60 }
0x5d0e   :  { %4595 = vmatmul.mubr.f32.vlgmr.msra.gmra.mrb[72].mxu1 %v4372_v56 }
0x5d0f   :  { %4664 = vmatprep.mubr.f32.mxu1 %v4381_v0  ;;  %4601 = vmatpush1.xpose.msra.mxu1 %v4337_v25 }
0x5d16   :  { %4665 = vmatmul.mubr.f32.vlgmr.msra.gmra.mrb[72].mxu1 %v4379_v60 }
0x5de9   :  { %v4666_v17 = vpop.f32.mrb[72].mxu1 }
0x5dea   :  { %v5217_v43 = vadd.f32 %v4780_v35, %v4666_v17  ;;  %v4668_v19 = vpop.f32.mrb[73].mxu1 }
0x5dec   :  { %v4670_v22 = vmul.f32 0.5, %v5217_v43 }
0x5dee   :  { %5456 = vtanh.f32 %v4670_v22 }
0x5df8   :  { %v5457_v21 = vpop.eup %5456 }
0x5df9   :  { %v4672_v49 = vadd.f32 1.0, %v5457_v21 }
0x5dfb   :  { %v4673_v44 = vmul.f32 0.5, %v4672_v49 }
0x5dfd   :  { %4675 = vst.msk [vmem:[#allocation3] sm:$0x3] %vm4674_vm7, %v4673_v44 }
0x5dfe   :  { %5473 = shalt.err (!%p5470_p4)
}
0x5dff   :  { %s5474_s28 = scalar_lea.hbm %s7348_s16, 32 }
0x5e00   :  { %p5475_p5 = scmp.ne.s32.totalorder %s7348_s16, %s5474_s28  ;;  %p5478_p6 = scmp.lt.u32.totalorder %s5474_s28, %s7348_s16 }
0x5e02   :  { %p5480_p7 = pnand %p5478_p6, %p5475_p5 }
0x5e04   :  { %5483 = shalt.err (!%p5480_p7)
}
0x5e05   :  { %4685 = dma.vmem_to_hbm [thread:$0]  %s4683_s27, 32, %s7348_s16, [#allocation4]  }
0x5e06   :  { %5484 = dma.done.wait [#allocation4], 32  }
0x5e07   :  { %5485 = vsyncadd [#allocation4], 4294967264 }
0x5e08   :  { %4689 = vsyncpa [#allocation4], 1 }

</bundles_post_ra>
